<compile_context>
chip_gen: v6e
topology: v6e:2x2x1
jax: 0.10.0
libtpu: 0.0.40
codegen_flags: <defaults>
</compile_context>

<pallas_src>
from functools import partial

import numpy as np
import jax
import jax.numpy as jnp
from jax import lax
from jax.experimental import pallas as pl
from jax.experimental.pallas import tpu as pltpu


def attention_kernel(x_ref, wqkv_ref, bqkv_ref, wout_ref, bout_ref, o_ref,
                     qkv_ref, attn_ref, *, n_heads, d_k):
    """One grid step = one batch element (channel-major).

    x_ref    : (1, C, S)  f32   input tokens, channel-major
    wqkv_ref : (F, C)     bf16  permuted ([Q|K|V] by head), Q rows pre-scaled
    bqkv_ref : (F, 1)     f32   permuted/scaled bias (broadcast over S)
    wout_ref : (C, Dv)    bf16  output projection weight (single block)
    bout_ref : (C, 1)     f32
    o_ref    : (1, C, S)  f32
    qkv_ref  : (F, S)     bf16  VMEM scratch: staged qkv projection
    attn_ref : (Dv, S)    bf16  VMEM scratch: per-head attention outputs
    """
    C, S = x_ref.shape[1], x_ref.shape[2]
    Dv = n_heads * d_k

    # qkv projection on the MXU: (F, C) @ (C, S) -> (F, S).  Bias added in f32 on the
    # MXU result, single cast on the bf16 store.  x is NOT kept live here — it is
    # re-read at the residual add at the bottom (shorter live range, less spill).
    x_bf = x_ref[0].astype(jnp.bfloat16)                                  # (C, S)
    qkv_ref[...] = (
        jnp.dot(wqkv_ref[...], x_bf, preferred_element_type=jnp.float32)
        + bqkv_ref[...]).astype(jnp.bfloat16)

    # Ones rows appended to each head's V so the softmax denominator comes out of the
    # same MXU pass as the attention output (f32 accumulation; no (S,S) XLU sum).
    # Padded so the augmented sublane count stays a multiple of the bf16 tile (16).
    n_aug = ((d_k + 1 + 15) // 16) * 16
    ones_rows = jnp.ones((n_aug - d_k, S), jnp.bfloat16)

    # Static unroll over heads (n_heads is a compile-time constant); all per-head
    # temporaries die at the end of each iteration, results go to attn_ref.
    for h in range(n_heads):
        off = h * d_k
        q = qkv_ref[off:off + d_k, :]                                     # (dk, S) bf16
        k = qkv_ref[Dv + off:Dv + off + d_k, :]                           # (dk, S) bf16
        v = qkv_ref[2 * Dv + off:2 * Dv + off + d_k, :]                   # (dk, S) bf16

        # Scores key-major: s[j, i] = k_j . q_i (scale already folded into W_q).
        # Only a small (dk, S) transpose of k is implied; no (S, S) transpose anywhere.
        s = lax.dot_general(k, q, (((0,), (0,)), ((), ())),
                            preferred_element_type=jnp.float32)           # (S_k, S_q) f32
        m = jnp.max(s, axis=0, keepdims=True)                             # (1, S_q) f32
        e = jnp.exp((s - m).astype(jnp.bfloat16))                         # (S_k, S_q) bf16

        # [V ; ones] @ e : rows [0, dk) = unnormalized attention output, row dk = sum_k e.
        v_aug = jnp.concatenate([v, ones_rows], axis=0)                   # (n_aug, S_k) bf16
        o_aug = lax.dot_general(v_aug, e, (((1,), (0,)), ((), ())),
                                preferred_element_type=jnp.float32)       # (n_aug, S_q) f32
        l = o_aug[d_k:d_k + 1, :]                                         # (1, S_q) f32
        o_h = o_aug[:d_k, :] * pl.reciprocal(l, approx=True)              # deferred norm

        # Sublane-aligned, lane-dense store of this head's output.
        attn_ref[off:off + d_k, :] = o_h.astype(jnp.bfloat16)

    # One output projection over all heads: (C, Dv) @ (Dv, S) -> (C, S), contraction Dv.
    out = jnp.dot(wout_ref[...], attn_ref[...], preferred_element_type=jnp.float32)
    # Bias + residual (x re-read here), f32, lane-dense store along S.
    o_ref[0] = (out + bout_ref[...] + x_ref[0]).astype(o_ref.dtype)


def _vmem_limit_bytes(C, S, F, Dv, n_aug):
    """Rough VMEM working-set estimate with headroom (capped at v7x's 64 MiB)."""
    lane = 128
    pad_l = lambda n: ((n + lane - 1) // lane) * lane
    io_blocks = 2 * 2 * C * pad_l(S) * 4                       # x + out, double-buffered f32
    weights = (F * pad_l(C) * 2 + F * lane * 4                 # W_qkv bf16, b_qkv f32
               + C * pad_l(Dv) * 2 + C * lane * 4)             # W_out bf16, b_out f32
    scratch = F * pad_l(S) * 2 + Dv * pad_l(S) * 2             # qkv + attn bf16 scratches
    temps = (S * pad_l(S) * 4 + S * pad_l(S) * 2               # scores f32 + exp bf16
             + n_aug * pad_l(S) * 6                            # v_aug bf16 + o_aug f32
             + C * pad_l(S) * 4)                               # f32 projection result
    est = io_blocks + weights + scratch + temps
    return int(min(max(est * 1.5, 32 * 2 ** 20), 64 * 2 ** 20))


def attention_block(x_nchw, params, *, n_heads, d_k):
    B, C, H, W = x_nchw.shape
    S = H * W
    Dv = n_heads * d_k
    F = 3 * Dv
    scale = float(d_k) ** -0.5
    n_aug = ((d_k + 1 + 15) // 16) * 16

    # Channel-major: NCHW is already (B, C, S) after a reshape — no HBM transpose.
    x_cs = x_nchw.reshape(B, C, S)

    # ---- one-time weight prep (host/XLA side, outside the kernel) ----------------
    # PyTorch projection row f: head = f // (3dk), [q|k|v] chunk within the head.
    # Permute rows to [Q(all heads) | K(all heads) | V(all heads)].
    perm = np.concatenate(
        [np.arange(d_k) + h * 3 * d_k + which * d_k
         for which in range(3) for h in range(n_heads)]).astype(np.int32)
    w_qkv = params["w_qkv"][perm, :]                    # (F, C)
    b_qkv = params["b_qkv"][perm]                       # (F,)
    # Fold the 1/sqrt(d_k) score scale into the Q rows (free at runtime; exact for
    # power-of-two d_k).
    q_scale = jnp.concatenate([jnp.full((Dv,), scale, w_qkv.dtype),
                               jnp.ones((2 * Dv,), w_qkv.dtype)])
    w_qkv = (w_qkv * q_scale[:, None]).astype(jnp.bfloat16)
    b_qkv = (b_qkv * q_scale).reshape(F, 1).astype(jnp.float32)

    # Output projection kept as a single (C, Dv) block (column order already matches the
    # head-major layout of the attn scratch).
    w_out = params["w_out"].astype(jnp.bfloat16)        # (C, Dv)
    b_out = params["b_out"].reshape(C, 1).astype(jnp.float32)

    kernel = partial(attention_kernel, n_heads=n_heads, d_k=d_k)
    vmem_limit = _vmem_limit_bytes(C, S, F, Dv, n_aug)

    # TODO(synk): for S >= ~1k (v7x: (S,S) f32 alone is 64 MiB at S=4096) switch to a
    # query-tiled flash-style variant: grid=(B, S//TQ), online softmax, both axes
    # "parallel" so both v7x TensorCores stay busy even for B=1/odd.
    # TODO(synk): for tiny C*S configs, block several batch elements per grid step to
    # amortize the ~0.35 us per-step overhead.
    def run(single_buffer_weights):
        weight_kw = ({"pipeline_mode": pl.Buffered(1)}
                     if single_buffer_weights else {})
        in_specs = [
            pl.BlockSpec((1, C, S), lambda b: (b, 0, 0)),                 # x (channel-major)
            pl.BlockSpec((F, C), lambda b: (0, 0), **weight_kw),          # W_qkv (perm+scaled)
            pl.BlockSpec((F, 1), lambda b: (0, 0), **weight_kw),          # b_qkv
            pl.BlockSpec((C, Dv), lambda b: (0, 0), **weight_kw),         # W_out
            pl.BlockSpec((C, 1), lambda b: (0, 0), **weight_kw),          # b_out
        ]
        out = pl.pallas_call(
            kernel,
            out_shape=jax.ShapeDtypeStruct((B, C, S), x_cs.dtype),
            grid_spec=pltpu.PrefetchScalarGridSpec(
                num_scalar_prefetch=0,
                grid=(B,),
                in_specs=in_specs,
                out_specs=pl.BlockSpec((1, C, S), lambda b: (b, 0, 0)),
                scratch_shapes=[pltpu.VMEM((F, S), jnp.bfloat16),          # staged qkv
                                pltpu.VMEM((Dv, S), jnp.bfloat16)],        # head outputs
            ),
            compiler_params=pltpu.CompilerParams(
                dimension_semantics=("parallel",),
                vmem_limit_bytes=vmem_limit),
        )(x_cs, w_qkv, b_qkv, w_out, b_out)
        return jax.block_until_ready(out)

    try:
        # Grid-invariant weights single-buffered (recovers 2x their VMEM footprint).
        out_cs = run(single_buffer_weights=True)
    except Exception:
        # Fallback if this JAX build's TPU lowering does not accept pipeline_mode.
        out_cs = run(single_buffer_weights=False)

    # (B, C, S) -> NCHW is a pure reshape (no transpose).
    return out_cs.reshape(B, C, H, W)


def reference_attention_block(x_nchw, params, *, n_heads, d_k):
    """Pure-JAX f32 reference mirroring the PyTorch forward exactly."""
    B, C, H, W = x_nchw.shape
    S = H * W
    x = jnp.transpose(x_nchw.reshape(B, C, S), (0, 2, 1))             # (B,S,C)
    qkv = x @ params["w_qkv"].T + params["b_qkv"]                     # (B,S,3*nh*dk)
    qkv = qkv.reshape(B, S, n_heads, 3 * d_k)
    q, k, v = qkv[..., :d_k], qkv[..., d_k:2 * d_k], qkv[..., 2 * d_k:]
    attn = jnp.einsum("bihd,bjhd->bijh", q, k) * (float(d_k) ** -0.5)
    attn = jax.nn.softmax(attn, axis=2)
    out = jnp.einsum("bijh,bjhd->bihd", attn, v).reshape(B, S, n_heads * d_k)
    out = out @ params["w_out"].T + params["b_out"]
    out = out + x
    return jnp.transpose(out, (0, 2, 1)).reshape(B, C, H, W)


if __name__ == "__main__":
    # Small deterministic config (GroupNorm is unused in forward, so n_groups irrelevant).
    B, C, H, W = 2, 32, 16, 16          # S = 256 (lane-dense output)
    n_heads, d_k = 2, 16                # n_heads * d_k == in_ch
    F = 3 * n_heads * d_k
    Dv = n_heads * d_k

    key = jax.random.PRNGKey(0)
    kx, k1, k2, k3, k4 = jax.random.split(key, 5)

    x = jax.random.normal(kx, (B, C, H, W), dtype=jnp.float32)
    params = {
        # nn.Linear(in_ch, 3*nh*dk): weight (out, in), bias (out,)
        "w_qkv": jax.random.normal(k1, (F, C), dtype=jnp.float32) * (C ** -0.5),
        "b_qkv": jax.random.normal(k2, (F,), dtype=jnp.float32) * 0.02,
        # nn.Linear(nh*dk, in_ch)
        "w_out": jax.random.normal(k3, (C, Dv), dtype=jnp.float32) * (Dv ** -0.5),
        "b_out": jax.random.normal(k4, (C,), dtype=jnp.float32) * 0.02,
    }

    out = jax.block_until_ready(attention_block(x, params, n_heads=n_heads, d_k=d_k))
    ref = reference_attention_block(x, params, n_heads=n_heads, d_k=d_k)

    assert out.shape == (B, C, H, W), out.shape
    # Tolerance loosened vs. the f32 reference: bf16 MXU operands, bf16 softmax exp,
    # approximate reciprocal (per perf review).
    max_err = float(jnp.max(jnp.abs(out - ref)))
    assert jnp.allclose(out, ref, atol=5e-2, rtol=5e-2), max_err
    print("KERNEL_OK")
</pallas_src>

<mosaic_0001>
module attributes {stable_mosaic.version = 11 : i64} {
  func.func @attention_kernel(%arg0: i32, %arg1: memref<1x32x256xf32, #tpu.memory_space<vmem>>, %arg2: memref<96x32xbf16, #tpu.memory_space<vmem>>, %arg3: memref<96x1xf32, #tpu.memory_space<vmem>>, %arg4: memref<32x32xbf16, #tpu.memory_space<vmem>>, %arg5: memref<32x1xf32, #tpu.memory_space<vmem>>, %arg6: memref<1x32x256xf32, #tpu.memory_space<vmem>>, %arg7: memref<96x256xbf16, #tpu.memory_space<vmem>>, %arg8: memref<32x256xbf16, #tpu.memory_space<vmem>>) attributes {dimension_semantics = [#tpu.dimension_semantics<parallel>], iteration_bounds = array<i64: 2>, scalar_prefetch = 0 : i64, scratch_operands = 2 : i64, tpu.core_type = #tpu.core_type<tc>, window_params = [{transform_indices = @transform_0, window_bounds = array<i64: 1, 32, 256>}, {pipeline_mode = #tpu.pipeline_mode<synchronous>, transform_indices = @transform_1, window_bounds = array<i64: 96, 32>}, {pipeline_mode = #tpu.pipeline_mode<synchronous>, transform_indices = @transform_2, window_bounds = array<i64: 96, 1>}, {pipeline_mode = #tpu.pipeline_mode<synchronous>, transform_indices = @transform_3, window_bounds = array<i64: 32, 32>}, {pipeline_mode = #tpu.pipeline_mode<synchronous>, transform_indices = @transform_4, window_bounds = array<i64: 32, 1>}, {transform_indices = @transform_5, window_bounds = array<i64: 1, 32, 256>}]} {
    %c0 = arith.constant 0 : index
    %c0_0 = arith.constant 0 : index
    %c0_1 = arith.constant 0 : index
    %0 = vector.load %arg1[%c0, %c0_0, %c0_1] : memref<1x32x256xf32, #tpu.memory_space<vmem>>, vector<1x32x256xf32>
    %1 = vector.shape_cast %0 : vector<1x32x256xf32> to vector<32x256xf32>
    %2 = arith.truncf %1 : vector<32x256xf32> to vector<32x256xbf16>
    %c0_2 = arith.constant 0 : index
    %c0_3 = arith.constant 0 : index
    %3 = vector.load %arg2[%c0_2, %c0_3] : memref<96x32xbf16, #tpu.memory_space<vmem>>, vector<96x32xbf16>
    %cst = arith.constant dense<0.000000e+00> : vector<96x256xf32>
    %4 = tpu.matmul %3, %2, %cst {dimension_numbers = #tpu.dot_dimension_numbers<[1], [0], [0], [1], [0, 0, 1, 1], [], []>} : vector<96x32xbf16>, vector<32x256xbf16>, vector<96x256xf32> -> vector<96x256xf32>
    %c0_4 = arith.constant 0 : index
    %c0_5 = arith.constant 0 : index
    %5 = vector.load %arg3[%c0_4, %c0_5] : memref<96x1xf32, #tpu.memory_space<vmem>>, vector<96x1xf32>
    %6 = vector.broadcast %5 : vector<96x1xf32> to vector<96x256xf32>
    %7 = arith.addf %4, %6 : vector<96x256xf32>
    %8 = arith.truncf %7 : vector<96x256xf32> to vector<96x256xbf16>
    %c0_6 = arith.constant 0 : index
    %c0_7 = arith.constant 0 : index
    %9 = vector.load %arg7[%c0_6, %c0_7] : memref<96x256xbf16, #tpu.memory_space<vmem>>, vector<96x256xbf16>
    tpu.vector_store %arg7[%c0_6, %c0_7], %8 {strides = array<i32>} : memref<96x256xbf16, #tpu.memory_space<vmem>>, vector<96x256xbf16>,
    %cst_8 = arith.constant 1.000000e+00 : bf16
    %10 = vector.broadcast %cst_8 : bf16 to vector<16x256xbf16>
    %c0_9 = arith.constant 0 : index
    %c0_10 = arith.constant 0 : index
    %11 = vector.load %arg7[%c0_9, %c0_10] : memref<96x256xbf16, #tpu.memory_space<vmem>>, vector<16x256xbf16>
    %c32 = arith.constant 32 : index
    %c0_11 = arith.constant 0 : index
    %12 = vector.load %arg7[%c32, %c0_11] : memref<96x256xbf16, #tpu.memory_space<vmem>>, vector<16x256xbf16>
    %c64 = arith.constant 64 : index
    %c0_12 = arith.constant 0 : index
    %13 = vector.load %arg7[%c64, %c0_12] : memref<96x256xbf16, #tpu.memory_space<vmem>>, vector<16x256xbf16>
    %cst_13 = arith.constant dense<0.000000e+00> : vector<256x256xf32>
    %14 = tpu.matmul %12, %11, %cst_13 {dimension_numbers = #tpu.dot_dimension_numbers<[0], [0], [1], [1], [0, 1, 1, 1], [], []>} : vector<16x256xbf16>, vector<16x256xbf16>, vector<256x256xf32> -> vector<256x256xf32>
    %cst_14 = arith.constant dense<0xFF800000> : vector<256xf32>
    %15 = vector.multi_reduction <maximumf>, %14, %cst_14 [0] : vector<256x256xf32> to vector<256xf32>
    %16 = vector.shape_cast %15 : vector<256xf32> to vector<1x256xf32>
    %17 = vector.broadcast %16 : vector<1x256xf32> to vector<256x256xf32>
    %18 = arith.subf %14, %17 : vector<256x256xf32>
    %19 = arith.truncf %18 : vector<256x256xf32> to vector<256x256xbf16>
    %20 = math.exp %19 : vector<256x256xbf16>
    %21 = tpu.concatenate %13, %10 in 0 : vector<16x256xbf16>, vector<16x256xbf16> -> vector<32x256xbf16>
    %cst_15 = arith.constant dense<0.000000e+00> : vector<32x256xf32>
    %22 = tpu.matmul %21, %20, %cst_15 {dimension_numbers = #tpu.dot_dimension_numbers<[1], [0], [0], [1], [0, 0, 1, 1], [], []>} : vector<32x256xbf16>, vector<256x256xbf16>, vector<32x256xf32> -> vector<32x256xf32>
    %23 = vector.extract_strided_slice %22 {offsets = [16, 0], sizes = [1, 256], strides = [1, 1]} : vector<32x256xf32> to vector<1x256xf32>
    %24 = vector.extract_strided_slice %22 {offsets = [0, 0], sizes = [16, 256], strides = [1, 1]} : vector<32x256xf32> to vector<16x256xf32>
    %25 = tpu.reciprocal %23 {approx = true} : vector<1x256xf32> -> vector<1x256xf32>
    %26 = vector.broadcast %25 : vector<1x256xf32> to vector<16x256xf32>
    %27 = arith.mulf %24, %26 : vector<16x256xf32>
    %28 = arith.truncf %27 : vector<16x256xf32> to vector<16x256xbf16>
    %c0_16 = arith.constant 0 : index
    %c0_17 = arith.constant 0 : index
    %29 = vector.load %arg8[%c0_16, %c0_17] : memref<32x256xbf16, #tpu.memory_space<vmem>>, vector<16x256xbf16>
    tpu.vector_store %arg8[%c0_16, %c0_17], %28 {strides = array<i32>} : memref<32x256xbf16, #tpu.memory_space<vmem>>, vector<16x256xbf16>,
    %c16 = arith.constant 16 : index
    %c0_18 = arith.constant 0 : index
    %30 = vector.load %arg7[%c16, %c0_18] : memref<96x256xbf16, #tpu.memory_space<vmem>>, vector<16x256xbf16>
    %c48 = arith.constant 48 : index
    %c0_19 = arith.constant 0 : index
    %31 = vector.load %arg7[%c48, %c0_19] : memref<96x256xbf16, #tpu.memory_space<vmem>>, vector<16x256xbf16>
    %c80 = arith.constant 80 : index
    %c0_20 = arith.constant 0 : index
    %32 = vector.load %arg7[%c80, %c0_20] : memref<96x256xbf16, #tpu.memory_space<vmem>>, vector<16x256xbf16>
    %cst_21 = arith.constant dense<0.000000e+00> : vector<256x256xf32>
    %33 = tpu.matmul %31, %30, %cst_21 {dimension_numbers = #tpu.dot_dimension_numbers<[0], [0], [1], [1], [0, 1, 1, 1], [], []>} : vector<16x256xbf16>, vector<16x256xbf16>, vector<256x256xf32> -> vector<256x256xf32>
    %cst_22 = arith.constant dense<0xFF800000> : vector<256xf32>
    %34 = vector.multi_reduction <maximumf>, %33, %cst_22 [0] : vector<256x256xf32> to vector<256xf32>
    %35 = vector.shape_cast %34 : vector<256xf32> to vector<1x256xf32>
    %36 = vector.broadcast %35 : vector<1x256xf32> to vector<256x256xf32>
    %37 = arith.subf %33, %36 : vector<256x256xf32>
    %38 = arith.truncf %37 : vector<256x256xf32> to vector<256x256xbf16>
    %39 = math.exp %38 : vector<256x256xbf16>
    %40 = tpu.concatenate %32, %10 in 0 : vector<16x256xbf16>, vector<16x256xbf16> -> vector<32x256xbf16>
    %cst_23 = arith.constant dense<0.000000e+00> : vector<32x256xf32>
    %41 = tpu.matmul %40, %39, %cst_23 {dimension_numbers = #tpu.dot_dimension_numbers<[1], [0], [0], [1], [0, 0, 1, 1], [], []>} : vector<32x256xbf16>, vector<256x256xbf16>, vector<32x256xf32> -> vector<32x256xf32>
    %42 = vector.extract_strided_slice %41 {offsets = [16, 0], sizes = [1, 256], strides = [1, 1]} : vector<32x256xf32> to vector<1x256xf32>
    %43 = vector.extract_strided_slice %41 {offsets = [0, 0], sizes = [16, 256], strides = [1, 1]} : vector<32x256xf32> to vector<16x256xf32>
    %44 = tpu.reciprocal %42 {approx = true} : vector<1x256xf32> -> vector<1x256xf32>
    %45 = vector.broadcast %44 : vector<1x256xf32> to vector<16x256xf32>
    %46 = arith.mulf %43, %45 : vector<16x256xf32>
    %47 = arith.truncf %46 : vector<16x256xf32> to vector<16x256xbf16>
    %c16_24 = arith.constant 16 : index
    %c0_25 = arith.constant 0 : index
    %48 = vector.load %arg8[%c16_24, %c0_25] : memref<32x256xbf16, #tpu.memory_space<vmem>>, vector<16x256xbf16>
    tpu.vector_store %arg8[%c16_24, %c0_25], %47 {strides = array<i32>} : memref<32x256xbf16, #tpu.memory_space<vmem>>, vector<16x256xbf16>,
    %c0_26 = arith.constant 0 : index
    %c0_27 = arith.constant 0 : index
    %49 = vector.load %arg4[%c0_26, %c0_27] : memref<32x32xbf16, #tpu.memory_space<vmem>>, vector<32x32xbf16>
    %c0_28 = arith.constant 0 : index
    %c0_29 = arith.constant 0 : index
    %50 = vector.load %arg8[%c0_28, %c0_29] : memref<32x256xbf16, #tpu.memory_space<vmem>>, vector<32x256xbf16>
    %cst_30 = arith.constant dense<0.000000e+00> : vector<32x256xf32>
    %51 = tpu.matmul %49, %50, %cst_30 {dimension_numbers = #tpu.dot_dimension_numbers<[1], [0], [0], [1], [0, 0, 1, 1], [], []>} : vector<32x32xbf16>, vector<32x256xbf16>, vector<32x256xf32> -> vector<32x256xf32>
    %c0_31 = arith.constant 0 : index
    %c0_32 = arith.constant 0 : index
    %52 = vector.load %arg5[%c0_31, %c0_32] : memref<32x1xf32, #tpu.memory_space<vmem>>, vector<32x1xf32>
    %53 = vector.broadcast %52 : vector<32x1xf32> to vector<32x256xf32>
    %54 = arith.addf %51, %53 : vector<32x256xf32>
    %c0_33 = arith.constant 0 : index
    %c0_34 = arith.constant 0 : index
    %c0_35 = arith.constant 0 : index
    %55 = vector.load %arg1[%c0_33, %c0_34, %c0_35] : memref<1x32x256xf32, #tpu.memory_space<vmem>>, vector<1x32x256xf32>
    %56 = vector.shape_cast %55 : vector<1x32x256xf32> to vector<32x256xf32>
    %57 = arith.addf %54, %56 : vector<32x256xf32>
    %c0_36 = arith.constant 0 : index
    %c0_37 = arith.constant 0 : index
    %c0_38 = arith.constant 0 : index
    %58 = vector.load %arg6[%c0_36, %c0_37, %c0_38] : memref<1x32x256xf32, #tpu.memory_space<vmem>>, vector<1x32x256xf32>
    %59 = vector.shape_cast %58 : vector<1x32x256xf32> to vector<32x256xf32>
    %60 = vector.shape_cast %57 : vector<32x256xf32> to vector<1x32x256xf32>
    tpu.vector_store %arg6[%c0_36, %c0_37, %c0_38], %60 {strides = array<i32>} : memref<1x32x256xf32, #tpu.memory_space<vmem>>, vector<1x32x256xf32>,
    return
  }
  func.func @transform_0(%arg0: i32) -> (i32, i32, i32) {
    %c0_i32 = arith.constant 0 : i32
    %c0_i32_0 = arith.constant 0 : i32
    %c0_i32_1 = arith.constant 0 : i32
    return %arg0, %c0_i32, %c0_i32_0 : i32, i32, i32
  }
  func.func @transform_1(%arg0: i32) -> (i32, i32) {
    %c0_i32 = arith.constant 0 : i32
    %c0_i32_0 = arith.constant 0 : i32
    %c0_i32_1 = arith.constant 0 : i32
    return %c0_i32, %c0_i32_0 : i32, i32
  }
  func.func @transform_2(%arg0: i32) -> (i32, i32) {
    %c0_i32 = arith.constant 0 : i32
    %c0_i32_0 = arith.constant 0 : i32
    %c0_i32_1 = arith.constant 0 : i32
    return %c0_i32, %c0_i32_0 : i32, i32
  }
  func.func @transform_3(%arg0: i32) -> (i32, i32) {
    %c0_i32 = arith.constant 0 : i32
    %c0_i32_0 = arith.constant 0 : i32
    %c0_i32_1 = arith.constant 0 : i32
    return %c0_i32, %c0_i32_0 : i32, i32
  }
  func.func @transform_4(%arg0: i32) -> (i32, i32) {
    %c0_i32 = arith.constant 0 : i32
    %c0_i32_0 = arith.constant 0 : i32
    %c0_i32_1 = arith.constant 0 : i32
    return %c0_i32, %c0_i32_0 : i32, i32
  }
  func.func @transform_5(%arg0: i32) -> (i32, i32, i32) {
    %c0_i32 = arith.constant 0 : i32
    %c0_i32_0 = arith.constant 0 : i32
    %c0_i32_1 = arith.constant 0 : i32
    return %arg0, %c0_i32, %c0_i32_0 : i32, i32, i32
  }
}

module attributes {stable_mosaic.version = 11 : i64} {
  func.func @attention_kernel(%arg0: i32, %arg1: memref<1x32x256xf32, #tpu.memory_space<vmem>>, %arg2: memref<96x32xbf16, #tpu.memory_space<vmem>>, %arg3: memref<96x1xf32, #tpu.memory_space<vmem>>, %arg4: memref<32x32xbf16, #tpu.memory_space<vmem>>, %arg5: memref<32x1xf32, #tpu.memory_space<vmem>>, %arg6: memref<1x32x256xf32, #tpu.memory_space<vmem>>, %arg7: memref<96x256xbf16, #tpu.memory_space<vmem>>, %arg8: memref<32x256xbf16, #tpu.memory_space<vmem>>) attributes {dimension_semantics = [#tpu.dimension_semantics<parallel>], iteration_bounds = array<i64: 2>, scalar_prefetch = 0 : i64, scratch_operands = 2 : i64, tpu.core_type = #tpu.core_type<tc>, window_params = [{transform_indices = @transform_0, window_bounds = array<i64: 1, 32, 256>}, {pipeline_mode = #tpu.pipeline_mode<synchronous>, transform_indices = @transform_1, window_bounds = array<i64: 96, 32>}, {pipeline_mode = #tpu.pipeline_mode<synchronous>, transform_indices = @transform_2, window_bounds = array<i64: 96, 1>}, {pipeline_mode = #tpu.pipeline_mode<synchronous>, transform_indices = @transform_3, window_bounds = array<i64: 32, 32>}, {pipeline_mode = #tpu.pipeline_mode<synchronous>, transform_indices = @transform_4, window_bounds = array<i64: 32, 1>}, {transform_indices = @transform_5, window_bounds = array<i64: 1, 32, 256>}]} {
    %c0 = arith.constant 0 : index
    %c0_0 = arith.constant 0 : index
    %c0_1 = arith.constant 0 : index
    %0 = vector.load %arg1[%c0, %c0_0, %c0_1] : memref<1x32x256xf32, #tpu.memory_space<vmem>>, vector<1x32x256xf32>
    %1 = vector.shape_cast %0 : vector<1x32x256xf32> to vector<32x256xf32>
    %2 = arith.truncf %1 : vector<32x256xf32> to vector<32x256xbf16>
    %c0_2 = arith.constant 0 : index
    %c0_3 = arith.constant 0 : index
    %3 = vector.load %arg2[%c0_2, %c0_3] : memref<96x32xbf16, #tpu.memory_space<vmem>>, vector<96x32xbf16>
    %cst = arith.constant dense<0.000000e+00> : vector<96x256xf32>
    %4 = tpu.matmul %3, %2, %cst {dimension_numbers = #tpu.dot_dimension_numbers<[1], [0], [0], [1], [0, 0, 1, 1], [], []>} : vector<96x32xbf16>, vector<32x256xbf16>, vector<96x256xf32> -> vector<96x256xf32>
    %c0_4 = arith.constant 0 : index
    %c0_5 = arith.constant 0 : index
    %5 = vector.load %arg3[%c0_4, %c0_5] : memref<96x1xf32, #tpu.memory_space<vmem>>, vector<96x1xf32>
    %6 = vector.broadcast %5 : vector<96x1xf32> to vector<96x256xf32>
    %7 = arith.addf %4, %6 : vector<96x256xf32>
    %8 = arith.truncf %7 : vector<96x256xf32> to vector<96x256xbf16>
    %c0_6 = arith.constant 0 : index
    %c0_7 = arith.constant 0 : index
    %9 = vector.load %arg7[%c0_6, %c0_7] : memref<96x256xbf16, #tpu.memory_space<vmem>>, vector<96x256xbf16>
    tpu.vector_store %arg7[%c0_6, %c0_7], %8 {strides = array<i32>} : memref<96x256xbf16, #tpu.memory_space<vmem>>, vector<96x256xbf16>,
    %cst_8 = arith.constant 1.000000e+00 : bf16
    %10 = vector.broadcast %cst_8 : bf16 to vector<16x256xbf16>
    %c0_9 = arith.constant 0 : index
    %c0_10 = arith.constant 0 : index
    %11 = vector.load %arg7[%c0_9, %c0_10] : memref<96x256xbf16, #tpu.memory_space<vmem>>, vector<16x256xbf16>
    %c32 = arith.constant 32 : index
    %c0_11 = arith.constant 0 : index
    %12 = vector.load %arg7[%c32, %c0_11] : memref<96x256xbf16, #tpu.memory_space<vmem>>, vector<16x256xbf16>
    %c64 = arith.constant 64 : index
    %c0_12 = arith.constant 0 : index
    %13 = vector.load %arg7[%c64, %c0_12] : memref<96x256xbf16, #tpu.memory_space<vmem>>, vector<16x256xbf16>
    %cst_13 = arith.constant dense<0.000000e+00> : vector<256x256xf32>
    %14 = tpu.matmul %12, %11, %cst_13 {dimension_numbers = #tpu.dot_dimension_numbers<[0], [0], [1], [1], [0, 1, 1, 1], [], []>} : vector<16x256xbf16>, vector<16x256xbf16>, vector<256x256xf32> -> vector<256x256xf32>
    %cst_14 = arith.constant dense<0xFF800000> : vector<256xf32>
    %15 = vector.multi_reduction <maximumf>, %14, %cst_14 [0] : vector<256x256xf32> to vector<256xf32>
    %16 = vector.shape_cast %15 : vector<256xf32> to vector<1x256xf32>
    %17 = vector.broadcast %16 : vector<1x256xf32> to vector<256x256xf32>
    %18 = arith.subf %14, %17 : vector<256x256xf32>
    %19 = arith.truncf %18 : vector<256x256xf32> to vector<256x256xbf16>
    %20 = math.exp %19 : vector<256x256xbf16>
    %21 = tpu.concatenate %13, %10 in 0 : vector<16x256xbf16>, vector<16x256xbf16> -> vector<32x256xbf16>
    %cst_15 = arith.constant dense<0.000000e+00> : vector<32x256xf32>
    %22 = tpu.matmul %21, %20, %cst_15 {dimension_numbers = #tpu.dot_dimension_numbers<[1], [0], [0], [1], [0, 0, 1, 1], [], []>} : vector<32x256xbf16>, vector<256x256xbf16>, vector<32x256xf32> -> vector<32x256xf32>
    %23 = vector.extract_strided_slice %22 {offsets = [16, 0], sizes = [1, 256], strides = [1, 1]} : vector<32x256xf32> to vector<1x256xf32>
    %24 = vector.extract_strided_slice %22 {offsets = [0, 0], sizes = [16, 256], strides = [1, 1]} : vector<32x256xf32> to vector<16x256xf32>
    %25 = tpu.reciprocal %23 {approx = true} : vector<1x256xf32> -> vector<1x256xf32>
    %26 = vector.broadcast %25 : vector<1x256xf32> to vector<16x256xf32>
    %27 = arith.mulf %24, %26 : vector<16x256xf32>
    %28 = arith.truncf %27 : vector<16x256xf32> to vector<16x256xbf16>
    %c0_16 = arith.constant 0 : index
    %c0_17 = arith.constant 0 : index
    %29 = vector.load %arg8[%c0_16, %c0_17] : memref<32x256xbf16, #tpu.memory_space<vmem>>, vector<16x256xbf16>
    tpu.vector_store %arg8[%c0_16, %c0_17], %28 {strides = array<i32>} : memref<32x256xbf16, #tpu.memory_space<vmem>>, vector<16x256xbf16>,
    %c16 = arith.constant 16 : index
    %c0_18 = arith.constant 0 : index
    %30 = vector.load %arg7[%c16, %c0_18] : memref<96x256xbf16, #tpu.memory_space<vmem>>, vector<16x256xbf16>
    %c48 = arith.constant 48 : index
    %c0_19 = arith.constant 0 : index
    %31 = vector.load %arg7[%c48, %c0_19] : memref<96x256xbf16, #tpu.memory_space<vmem>>, vector<16x256xbf16>
    %c80 = arith.constant 80 : index
    %c0_20 = arith.constant 0 : index
    %32 = vector.load %arg7[%c80, %c0_20] : memref<96x256xbf16, #tpu.memory_space<vmem>>, vector<16x256xbf16>
    %cst_21 = arith.constant dense<0.000000e+00> : vector<256x256xf32>
    %33 = tpu.matmul %31, %30, %cst_21 {dimension_numbers = #tpu.dot_dimension_numbers<[0], [0], [1], [1], [0, 1, 1, 1], [], []>} : vector<16x256xbf16>, vector<16x256xbf16>, vector<256x256xf32> -> vector<256x256xf32>
    %cst_22 = arith.constant dense<0xFF800000> : vector<256xf32>
    %34 = vector.multi_reduction <maximumf>, %33, %cst_22 [0] : vector<256x256xf32> to vector<256xf32>
    %35 = vector.shape_cast %34 : vector<256xf32> to vector<1x256xf32>
    %36 = vector.broadcast %35 : vector<1x256xf32> to vector<256x256xf32>
    %37 = arith.subf %33, %36 : vector<256x256xf32>
    %38 = arith.truncf %37 : vector<256x256xf32> to vector<256x256xbf16>
    %39 = math.exp %38 : vector<256x256xbf16>
    %40 = tpu.concatenate %32, %10 in 0 : vector<16x256xbf16>, vector<16x256xbf16> -> vector<32x256xbf16>
    %cst_23 = arith.constant dense<0.000000e+00> : vector<32x256xf32>
    %41 = tpu.matmul %40, %39, %cst_23 {dimension_numbers = #tpu.dot_dimension_numbers<[1], [0], [0], [1], [0, 0, 1, 1], [], []>} : vector<32x256xbf16>, vector<256x256xbf16>, vector<32x256xf32> -> vector<32x256xf32>
    %42 = vector.extract_strided_slice %41 {offsets = [16, 0], sizes = [1, 256], strides = [1, 1]} : vector<32x256xf32> to vector<1x256xf32>
    %43 = vector.extract_strided_slice %41 {offsets = [0, 0], sizes = [16, 256], strides = [1, 1]} : vector<32x256xf32> to vector<16x256xf32>
    %44 = tpu.reciprocal %42 {approx = true} : vector<1x256xf32> -> vector<1x256xf32>
    %45 = vector.broadcast %44 : vector<1x256xf32> to vector<16x256xf32>
    %46 = arith.mulf %43, %45 : vector<16x256xf32>
    %47 = arith.truncf %46 : vector<16x256xf32> to vector<16x256xbf16>
    %c16_24 = arith.constant 16 : index
    %c0_25 = arith.constant 0 : index
    %48 = vector.load %arg8[%c16_24, %c0_25] : memref<32x256xbf16, #tpu.memory_space<vmem>>, vector<16x256xbf16>
    tpu.vector_store %arg8[%c16_24, %c0_25], %47 {strides = array<i32>} : memref<32x256xbf16, #tpu.memory_space<vmem>>, vector<16x256xbf16>,
    %c0_26 = arith.constant 0 : index
    %c0_27 = arith.constant 0 : index
    %49 = vector.load %arg4[%c0_26, %c0_27] : memref<32x32xbf16, #tpu.memory_space<vmem>>, vector<32x32xbf16>
    %c0_28 = arith.constant 0 : index
    %c0_29 = arith.constant 0 : index
    %50 = vector.load %arg8[%c0_28, %c0_29] : memref<32x256xbf16, #tpu.memory_space<vmem>>, vector<32x256xbf16>
    %cst_30 = arith.constant dense<0.000000e+00> : vector<32x256xf32>
    %51 = tpu.matmul %49, %50, %cst_30 {dimension_numbers = #tpu.dot_dimension_numbers<[1], [0], [0], [1], [0, 0, 1, 1], [], []>} : vector<32x32xbf16>, vector<32x256xbf16>, vector<32x256xf32> -> vector<32x256xf32>
    %c0_31 = arith.constant 0 : index
    %c0_32 = arith.constant 0 : index
    %52 = vector.load %arg5[%c0_31, %c0_32] : memref<32x1xf32, #tpu.memory_space<vmem>>, vector<32x1xf32>
    %53 = vector.broadcast %52 : vector<32x1xf32> to vector<32x256xf32>
    %54 = arith.addf %51, %53 : vector<32x256xf32>
    %c0_33 = arith.constant 0 : index
    %c0_34 = arith.constant 0 : index
    %c0_35 = arith.constant 0 : index
    %55 = vector.load %arg1[%c0_33, %c0_34, %c0_35] : memref<1x32x256xf32, #tpu.memory_space<vmem>>, vector<1x32x256xf32>
    %56 = vector.shape_cast %55 : vector<1x32x256xf32> to vector<32x256xf32>
    %57 = arith.addf %54, %56 : vector<32x256xf32>
    %c0_36 = arith.constant 0 : index
    %c0_37 = arith.constant 0 : index
    %c0_38 = arith.constant 0 : index
    %58 = vector.load %arg6[%c0_36, %c0_37, %c0_38] : memref<1x32x256xf32, #tpu.memory_space<vmem>>, vector<1x32x256xf32>
    %59 = vector.shape_cast %58 : vector<1x32x256xf32> to vector<32x256xf32>
    %60 = vector.shape_cast %57 : vector<32x256xf32> to vector<1x32x256xf32>
    tpu.vector_store %arg6[%c0_36, %c0_37, %c0_38], %60 {strides = array<i32>} : memref<1x32x256xf32, #tpu.memory_space<vmem>>, vector<1x32x256xf32>,
    return
  }
  func.func @transform_0(%arg0: i32) -> (i32, i32, i32) {
    %c0_i32 = arith.constant 0 : i32
    %c0_i32_0 = arith.constant 0 : i32
    %c0_i32_1 = arith.constant 0 : i32
    return %arg0, %c0_i32, %c0_i32_0 : i32, i32, i32
  }
  func.func @transform_1(%arg0: i32) -> (i32, i32) {
    %c0_i32 = arith.constant 0 : i32
    %c0_i32_0 = arith.constant 0 : i32
    %c0_i32_1 = arith.constant 0 : i32
    return %c0_i32, %c0_i32_0 : i32, i32
  }
  func.func @transform_2(%arg0: i32) -> (i32, i32) {
    %c0_i32 = arith.constant 0 : i32
    %c0_i32_0 = arith.constant 0 : i32
    %c0_i32_1 = arith.constant 0 : i32
    return %c0_i32, %c0_i32_0 : i32, i32
  }
  func.func @transform_3(%arg0: i32) -> (i32, i32) {
    %c0_i32 = arith.constant 0 : i32
    %c0_i32_0 = arith.constant 0 : i32
    %c0_i32_1 = arith.constant 0 : i32
    return %c0_i32, %c0_i32_0 : i32, i32
  }
  func.func @transform_4(%arg0: i32) -> (i32, i32) {
    %c0_i32 = arith.constant 0 : i32
    %c0_i32_0 = arith.constant 0 : i32
    %c0_i32_1 = arith.constant 0 : i32
    return %c0_i32, %c0_i32_0 : i32, i32
  }
  func.func @transform_5(%arg0: i32) -> (i32, i32, i32) {
    %c0_i32 = arith.constant 0 : i32
    %c0_i32_0 = arith.constant 0 : i32
    %c0_i32_1 = arith.constant 0 : i32
    return %arg0, %c0_i32, %c0_i32_0 : i32, i32, i32
  }
}

</mosaic_0001>

<bundles_post_ra>
// kernel: tpu_custom_call.1
= control target key start
LH: loop header
LB: loop body
LE: loop exit
PB: predicated region body
PF: predicated region fallthrough
CT: control target
= control target key end

     0   :  { %10 = vsyncpa [#allocation5], 0  ;;  %s3570_s0 = inlined_call_operand.vmem [shape: f32[2,32,256], index: 0, kind: input, shape index: {}]   ;;  %s3571_s1 = inlined_call_operand.vmem [shape: bf16[96,32], index: 1, kind: input, shape index: {}]   ;;  %s3572_s2 = inlined_call_operand.vmem [shape: f32[96,1], index: 2, kind: input, shape index: {}]   ;;  %s3573_s3 = inlined_call_operand.vmem [shape: bf16[32,32], index: 3, kind: input, shape index: {}]   ;;  %s3574_s4 = inlined_call_operand.vmem [shape: f32[32,1], index: 4, kind: input, shape index: {}]   ;;  %s3575_s5 = inlined_call_operand.hbm [shape: f32[2,32,256], index: 5, kind: output, shape index: {}]  }
   0x1   :  { %12 = vsyncpa [#allocation5 + $0x1], 0  ;;  %s2489_s18 = smov 0   ;;  %s2491_s19 = smov 0  }
   0x2   :  { %s2493_s20 = smov 0   ;;  %s2495_s21 = smov 0  }
   0x3 LB: > { %s2510_s22 = sadd.s32 4294967295, %s2452_s21   ;;  %s2077_s23 = sadd.s32 4294967294, %s2452_s21   ;;  %s2452_s21 = sphi %s2495_s21, %s3793_s21   ;;  %s2448_s20 = sphi %s2493_s20, %s3792_s20   ;;  %s2444_s19 = sphi %s2491_s19, %s3791_s19   ;;  %s2440_s18 = sphi %s2489_s18, %s3790_s18  }
   0x4   : > { %s2514_s24 = sadd.s32 1, %s2452_s21   ;;  %s135_s25 = sadd.s32 1, %s2448_s20 }
   0x5   : > { %s132_s26 = ssub.s32 %s2452_s21, %s2514_s24  ;;  %p145_p0 = scmp.ne.s32.totalorder %s2448_s20, %s2444_s19 }
   0x6   : > { %p133_p1 = scmp.eq.s32.totalorder %s132_s26, 0  ;;  %p146_p2 = scmp.eq.s32.totalorder %s2510_s22, 1 }
   0x7   : > { %p151_p3 = scmp.ne.s32.totalorder %s2444_s19, %s2440_s18  ;;  %p152_p4 = scmp.eq.s32.totalorder %s2077_s23, 1 }
   0x8   : > { %s2525_s27 = scalar_select %p133_p1, %s2448_s20, %s135_s25  }
   0x9   : > { %p2527_p5 = por %p146_p2, %p145_p0  ;;  %p2531_p6 = por %p152_p4, %p151_p3 }
   0xa   : > { %p2080_p7 = scmp.ge.s32.totalorder %s2452_s21, 1  ;;  %p190_p8 = scmp.lt.s32.totalorder %s2452_s21, 3 }
   0xc   : > { %p191_p9 = pnand %p2080_p7, %p190_p8 }
   0xe   : > { %194 = sbr.rel (%p191_p9) target bundleno = 1668 (0x684), region = 40 }
  0x13   : > { %p218_p10 = scmp.lt.s32.totalorder %s2510_s22, 1  ;;  %v3576_v0 = vmov 0   ;;  %v249_v1 = vld [vmem:[%s3572_s2] sm:$0xff]  ;;  %v250_v2 = vld [vmem:[%s3572_s2 + $0x8] sm:$0xff]  ;;  %vm351_vm0 = vcmask 261120   ;;  %v2250_v19 = vld [vmem:[%s3571_s1 + $0x10] sm:$0xff]  }
  0x14   : > { %402 = vmatprep.mubr.bf16.mxu0 %v3576_v0  ;;  %2247 = vset.pattern.permute.xlu1 %v3576_v0  ;;  %v253_v3 = vld [vmem:[%s3572_s2 + $0x20] sm:$0xff]  ;;  %v254_v4 = vld [vmem:[%s3572_s2 + $0x28] sm:$0xff]  ;;  %v2251_v20 = vld [vmem:[%s3571_s1 + $0x18] sm:$0xff]   ;;  %vm605_vm1 = vcmask 130048   ;;  %s215_s12 = sand.u32 1, %s2444_s19   ;;  %s2186_s16 = sshll.u32 %s2510_s22, 10 }
  0x15   : > { %s219_s30 = scalar_select %p218_p10, %s2510_s22, 1  ;;  %2246 = vset.pattern.permute.xlu0 %v3576_v0  ;;  %686 = vmatprep.mubr.bf16.mxu1 %v3576_v0  ;;  %v2248_v17 = vld [vmem:[%s3571_s1] sm:$0xff]   ;;  %v2249_v18 = vld [vmem:[%s3571_s1 + $0x8] sm:$0xff]   ;;  %v256_v51 = vld [vmem:[%s3572_s2 + $0x38] sm:$0xff] }
  0x16   : > { %263 = vperm.xlu1 %2247, %v249_v1   ;;  %283 = vperm.xlu0 %2246, %v253_v3   ;;  %v2252_v21 = vld [vmem:[%s3571_s1 + $0x20] sm:$0xff]   ;;  %v2253_v37 = vld [vmem:[%s3571_s1 + $0x28] sm:$0xff]   ;;  %v255_v52 = vld [vmem:[%s3572_s2 + $0x30] sm:$0xff]  ;;  %s2081_s13 = sshll.u32 %s215_s12, 6  ;;  %s3522_s26 = scalar_lea.hbm %s3575_s5, %s2186_s16 }
  0x17   : > { %s2169_s8 = sshll.u32 %s219_s30, 6  ;;  %v258_v53 = vld [vmem:[%s3572_s2 + $0x48] sm:$0xff]  ;;  %v257_v54 = vld [vmem:[%s3572_s2 + $0x40] sm:$0xff]  ;;  %v252_v55 = vld [vmem:[%s3572_s2 + $0x18] sm:$0xff]  ;;  %s3504_s14 = scalar_lea.vmem [#allocation4], %s2081_s13 }
  0x18   : > { %s2555_s15 = scalar_lea.vmem %s3570_s0, %s2169_s8  ;;  %v251_v56 = vld [vmem:[%s3572_s2 + $0x10] sm:$0xff]  ;;  %s2015_s17 = sshll.u32 %s3504_s14, 4  ;;  %s3524_s17 = int_to_ptr.vmem [resolvable:$true] %s2015_s17 }
  0x19   : > { %v230_v5 = vld [vmem:[%s2555_s15 + $0x28] sm:$0xff]  ;;  %v232_v6 = vld [vmem:[%s2555_s15 + $0x38] sm:$0xff]  ;;  %v229_v7 = vld [vmem:[%s2555_s15 + $0x20] sm:$0xff]  ;;  %s3530_s22 = scalar_lea.sflag [#allocation5], %s215_s12  ;;  %s2456_s30 = smov [#allocation4]  }
  0x1a   : > { %v236_v8 = vpack.c.bf16 %v232_v6, %v230_v5  ;;  %v231_v9 = vld [vmem:[%s2555_s15 + $0x30] sm:$0xff]  ;;  %v226_v10 = vld [vmem:[%s2555_s15 + $0x8] sm:$0xff]  ;;  %v228_v11 = vld [vmem:[%s2555_s15 + $0x18] sm:$0xff]  ;;  %268 = vperm.xlu1 %2247, %v250_v2   ;;  %288 = vperm.xlu0 %2246, %v254_v4   ;;  %s2396_s6 = sshll.u32 %s2456_s30, 4  ;;  %s2397_s6 = int_to_ptr.vmem [resolvable:$false] %s2396_s6 }
  0x1b   : > { %v235_v12 = vpack.c.bf16 %v231_v9, %v229_v7  ;;  %v234_v13 = vpack.c.bf16 %v228_v11, %v226_v10  ;;  %v225_v14 = vld [vmem:[%s2555_s15] sm:$0xff]  ;;  %v227_v15 = vld [vmem:[%s2555_s15 + $0x10] sm:$0xff]  ;;  %s2398_s7 = scalar_lea.vmem %s2397_s6, 2048  ;;  %p2399_p0 = scmp.lt.s32.totalorder %s3524_s17, %s2397_s6 }
  0x1c   : > { %382 = vmatprep.subr.bf16.mxu0 %v236_v8  ;;  %v233_v16 = vpack.c.bf16 %v227_v15, %v225_v14 }
  0x1d   : > { %383 = vmatpush1.bf16.msra.mxu0 %v235_v12 }
  0x1e   : > { %384 = vmatprep.subr.bf16.mxu0 %v234_v13 }
  0x21   : > { %385 = vmatpush1.bf16.msra.mxu0 %v233_v16 }
  0x24   : > { %2090 = vmatmul.mubr.msk.bf16.vlgmr.msra.gmra.mxu0 %vm351_vm0, %v2248_v17 }
  0x25   : > { %412 = vmatprep.mubr.bf16.mxu0 %v3576_v0 }
  0x2c   : > { %2091 = vmatmul.mubr.msk.bf16.gmra.mxu0 %vm351_vm0, %v2249_v18 }
  0x2d   : > { %422 = vmatprep.mubr.bf16.mxu0 %v3576_v0 }
  0x34   : > { %2092 = vmatmul.mubr.msk.bf16.gmra.mxu0 %vm351_vm0, %v2250_v19 }
  0x35   : > { %432 = vmatprep.mubr.bf16.mxu0 %v3576_v0 }
  0x3c   : > { %2093 = vmatmul.mubr.msk.bf16.gmra.mxu0 %vm351_vm0, %v2251_v20 }
  0x3d   : > { %442 = vmatprep.mubr.bf16.mxu0 %v3576_v0 }
  0x44   : > { %2094 = vmatmul.mubr.msk.bf16.gmra.mxu0 %vm351_vm0, %v2252_v21 }
  0x45   : > { %452 = vmatprep.mubr.bf16.mxu0 %v3576_v0 }
  0x4c   : > { %2095 = vmatmul.mubr.msk.bf16.gmra.mxu0 %vm351_vm0, %v2253_v37  ;;  %v260_v37 = vld [vmem:[%s3572_s2 + $0x58] sm:$0xff] }
  0x91   : > { %v264_v22 = vpop.permute.xlu1 %263  ;;  %v284_v38 = vpop.permute.xlu0 %283 }
  0x95   : > { %v269_v25 = vpop.permute.xlu1 %268  ;;  %v289_v42 = vpop.permute.xlu0 %288 }
  0xe4   : > { %v404_v23 = vpop.f32.mrf.mxu0 }
  0xe5   : > { %v405_v31 = vadd.f32 %v404_v23, %v264_v22 }
  0xe6   : > { %v406_v24 = vpop.f32.mrf.mxu0 }
  0xe7   : > { %v407_v29 = vadd.f32 %v406_v24, %v264_v22 }
  0xe8   : > { %v408_v26 = vpop.f32.mrf.mxu0 }
  0xe9   : > { %v409_v27 = vadd.f32 %v408_v26, %v269_v25 }
  0xea   : > { %v410_v28 = vpop.f32.mrf.mxu0 }
  0xeb   : > { %v411_v30 = vadd.f32 %v410_v28, %v269_v25  ;;  %v2189_v35 = vpack.c.bf16 %v409_v27, %v405_v31 }
  0xec   : > { %v2593_v32 = vpop.f32.mrf.mxu0 }
  0xed   : > { %3637 = vst [vmem:[#allocation7_spill] sm:$0xff] %v2593_v32  ;;  %v2190_v33 = vpack.c.bf16 %v411_v30, %v407_v29 }
  0xee   : > { %v2595_v34 = vpop.f32.mrf.mxu0 }
  0xef   : > { %3638 = vst [vmem:[#allocation8_spill] sm:$0xff] %v2595_v34  ;;  %668 = vmatprep.subr.bf16.mxu1 %v2190_v33 }
  0xf0   : > { %v2597_v36 = vpop.f32.mrf.mxu0  ;;  %669 = vmatpush1.bf16.msra.mxu1 %v2189_v35 }
  0xf1   : > { %3639 = vst [vmem:[#allocation9_spill] sm:$0xff] %v2597_v36 }
  0xf2   : > { %v2602_v39 = vpop.f32.mrf.mxu0 }
  0xf3   : > { %3640 = vst [vmem:[#allocation10_spill] sm:$0xff] %v2602_v39 }
  0xf4   : > { %v424_v40 = vpop.f32.mrf.mxu0 }
  0xf5   : > { %v425_v44 = vadd.f32 %v424_v40, %v284_v38  ;;  %v259_v40 = vld [vmem:[%s3572_s2 + $0x50] sm:$0xff] }
  0xf6   : > { %v426_v41 = vpop.f32.mrf.mxu0 }
  0xf7   : > { %v427_v47 = vadd.f32 %v426_v41, %v284_v38  ;;  %v1865_v38 = vld [vmem:[%s3574_s4 + $0x8] sm:$0xff]  ;;  %v1867_v41 = vld [vmem:[%s3574_s4 + $0x18] sm:$0xff] }
  0xf8   : > { %v428_v43 = vpop.f32.mrf.mxu0 }
  0xf9   : > { %v429_v45 = vadd.f32 %v428_v43, %v289_v42  ;;  %v1866_v43 = vld [vmem:[%s3574_s4 + $0x10] sm:$0xff] }
  0xfa   : > { %v430_v46 = vpop.f32.mrf.mxu0 }
  0xfb   : > { %v2187_v48 = vpack.c.bf16 %v429_v45, %v425_v44  ;;  %v431_v49 = vadd.f32 %v430_v46, %v289_v42  ;;  %v1864_v42 = vld [vmem:[%s3574_s4] sm:$0xff] }
  0xfc   : > { %v434_v4 = vpop.f32.mrf.mxu0 }
  0xfd   : > { %v2188_v50 = vpack.c.bf16 %v431_v49, %v427_v47  ;;  %563 = vxpose.xlu0.c.b16.start.end [1/1] (short) %v2187_v48, 128 }
  0xfe   : > { %v436_v6 = vpop.f32.mrf.mxu0 }
  0xff   : > { %579 = vxpose.xlu1.c.b16.start.end [1/1] (short) %v2188_v50, 128 }
 0x100   : > { %v438_v8 = vpop.f32.mrf.mxu0 }
 0x102   : > { %v440_v11 = vpop.f32.mrf.mxu0 }
 0x104   : > { %v444_v12 = vpop.f32.mrf.mxu0 }
 0x106   : > { %v446_v15 = vpop.f32.mrf.mxu0 }
 0x108   : > { %v448_v17 = vpop.f32.mrf.mxu0 }
 0x10a   : > { %v450_v24 = vpop.f32.mrf.mxu0 }
 0x11f   : > { %298 = vperm.xlu1 %2247, %v256_v51  }
 0x122   : > { %293 = vperm.xlu0 %2246, %v255_v52  }
 0x123   : > { %308 = vperm.xlu1 %2247, %v258_v53  }
 0x126   : > { %303 = vperm.xlu0 %2246, %v257_v54  }
 0x127   : > { %278 = vperm.xlu1 %2247, %v252_v55  }
 0x12a   : > { %273 = vperm.xlu0 %2246, %v251_v56  }
 0x15f   : > { %v571_v57 = vpop.trf.xlu0 }
 0x160   : > { %2112 = vmatmul.mubr.msk.bf16.vlgmr.msra.gmra.mxu1 %vm605_vm1, %v571_v57 }
 0x161   : > { %696 = vmatprep.mubr.bf16.mxu1 %v3576_v0  ;;  %v587_v59 = vpop.trf.xlu1 }
 0x163   : > { %v572_v58 = vpop.trf.xlu0 }
 0x165   : > { %v588_v61 = vpop.trf.xlu1 }
 0x167   : > { %v573_v60 = vpop.trf.xlu0 }
 0x168   : > { %2113 = vmatmul.mubr.msk.bf16.gmra.mxu1 %vm605_vm1, %v572_v58 }
 0x169   : > { %706 = vmatprep.mubr.bf16.mxu1 %v3576_v0  ;;  %v589_v63 = vpop.trf.xlu1 }
 0x16b   : > { %v574_v62 = vpop.trf.xlu0 }
 0x16d   : > { %v590_v1 = vpop.trf.xlu1 }
 0x16f   : > { %v575_v2 = vpop.trf.xlu0 }
 0x170   : > { %2114 = vmatmul.mubr.msk.bf16.gmra.mxu1 %vm605_vm1, %v573_v60 }
 0x171   : > { %716 = vmatprep.mubr.bf16.mxu1 %v3576_v0  ;;  %v591_v3 = vpop.trf.xlu1 }
 0x173   : > { %v576_v5 = vpop.trf.xlu0 }
 0x175   : > { %v592_v7 = vpop.trf.xlu1 }
 0x177   : > { %v577_v9 = vpop.trf.xlu0 }
 0x178   : > { %2115 = vmatmul.mubr.msk.bf16.gmra.mxu1 %vm605_vm1, %v574_v62 }
 0x179   : > { %726 = vmatprep.mubr.bf16.mxu1 %v3576_v0  ;;  %v593_v10 = vpop.trf.xlu1 }
 0x17b   : > { %v578_v14 = vpop.trf.xlu0 }
 0x17d   : > { %v594_v13 = vpop.trf.xlu1 }
 0x180   : > { %2116 = vmatmul.mubr.msk.bf16.gmra.mxu1 %vm605_vm1, %v575_v2 }
 0x181   : > { %736 = vmatprep.mubr.bf16.mxu1 %v3576_v0 }
 0x188   : > { %2117 = vmatmul.mubr.msk.bf16.gmra.mxu1 %vm605_vm1, %v576_v5  ;;  %v454_v5 = vpop.f32.mrf.mxu0 }
 0x189   : > { %746 = vmatprep.mubr.bf16.mxu1 %v3576_v0 }
 0x190   : > { %2118 = vmatmul.mubr.msk.bf16.gmra.mxu1 %vm605_vm1, %v577_v9 }
 0x191   : > { %756 = vmatprep.mubr.bf16.mxu1 %v3576_v0 }
 0x198   : > { %2119 = vmatmul.mubr.msk.bf16.gmra.mxu1 %vm605_vm1, %v578_v14 }
 0x199   : > { %766 = vmatprep.mubr.bf16.mxu1 %v3576_v0 }
 0x19a   : > { %v299_v16 = vpop.permute.xlu1 %298 }
 0x19b   : > { %v439_v19 = vadd.f32 %v438_v8, %v299_v16  ;;  %v441_v20 = vadd.f32 %v440_v11, %v299_v16 }
 0x19d   : > { %v294_v18 = vpop.permute.xlu0 %293 }
 0x19e   : > { %v435_v21 = vadd.f32 %v434_v4, %v294_v18  ;;  %v437_v22 = vadd.f32 %v436_v6, %v294_v18  ;;  %v309_v23 = vpop.permute.xlu1 %308 }
 0x19f   : > { %v2640_v27 = vadd.f32 %v448_v17, %v309_v23  ;;  %v451_v29 = vadd.f32 %v450_v24, %v309_v23 }
 0x1a0   : > { %v2193_v25 = vpack.c.bf16 %v439_v19, %v435_v21  ;;  %v2194_v26 = vpack.c.bf16 %v441_v20, %v437_v22  ;;  %2120 = vmatmul.mubr.msk.bf16.gmra.mxu1 %vm605_vm1, %v587_v59 }
 0x1a1   : > { %3641 = vst [vmem:[#allocation11_spill] sm:$0xff] %v2640_v27  ;;  %v304_v28 = vpop.permute.xlu0 %303  ;;  %776 = vmatprep.mubr.bf16.mxu1 %v3576_v0 }
 0x1a2   : > { %v2643_v30 = vadd.f32 %v444_v12, %v304_v28  ;;  %v447_v31 = vadd.f32 %v446_v15, %v304_v28  ;;  %1234 = vxpose.xlu1.c.b16.start.end [1/1] (short) %v2194_v26, 128  ;;  %1218 = vxpose.xlu0.c.b16.start.end [1/1] (short) %v2193_v25, 128  ;;  %v2678_v44 = vpop.permute.xlu1 %278 }
 0x1a3   : > { %3643 = vst [vmem:[#allocation13_spill] sm:$0xff] %v2678_v44 }
 0x1a4   : > { %3642 = vst [vmem:[#allocation12_spill] sm:$0xff] %v2643_v30  ;;  %v2192_v35 = vpack.c.bf16 %v451_v29, %v447_v31 }
 0x1a5   : > { %v2680_v45 = vpop.permute.xlu0 %273 }
 0x1a6   : > { %1155 = vmatprep.mubr.bf16.mxu0 %v2192_v35  ;;  %3644 = vst [vmem:[#allocation14_spill] sm:$0xff] %v2680_v45 }
 0x1a8   : > { %2121 = vmatmul.mubr.msk.bf16.gmra.mxu1 %vm605_vm1, %v588_v61 }
 0x1a9   : > { %786 = vmatprep.mubr.bf16.mxu1 %v3576_v0 }
 0x1b0   : > { %2122 = vmatmul.mubr.msk.bf16.gmra.mxu1 %vm605_vm1, %v589_v63 }
 0x1b1   : > { %796 = vmatprep.mubr.bf16.mxu1 %v3576_v0 }
 0x1b8   : > { %2123 = vmatmul.mubr.msk.bf16.gmra.mxu1 %vm605_vm1, %v590_v1 }
 0x1b9   : > { %806 = vmatprep.mubr.bf16.mxu1 %v3576_v0 }
 0x1c0   : > { %2124 = vmatmul.mubr.msk.bf16.gmra.mxu1 %vm605_vm1, %v591_v3 }
 0x1c1   : > { %816 = vmatprep.mubr.bf16.mxu1 %v3576_v0 }
 0x1c2   : > { %318 = vperm.xlu1 %2247, %v260_v37  }
 0x1c6   : > { %1875 = vperm.xlu1 %2247, %v1865_v38  }
 0x1c7   : > { %313 = vperm.xlu0 %2246, %v259_v40  }
 0x1c8   : > { %2125 = vmatmul.mubr.msk.bf16.gmra.mxu1 %vm605_vm1, %v592_v7 }
 0x1c9   : > { %826 = vmatprep.mubr.bf16.mxu1 %v3576_v0 }
 0x1ca   : > { %1885 = vperm.xlu1 %2247, %v1867_v41  }
 0x1cb   : > { %1870 = vperm.xlu0 %2246, %v1864_v42  }
 0x1cf   : > { %1880 = vperm.xlu0 %2246, %v1866_v43  }
 0x1d0   : > { %2126 = vmatmul.mubr.msk.bf16.gmra.mxu1 %vm605_vm1, %v593_v10  ;;  %v456_v10 = vpop.f32.mrf.mxu0 }
 0x1d1   : > { %836 = vmatprep.mubr.bf16.mxu1 %v3576_v0 }
 0x1d2   : > { %v458_v14 = vpop.f32.mrf.mxu0 }
 0x1d4   : > { %v460_v18 = vpop.f32.mrf.mxu0 }
 0x1d8   : > { %2127 = vmatmul.mubr.msk.bf16.gmra.mxu1 %vm605_vm1, %v594_v13 }
 0x204   : > { %v2682_v46 = vpop.trf.xlu1  ;;  %v2684_v47 = vpop.trf.xlu0 }
 0x205   : > { %3645 = vst [vmem:[#allocation15_spill] sm:$0xff] %v2682_v46  ;;  %3646 = vst [vmem:[#allocation16_spill] sm:$0xff] %v2684_v47 }
 0x208   : > { %v2686_v48 = vpop.trf.xlu1  ;;  %v2688_v49 = vpop.trf.xlu0 }
 0x209   : > { %3647 = vst [vmem:[#allocation17_spill] sm:$0xff] %v2686_v48  ;;  %3648 = vst [vmem:[#allocation18_spill] sm:$0xff] %v2688_v49 }
 0x20c   : > { %v2690_v50 = vpop.trf.xlu1  ;;  %v2692_v51 = vpop.trf.xlu0 }
 0x20d   : > { %3649 = vst [vmem:[#allocation19_spill] sm:$0xff] %v2690_v50  ;;  %3650 = vst [vmem:[#allocation20_spill] sm:$0xff] %v2692_v51 }
 0x210   : > { %v2698_v54 = vpop.trf.xlu1  ;;  %v2702_v56 = vpop.trf.xlu0 }
 0x211   : > { %3653 = vst [vmem:[#allocation23_spill] sm:$0xff] %v2698_v54  ;;  %3655 = vst [vmem:[#allocation25_spill] sm:$0xff] %v2702_v56 }
 0x214   : > { %v2708_v59 = vpop.trf.xlu1  ;;  %v2712_v61 = vpop.trf.xlu0 }
 0x215   : > { %3658 = vst [vmem:[#allocation28_spill] sm:$0xff] %v2708_v59  ;;  %3659 = vst [vmem:[#allocation29_spill] sm:$0xff] %v2712_v61 }
 0x218   : > { %v2718_v1 = vpop.trf.xlu1  ;;  %v2722_v3 = vpop.trf.xlu0 }
 0x219   : > { %3661 = vst [vmem:[#allocation31_spill] sm:$0xff] %v2718_v1  ;;  %3662 = vst [vmem:[#allocation32_spill] sm:$0xff] %v2722_v3 }
 0x21c   : > { %v2728_v7 = vpop.trf.xlu1  ;;  %v2732_v9 = vpop.trf.xlu0 }
 0x21d   : > { %3663 = vst [vmem:[#allocation33_spill] sm:$0xff] %v2728_v7  ;;  %3664 = vst [vmem:[#allocation34_spill] sm:$0xff] %v2732_v9 }
 0x220   : > { %v2694_v52 = vpop.f32.mrf.mxu1  ;;  %v2736_v12 = vpop.trf.xlu1 }
 0x221   : > { %3651 = vst [vmem:[#allocation21_spill] sm:$0xff] %v2694_v52  ;;  %3665 = vst [vmem:[#allocation35_spill] sm:$0xff] %v2736_v12  ;;  %v2742_v16 = vpop.trf.xlu0 }
 0x222   : > { %v2696_v53 = vpop.f32.mrf.mxu1  ;;  %3666 = vst [vmem:[#allocation36_spill] sm:$0xff] %v2742_v16 }
 0x223   : > { %3652 = vst [vmem:[#allocation22_spill] sm:$0xff] %v2696_v53 }
 0x224   : > { %v2700_v55 = vpop.f32.mrf.mxu1 }
 0x225   : > { %3654 = vst [vmem:[#allocation24_spill] sm:$0xff] %v2700_v55 }
 0x226   : > { %v2704_v57 = vpop.f32.mrf.mxu1 }
 0x227   : > { %3656 = vst [vmem:[#allocation26_spill] sm:$0xff] %v2704_v57 }
 0x228   : > { %v2706_v58 = vpop.f32.mrf.mxu1 }
 0x229   : > { %3657 = vst [vmem:[#allocation27_spill] sm:$0xff] %v2706_v58  ;;  %v847_v61 = vmax.f32 %v2694_v52, %v2706_v58 }
 0x22a   : > { %v2710_v60 = vpop.f32.mrf.mxu1 }
 0x22b   : > { %v884_v27 = vmax.f32 %v2696_v53, %v2710_v60 }
 0x22c   : > { %v2714_v62 = vpop.f32.mrf.mxu1 }
 0x22d   : > { %3660 = vst [vmem:[#allocation30_spill] sm:$0xff] %v2714_v62  ;;  %v848_v9 = vmax.f32 %v2700_v55, %v2714_v62 }
 0x22e   : > { %v2716_v63 = vpop.f32.mrf.mxu1 }
 0x22f   : > { %v885_v51 = vmax.f32 %v2704_v57, %v2716_v63 }
 0x230   : > { %v2720_v2 = vpop.f32.mrf.mxu1 }
 0x231   : > { %v849_v47 = vmax.f32 %v847_v61, %v2720_v2 }
 0x232   : > { %v2724_v4 = vpop.f32.mrf.mxu1 }
 0x233   : > { %v886_v44 = vmax.f32 %v884_v27, %v2724_v4 }
 0x234   : > { %v2726_v6 = vpop.f32.mrf.mxu1 }
 0x235   : > { %v850_v56 = vmax.f32 %v848_v9, %v2726_v6 }
 0x236   : > { %v2730_v8 = vpop.f32.mrf.mxu1 }
 0x237   : > { %v887_v36 = vmax.f32 %v885_v51, %v2730_v8 }
 0x238   : > { %v2734_v11 = vpop.f32.mrf.mxu1 }
 0x239   : > { %v851_v39 = vmax.f32 %v849_v47, %v2734_v11 }
 0x23a   : > { %v2738_v13 = vpop.f32.mrf.mxu1 }
 0x23b   : > { %v888_v55 = vmax.f32 %v886_v44, %v2738_v13 }
 0x23c   : > { %v2740_v15 = vpop.f32.mrf.mxu1 }
 0x23d   : > { %v319_v19 = vpop.permute.xlu1 %318  ;;  %v852_v30 = vmax.f32 %v850_v56, %v2740_v15 }
 0x23e   : > { %v2744_v17 = vpop.f32.mrf.mxu1  ;;  %v2750_v23 = vadd.f32 %v458_v14, %v319_v19  ;;  %v461_v24 = vadd.f32 %v460_v18, %v319_v19 }
 0x23f   : > { %v889_v34 = vmax.f32 %v887_v36, %v2744_v17 }
 0x240   : > { %v2746_v20 = vpop.f32.mrf.mxu1  ;;  %3667 = vst [vmem:[#allocation37_spill] sm:$0xff] %v2750_v23 }
 0x241   : > { %v853_v61 = vmax.f32 %v851_v39, %v2746_v20 }
 0x242   : > { %v314_v21 = vpop.permute.xlu0 %313  ;;  %v2748_v22 = vpop.f32.mrf.mxu1 }
 0x243   : > { %v2752_v25 = vadd.f32 %v454_v5, %v314_v21  ;;  %v457_v26 = vadd.f32 %v456_v10, %v314_v21  ;;  %v890_v27 = vmax.f32 %v888_v55, %v2748_v22 }
 0x244   : > { %v2754_v28 = vpop.f32.mrf.mxu1 }
 0x245   : > { %3668 = vst [vmem:[#allocation38_spill] sm:$0xff] %v2752_v25  ;;  %v2198_v31 = vpack.c.bf16 %v461_v24, %v457_v26  ;;  %v854_v9 = vmax.f32 %v852_v30, %v2754_v28 }
 0x246   : > { %v2758_v35 = vpop.f32.mrf.mxu1 }
 0x247   : > { %1809 = vmatprep.mubr.bf16.mxu1 %v2198_v31  ;;  %v891_v51 = vmax.f32 %v889_v34, %v2758_v35 }
 0x248   : > { %v2760_v37 = vpop.f32.mrf.mxu1 }
 0x249   : > { %v855_v47 = vmax.f32 %v853_v61, %v2760_v37 }
 0x24a   : > { %v2762_v38 = vpop.f32.mrf.mxu1 }
 0x24b   : > { %v892_v44 = vmax.f32 %v890_v27, %v2762_v38 }
 0x24c   : > { %v2764_v40 = vpop.f32.mrf.mxu1 }
 0x24d   : > { %v856_v56 = vmax.f32 %v854_v9, %v2764_v40 }
 0x24e   : > { %v2766_v41 = vpop.f32.mrf.mxu1 }
 0x24f   : > { %v893_v36 = vmax.f32 %v891_v51, %v2766_v41 }
 0x250   : > { %v2768_v42 = vpop.f32.mrf.mxu1 }
 0x251   : > { %v857_v39 = vmax.f32 %v855_v47, %v2768_v42 }
 0x252   : > { %v2770_v43 = vpop.f32.mrf.mxu1 }
 0x253   : > { %v894_v55 = vmax.f32 %v892_v44, %v2770_v43 }
 0x254   : > { %v2772_v5 = vpop.f32.mrf.mxu1 }
 0x255   : > { %v858_v30 = vmax.f32 %v856_v56, %v2772_v5 }
 0x256   : > { %v2774_v10 = vpop.f32.mrf.mxu1 }
 0x257   : > { %v895_v34 = vmax.f32 %v893_v36, %v2774_v10 }
 0x258   : > { %v2776_v14 = vpop.f32.mrf.mxu1 }
 0x259   : > { %v859_v61 = vmax.f32 %v857_v39, %v2776_v14 }
 0x25a   : > { %v2778_v18 = vpop.f32.mrf.mxu1 }
 0x25b   : > { %v896_v27 = vmax.f32 %v894_v55, %v2778_v18 }
 0x25c   : > { %v2780_v19 = vpop.f32.mrf.mxu1 }
 0x25d   : > { %v860_v9 = vmax.f32 %v858_v30, %v2780_v19 }
 0x25e   : > { %v2782_v21 = vpop.f32.mrf.mxu1 }
 0x25f   : > { %v897_v51 = vmax.f32 %v895_v34, %v2782_v21 }
 0x260   : > { %v2784_v24 = vpop.f32.mrf.mxu1 }
 0x261   : > { %3669 = vst [vmem:[#allocation39_spill] sm:$0xff] %v2784_v24  ;;  %v861_v47 = vmax.f32 %v859_v61, %v2784_v24 }
 0x262   : > { %v2786_v26 = vpop.f32.mrf.mxu1 }
 0x263   : > { %3670 = vst [vmem:[#allocation40_spill] sm:$0xff] %v2786_v26  ;;  %v898_v44 = vmax.f32 %v896_v27, %v2786_v26 }
 0x264   : > { %v2788_v31 = vpop.f32.mrf.mxu1 }
 0x265   : > { %3671 = vst [vmem:[#allocation41_spill] sm:$0xff] %v2788_v31  ;;  %v862_v56 = vmax.f32 %v860_v9, %v2788_v31 }
 0x266   : > { %v2790_v29 = vpop.f32.mrf.mxu1 }
 0x267   : > { %3672 = vst [vmem:[#allocation42_spill] sm:$0xff] %v2790_v29  ;;  %v899_v36 = vmax.f32 %v897_v51, %v2790_v29 }
 0x268   : > { %v2792_v0 = vpop.f32.mrf.mxu1 }
 0x269   : > { %3673 = vst [vmem:[#allocation43_spill] sm:$0xff] %v2792_v0  ;;  %v863_v39 = vmax.f32 %v861_v47, %v2792_v0 }
 0x26a   : > { %v2794_v33 = vpop.f32.mrf.mxu1 }
 0x26b   : > { %3674 = vst [vmem:[#allocation44_spill] sm:$0xff] %v2794_v33  ;;  %v900_v55 = vmax.f32 %v898_v44, %v2794_v33 }
 0x26c   : > { %v2796_v25 = vpop.f32.mrf.mxu1 }
 0x26d   : > { %3675 = vst [vmem:[#allocation45_spill] sm:$0xff] %v2796_v25  ;;  %v864_v30 = vmax.f32 %v862_v56, %v2796_v25 }
 0x26e   : > { %v2798_v23 = vpop.f32.mrf.mxu1 }
 0x26f   : > { %3676 = vst [vmem:[#allocation46_spill] sm:$0xff] %v2798_v23  ;;  %v901_v34 = vmax.f32 %v899_v36, %v2798_v23 }
 0x270   : > { %v2800_v12 = vpop.f32.mrf.mxu1 }
 0x271   : > { %3677 = vst [vmem:[#allocation47_spill] sm:$0xff] %v2800_v12  ;;  %v865_v61 = vmax.f32 %v863_v39, %v2800_v12 }
 0x272   : > { %v2802_v7 = vpop.f32.mrf.mxu1 }
 0x273   : > { %3678 = vst [vmem:[#allocation48_spill] sm:$0xff] %v2802_v7  ;;  %v902_v27 = vmax.f32 %v900_v55, %v2802_v7 }
 0x274   : > { %v2804_v1 = vpop.f32.mrf.mxu1 }
 0x275   : > { %3679 = vst [vmem:[#allocation49_spill] sm:$0xff] %v2804_v1  ;;  %v866_v9 = vmax.f32 %v864_v30, %v2804_v1 }
 0x276   : > { %v2806_v59 = vpop.f32.mrf.mxu1 }
 0x277   : > { %3680 = vst [vmem:[#allocation50_spill] sm:$0xff] %v2806_v59  ;;  %v903_v51 = vmax.f32 %v901_v34, %v2806_v59 }
 0x278   : > { %v2808_v54 = vpop.f32.mrf.mxu1 }
 0x279   : > { %v867_v47 = vmax.f32 %v865_v61, %v2808_v54 }
 0x27a   : > { %v2810_v50 = vpop.f32.mrf.mxu1 }
 0x27b   : > { %3681 = vst [vmem:[#allocation51_spill] sm:$0xff] %v2810_v50  ;;  %v904_v44 = vmax.f32 %v902_v27, %v2810_v50 }
 0x27c   : > { %v2812_v48 = vpop.f32.mrf.mxu1 }
 0x27d   : > { %v868_v56 = vmax.f32 %v866_v9, %v2812_v48 }
 0x27e   : > { %v2814_v46 = vpop.f32.mrf.mxu1 }
 0x27f   : > { %3682 = vst [vmem:[#allocation52_spill] sm:$0xff] %v2814_v46  ;;  %v905_v36 = vmax.f32 %v903_v51, %v2814_v46 }
 0x280   : > { %v2816_v16 = vpop.f32.mrf.mxu1 }
 0x281   : > { %v869_v39 = vmax.f32 %v867_v47, %v2816_v16 }
 0x282   : > { %v2820_v3 = vpop.f32.mrf.mxu1 }
 0x283   : > { %v906_v55 = vmax.f32 %v904_v44, %v2820_v3 }
 0x284   : > { %v2827_v49 = vpop.f32.mrf.mxu1 }
 0x285   : > { %v870_v30 = vmax.f32 %v868_v56, %v2827_v49 }
 0x286   : > { %v2834_v32 = vpop.f32.mrf.mxu1 }
 0x287   : > { %v907_v34 = vmax.f32 %v905_v36, %v2834_v32 }
 0x288   : > { %v2840_v45 = vpop.f32.mrf.mxu1 }
 0x289   : > { %v871_v61 = vmax.f32 %v869_v39, %v2840_v45 }
 0x28a   : > { %v2846_v52 = vpop.f32.mrf.mxu1 }
 0x28b   : > { %v908_v27 = vmax.f32 %v906_v55, %v2846_v52 }
 0x28c   : > { %v2852_v57 = vpop.f32.mrf.mxu1 }
 0x28d   : > { %v872_v9 = vmax.f32 %v870_v30, %v2852_v57 }
 0x28e   : > { %v2858_v53 = vpop.f32.mrf.mxu1 }
 0x28f   : > { %v909_v51 = vmax.f32 %v907_v34, %v2858_v53 }
 0x290   : > { %v2864_v62 = vpop.f32.mrf.mxu1 }
 0x291   : > { %v873_v47 = vmax.f32 %v871_v61, %v2864_v62 }
 0x292   : > { %v2870_v58 = vpop.f32.mrf.mxu1 }
 0x294   : > { %v2876_v31 = vpop.f32.mrf.mxu1 }
 0x295   : > { %3683 = vst [vmem:[#allocation53_spill] sm:$0xff] %v2876_v31  ;;  %v874_v56 = vmax.f32 %v872_v9, %v2876_v31  ;;  %v910_v9 = vmax.f32 %v908_v27, %v2870_v58 }
 0x296   : > { %v2882_v24 = vpop.f32.mrf.mxu1 }
 0x297   : > { %v911_v36 = vmax.f32 %v909_v51, %v2882_v24 }
 0x298   : > { %v2888_v29 = vpop.f32.mrf.mxu1 }
 0x299   : > { %v875_v39 = vmax.f32 %v873_v47, %v2888_v29 }
 0x29a   : > { %v2894_v26 = vpop.f32.mrf.mxu1 }
 0x29b   : > { %v912_v34 = vmax.f32 %v910_v9, %v2894_v26 }
 0x29c   : > { %v2900_v25 = vpop.f32.mrf.mxu1 }
 0x29d   : > { %v876_v30 = vmax.f32 %v874_v56, %v2900_v25 }
 0x29e   : > { %v2906_v0 = vpop.f32.mrf.mxu1 }
 0x29f   : > { %v913_v44 = vmax.f32 %v911_v36, %v2906_v0  ;;  %v877_v23 = vmax.f32 %v875_v39, %v876_v30 }
 0x2a1   : > { %v914_v33 = vmax.f32 %v912_v34, %v913_v44  ;;  %v878_v1 = vrot.slane %v877_v23, 4 }
 0x2a3   : > { %v915_v61 = vrot.slane %v914_v33, 4  ;;  %v879_v12 = vmax.f32 %v877_v23, %v878_v1 }
 0x2a5   : > { %v916_v56 = vmax.f32 %v914_v33, %v915_v61  ;;  %v880_v59 = vrot.slane %v879_v12, 2 }
 0x2a7   : > { %v917_v55 = vrot.slane %v916_v56, 2  ;;  %v881_v7 = vmax.f32 %v879_v12, %v880_v59 }
 0x2a9   : > { %v918_v51 = vmax.f32 %v916_v56, %v917_v55  ;;  %v882_v46 = vrot.slane %v881_v7, 1 }
 0x2ab   : > { %v919_v50 = vrot.slane %v918_v51, 1  ;;  %v2912_v31 = vmax.f32 %v881_v7, %v882_v46 }
 0x2ad   : > { %v2914_v47 = vmax.f32 %v918_v51, %v919_v50  ;;  %v965_v30 = vsub.f32 %v2808_v54, %v2912_v31  ;;  %v967_v27 = vsub.f32 %v2812_v48, %v2912_v31  ;;  %v969_v1 = vsub.f32 %v2816_v16, %v2912_v31 }
 0x2ae   : > { %v971_v33 = vsub.f32 %v2827_v49, %v2912_v31  ;;  %v973_v59 = vsub.f32 %v2840_v45, %v2912_v31  ;;  %v975_v46 = vsub.f32 %v2852_v57, %v2912_v31  ;;  %v945_v9 = vsub.f32 %v2768_v42, %v2912_v31 }
 0x2af   : > { %v970_v50 = vsub.f32 %v2820_v3, %v2914_v47  ;;  %v972_v54 = vsub.f32 %v2834_v32, %v2914_v47  ;;  %v974_v48 = vsub.f32 %v2846_v52, %v2914_v47  ;;  %v976_v7 = vsub.f32 %v2858_v53, %v2914_v47 }
 0x2b0   : > { %v2936_v12 = vpack.c.bf16 %v967_v27, %v965_v30  ;;  %v2938_v49 = vpack.c.bf16 %v971_v33, %v969_v1  ;;  %v2940_v45 = vpack.c.bf16 %v975_v46, %v973_v59  ;;  %v950_v3 = vsub.f32 %v2778_v18, %v2914_v47 }
 0x2b1   : > { %v2942_v16 = vpack.c.bf16 %v972_v54, %v970_v50  ;;  %v2944_v57 = vpack.c.bf16 %v976_v7, %v974_v48  ;;  %v952_v32 = vsub.f32 %v2782_v21, %v2914_v47  ;;  %v949_v52 = vsub.f32 %v2776_v14, %v2912_v31 }
 0x2b2   : > { %v951_v53 = vsub.f32 %v2780_v19, %v2912_v31  ;;  %v946_v23 = vsub.f32 %v2770_v43, %v2914_v47  ;;  %v948_v36 = vsub.f32 %v2774_v10, %v2914_v47  ;;  %v947_v18 = vsub.f32 %v2772_v5, %v2912_v31 }
 0x2b3   : > { %v1000_v39 = vpack.c.bf16 %v952_v32, %v950_v3  ;;  %v942_v14 = vsub.f32 %v2762_v38, %v2914_v47  ;;  %v944_v19 = vsub.f32 %v2766_v41, %v2914_v47  ;;  %v941_v43 = vsub.f32 %v2760_v37, %v2912_v31  ;;  %v3684_v3 = vld [vmem:[#allocation27_spill] sm:$0xff] }
 0x2b4   : > { %v999_v21 = vpack.c.bf16 %v951_v53, %v949_v52  ;;  %v998_v44 = vpack.c.bf16 %v948_v36, %v946_v23  ;;  %v943_v10 = vsub.f32 %v2764_v40, %v2912_v31  ;;  %v997_v61 = vpack.c.bf16 %v947_v18, %v945_v9 }
 0x2b5   : > { %v1063_v34 = vmul.bf16 1069105081, %v1000_v39  ;;  %v938_v5 = vsub.f32 %v2748_v22, %v2914_v47  ;;  %v940_v56 = vsub.f32 %v2758_v35, %v2914_v47  ;;  %v996_v38 = vpack.c.bf16 %v944_v19, %v942_v14  ;;  %v3687_v39 = vld [vmem:[#allocation26_spill] sm:$0xff]  ;;  %v3688_v19 = vld [vmem:[#allocation21_spill] sm:$0xff] }
 0x2b6   : > { %v1060_v42 = vmul.bf16 1069105081, %v999_v21  ;;  %v1057_v55 = vmul.bf16 1069105081, %v998_v44  ;;  %v937_v41 = vsub.f32 %v2746_v20, %v2912_v31  ;;  %v939_v51 = vsub.f32 %v2754_v28, %v2912_v31 }
 0x2b7   : > { %2256 = vpow.bf16 %v1063_v34  ;;  %v934_v37 = vsub.f32 %v2738_v13, %v2914_v47  ;;  %v995_v40 = vpack.c.bf16 %v943_v10, %v941_v43  ;;  %v1054_v30 = vmul.bf16 1069105081, %v997_v61  ;;  %v3689_v34 = vld [vmem:[#allocation24_spill] sm:$0xff] }
 0x2b8   : > { %2258 = vpow.bf16 %v1060_v42  ;;  %v936_v22 = vsub.f32 %v2744_v17, %v2914_v47  ;;  %v994_v27 = vpack.c.bf16 %v940_v56, %v938_v5  ;;  %v1051_v35 = vmul.bf16 1069105081, %v996_v38 }
 0x2b9   : > { %2260 = vpow.bf16 %v1057_v55  ;;  %v933_v1 = vsub.f32 %v2734_v11, %v2912_v31  ;;  %v935_v20 = vsub.f32 %v2740_v15, %v2912_v31  ;;  %v930_v28 = vsub.f32 %v2724_v4, %v2914_v47 }
 0x2ba   : > { %v993_v33 = vpack.c.bf16 %v939_v51, %v937_v41  ;;  %v1048_v13 = vmul.bf16 1069105081, %v995_v40  ;;  %2262 = vpow.bf16 %v1054_v30  ;;  %v932_v59 = vsub.f32 %v2730_v8, %v2914_v47 }
 0x2bb   : > { %v992_v46 = vpack.c.bf16 %v936_v22, %v934_v37  ;;  %v1045_v17 = vmul.bf16 1069105081, %v994_v27  ;;  %2264 = vpow.bf16 %v1051_v35  ;;  %v929_v50 = vsub.f32 %v2720_v2, %v2912_v31  ;;  %v3685_v2 = vld [vmem:[#allocation30_spill] sm:$0xff] }
 0x2bc   : > { %v931_v11 = vsub.f32 %v2726_v6, %v2912_v31  ;;  %v926_v15 = vsub.f32 %v2710_v60, %v2914_v47  ;;  %v991_v54 = vpack.c.bf16 %v935_v20, %v933_v1  ;;  %v1042_v4 = vmul.bf16 1069105081, %v993_v33  ;;  %v3686_v6 = vld [vmem:[#allocation22_spill] sm:$0xff]  ;;  %v3690_v20 = vld [vmem:[#allocation53_spill] sm:$0xff] }
 0x2bd   : > { %2266 = vpow.bf16 %v1048_v13  ;;  %v928_v48 = vsub.f32 %v2716_v63, %v2914_v47  ;;  %v990_v7 = vpack.c.bf16 %v932_v59, %v930_v28  ;;  %v1039_v8 = vmul.bf16 1069105081, %v992_v46 }
 0x2be   : > { %2268 = vpow.bf16 %v1045_v17  ;;  %v925_v32 = vsub.f32 %v3684_v3, %v2912_v31  ;;  %v927_v52 = vsub.f32 %v3685_v2, %v2912_v31  ;;  %v922_v53 = vsub.f32 %v3686_v6, %v2914_v47  ;;  %v3693_v2 = vld [vmem:[#allocation48_spill] sm:$0xff] }
 0x2bf   : > { %v989_v23 = vpack.c.bf16 %v931_v11, %v929_v50  ;;  %v1036_v60 = vmul.bf16 1069105081, %v991_v54  ;;  %2270 = vpow.bf16 %v1042_v4  ;;  %v924_v9 = vsub.f32 %v3687_v39, %v2914_v47  ;;  %v3691_v54 = vld [vmem:[#allocation51_spill] sm:$0xff] }
 0x2c0   : > { %v988_v63 = vpack.c.bf16 %v928_v48, %v926_v15  ;;  %v1033_v18 = vmul.bf16 1069105081, %v990_v7  ;;  %2272 = vpow.bf16 %v1039_v8  ;;  %v921_v44 = vsub.f32 %v3688_v19, %v2912_v31  ;;  %v3692_v48 = vld [vmem:[#allocation52_spill] sm:$0xff] }
 0x2c1   : > { %v923_v43 = vsub.f32 %v3689_v34, %v2912_v31  ;;  %v987_v10 = vpack.c.bf16 %v927_v52, %v925_v32  ;;  %v982_v61 = vsub.f32 %v2894_v26, %v2914_v47  ;;  %v984_v42 = vsub.f32 %v2906_v0, %v2914_v47 }
 0x2c2   : > { %v1030_v5 = vmul.bf16 1069105081, %v989_v23  ;;  %2274 = vpow.bf16 %v1036_v60  ;;  %v986_v56 = vpack.c.bf16 %v924_v9, %v922_v53  ;;  %v1027_v38 = vmul.bf16 1069105081, %v988_v63  ;;  %v3694_v53 = vld [vmem:[#allocation50_spill] sm:$0xff]  ;;  %v3695_v9 = vld [vmem:[#allocation47_spill] sm:$0xff] }
 0x2c3   : > { %2276 = vpow.bf16 %v1033_v18  ;;  %v981_v51 = vsub.f32 %v2888_v29, %v2912_v31  ;;  %v983_v37 = vsub.f32 %v2900_v25, %v2912_v31  ;;  %v1016_v40 = vpack.c.bf16 %v984_v42, %v982_v61  ;;  %v3696_v18 = vld [vmem:[#allocation49_spill] sm:$0xff]  ;;  %v3699_v42 = vld [vmem:[#allocation43_spill] sm:$0xff] }
 0x2c4   : > { %v985_v26 = vpack.c.bf16 %v923_v43, %v921_v44  ;;  %v1024_v30 = vmul.bf16 1069105081, %v987_v10  ;;  %2278 = vpow.bf16 %v1030_v5  ;;  %v978_v0 = vsub.f32 %v2870_v58, %v2914_v47  ;;  %v3698_v44 = vld [vmem:[#allocation46_spill] sm:$0xff] }
 0x2c5   : > { %v2257_v36 = vpop.eup %2256  ;;  %v980_v22 = vsub.f32 %v2882_v24, %v2914_v47  ;;  %v1021_v27 = vmul.bf16 1069105081, %v986_v56  ;;  %2280 = vpow.bf16 %v1027_v38  ;;  %v1015_v29 = vpack.c.bf16 %v983_v37, %v981_v51  ;;  %v3700_v56 = vld [vmem:[#allocation45_spill] sm:$0xff]  ;;  %v3702_v37 = vld [vmem:[#allocation42_spill] sm:$0xff] }
 0x2c6   : > { %v2259_v21 = vpop.eup %2258  ;;  %1123 = vmatprep.subr.bf16.mxu0 %v2257_v36  ;;  %v977_v25 = vsub.f32 %v2864_v62, %v2912_v31  ;;  %v979_v28 = vsub.f32 %v3690_v20, %v2912_v31  ;;  %v1018_v33 = vmul.bf16 1069105081, %v985_v26  ;;  %2282 = vpow.bf16 %v1024_v30 }
 0x2c7   : > { %v2261_v14 = vpop.eup %2260  ;;  %1124 = vmatpush1.bf16.msra.mxu0 %v2259_v21  ;;  %v1111_v13 = vmul.bf16 1069105081, %v1016_v40  ;;  %v1014_v58 = vpack.c.bf16 %v980_v22, %v978_v0  ;;  %2284 = vpow.bf16 %v1021_v27  ;;  %v1108_v46 = vmul.bf16 1069105081, %v1015_v29  ;;  %v3703_v27 = vld [vmem:[#allocation39_spill] sm:$0xff] }
 0x2c8   : > { %1125 = vmatprep.subr.bf16.mxu0 %v2261_v14  ;;  %v2263_v55 = vpop.eup %2262  ;;  %v1013_v17 = vpack.c.bf16 %v979_v28, %v977_v25  ;;  %2286 = vpow.bf16 %v1018_v33  ;;  %v966_v4 = vsub.f32 %v3691_v54, %v2914_v47  ;;  %v968_v7 = vsub.f32 %v3692_v48, %v2914_v47  ;;  %v3705_v48 = vld [vmem:[#allocation14_spill] sm:$0xff] }
 0x2c9   : > { %v2265_v41 = vpop.eup %2264  ;;  %2288 = vpow.bf16 %v1111_v13  ;;  %v1105_v50 = vmul.bf16 1069105081, %v1014_v58  ;;  %v1099_v8 = vmul.bf16 1069105081, %v2944_v57  ;;  %v962_v52 = vsub.f32 %v3693_v2, %v2914_v47  ;;  %v3708_v2 = vld [vmem:[#allocation10_spill] sm:$0xff] }
 0x2ca   : > { %2290 = vpow.bf16 %v1108_v46  ;;  %v1102_v15 = vmul.bf16 1069105081, %v1013_v17  ;;  %v1096_v6 = vmul.bf16 1069105081, %v2940_v45  ;;  %v964_v23 = vsub.f32 %v3694_v53, %v2914_v47  ;;  %v3697_v45 = vld [vmem:[#allocation44_spill] sm:$0xff] }
 0x2cb   : > { %1126 = vmatpush1.bf16.msra.mxu0 %v2263_v55  ;;  %v2267_v35 = vpop.eup %2266  ;;  %2292 = vpow.bf16 %v1105_v50  ;;  %v1008_v60 = vpack.c.bf16 %v968_v7, %v966_v4  ;;  %v1093_v36 = vmul.bf16 1069105081, %v2942_v16  ;;  %v961_v63 = vsub.f32 %v3695_v9, %v2912_v31  ;;  %v3701_v55 = vld [vmem:[#allocation40_spill] sm:$0xff]  ;;  %v3711_v9 = vld [vmem:[#allocation11_spill] sm:$0xff] }
 0x2cc   : > { %1127 = vmatprep.subr.bf16.mxu0 %v2265_v41  ;;  %v2269_v1 = vpop.eup %2268  ;;  %2294 = vpow.bf16 %v1102_v15  ;;  %v963_v21 = vsub.f32 %v3696_v18, %v2912_v31  ;;  %v958_v14 = vsub.f32 %v3697_v45, %v2914_v47  ;;  %v1090_v19 = vmul.bf16 1069105081, %v2938_v49  ;;  %v3706_v7 = vld [vmem:[#allocation8_spill] sm:$0xff] }
 0x2cd   : > { %v2271_v59 = vpop.eup %2270  ;;  %2296 = vpow.bf16 %v1099_v8  ;;  %v960_v16 = vsub.f32 %v3698_v44, %v2914_v47  ;;  %v1006_v34 = vpack.c.bf16 %v964_v23, %v962_v52  ;;  %v1087_v43 = vmul.bf16 1069105081, %v1008_v60  ;;  %v3717_v44 = vld [vmem:[#allocation20_spill] sm:$0xff] }
 0x2ce   : > { %v2273_v24 = vpop.eup %2272  ;;  %2298 = vpow.bf16 %v1096_v6  ;;  %v957_v5 = vsub.f32 %v3699_v42, %v2912_v31  ;;  %v959_v38 = vsub.f32 %v3700_v56, %v2912_v31  ;;  %v954_v49 = vsub.f32 %v3701_v55, %v2914_v47  ;;  %v3709_v6 = vld [vmem:[#allocation7_spill] sm:$0xff]  ;;  %v3727_v55 = vld [vmem:[#allocation28_spill] sm:$0xff] }
 0x2cf   : > { %1128 = vmatpush1.bf16.msra.mxu0 %v2267_v35  ;;  %2300 = vpow.bf16 %v1093_v36  ;;  %v1005_v41 = vpack.c.bf16 %v963_v21, %v961_v63  ;;  %v1084_v51 = vmul.bf16 1069105081, %v2936_v12  ;;  %v956_v40 = vsub.f32 %v3702_v37, %v2914_v47  ;;  %v3710_v36 = vld [vmem:[#allocation9_spill] sm:$0xff]  ;;  %v3712_v63 = vld [vmem:[#allocation12_spill] sm:$0xff]  ;;  %v3723_v42 = vld [vmem:[#allocation15_spill] sm:$0xff] }
 0x2d0   : > { %1129 = vmatprep.subr.bf16.mxu0 %v2269_v1  ;;  %v2275_v11 = vpop.eup %2274  ;;  %2302 = vpow.bf16 %v1090_v19  ;;  %v1004_v26 = vpack.c.bf16 %v960_v16, %v958_v14  ;;  %v1081_v30 = vmul.bf16 1069105081, %v1006_v34  ;;  %v953_v35 = vsub.f32 %v3703_v27, %v2912_v31  ;;  %v3704_v1 = vld [vmem:[#allocation41_spill] sm:$0xff]  ;;  %v3715_v14 = vld [vmem:[#allocation16_spill] sm:$0xff]  ;;  %v3716_v19 = vld [vmem:[#allocation18_spill] sm:$0xff] }
 0x2d1   : > { %v2277_v62 = vpop.eup %2276  ;;  %2304 = vpow.bf16 %v1087_v43  ;;  %v955_v29 = vsub.f32 %v3704_v1, %v2912_v31  ;;  %v1003_v25 = vpack.c.bf16 %v959_v38, %v957_v5  ;;  %v1078_v20 = vmul.bf16 1069105081, %v1005_v41  ;;  %v3718_v16 = vld [vmem:[#allocation25_spill] sm:$0xff]  ;;  %v3720_v43 = vld [vmem:[#allocation32_spill] sm:$0xff]  ;;  %v3725_v56 = vld [vmem:[#allocation19_spill] sm:$0xff] }
 0x2d2   : > { %v2279_v3 = vpop.eup %2278  ;;  %2306 = vpow.bf16 %v1084_v51  ;;  %v1002_v12 = vpack.c.bf16 %v956_v40, %v954_v49  ;;  %v1075_v28 = vmul.bf16 1069105081, %v1004_v26  ;;  %v417_v8 = vadd.f32 %v3706_v7, %v3705_v48  ;;  %v3719_v34 = vld [vmem:[#allocation29_spill] sm:$0xff]  ;;  %v3726_v38 = vld [vmem:[#allocation23_spill] sm:$0xff] }
 0x2d3   : > { %1130 = vmatpush1.bf16.msra.mxu0 %v2271_v59  ;;  %v2281_v32 = vpop.eup %2280  ;;  %2308 = vpow.bf16 %v1081_v30  ;;  %v1001_v13 = vpack.c.bf16 %v955_v29, %v953_v35  ;;  %v1072_v58 = vmul.bf16 1069105081, %v1003_v25  ;;  %v415_v53 = vadd.f32 %v3709_v6, %v3705_v48  ;;  %v3724_v5 = vld [vmem:[#allocation17_spill] sm:$0xff]  ;;  %v3728_v49 = vld [vmem:[#allocation31_spill] sm:$0xff] }
 0x2d4   : > { %1131 = vmatprep.subr.bf16.mxu0 %v2273_v24  ;;  %v2283_v39 = vpop.eup %2282  ;;  %2310 = vpow.bf16 %v1078_v20  ;;  %v1069_v59 = vmul.bf16 1069105081, %v1002_v12  ;;  %v3713_v18 = vpack.c.bf16 %v3711_v9, %v3712_v63  ;;  %v3605_v21 = vmov 1065369472   ;;  %v3729_v41 = vld [vmem:[#allocation33_spill] sm:$0xff]  ;;  %v3730_v51 = vld [vmem:[#allocation35_spill] sm:$0xff] }
 0x2d5   : > { %v2285_v57 = vpop.eup %2284  ;;  %2312 = vpow.bf16 %v1075_v28  ;;  %v1066_v31 = vmul.bf16 1069105081, %v1001_v13  ;;  %v3714_v45 = vmov 0   ;;  %v1176_v27 = vlaneseq }
 0x2d6   : > { %v2287_v10 = vpop.eup %2286  ;;  %2314 = vpow.bf16 %v1072_v58 }
 0x2d7   : > { %1132 = vmatpush1.bf16.msra.mxu0 %v2275_v11  ;;  %v2289_v61 = vpop.eup %2288  ;;  %2316 = vpow.bf16 %v1069_v59  ;;  %v1177_v29 = vshrl.u32 %v1176_v27, 7 }
 0x2d8   : > { %1133 = vmatprep.subr.bf16.mxu0 %v2277_v62  ;;  %v2291_v0 = vpop.eup %2290  ;;  %2318 = vpow.bf16 %v1066_v31 }
 0x2d9   : > { %v2293_v22 = vpop.eup %2292  ;;  %v3124_v12 = vsub.s32 0, %v1177_v29 }
 0x2da   : > { %v2295_v47 = vpop.eup %2294 }
 0x2db   : > { %1134 = vmatpush1.bf16.msra.mxu0 %v2279_v3  ;;  %v2297_v33 = vpop.eup %2296  ;;  %3733 = vst [vmem:[#allocation22_spill] sm:$0xff] %v3124_v12 }
 0x2dc   : > { %1135 = vmatprep.subr.bf16.mxu0 %v2281_v32  ;;  %v2299_v24 = vpop.eup %2298  ;;  %v3707_v32 = vld [vmem:[#allocation13_spill] sm:$0xff] }
 0x2dd   : > { %v2301_v46 = vpop.eup %2300  ;;  %v421_v52 = vadd.f32 %v3708_v2, %v3707_v32 }
 0x2de   : > { %v2303_v17 = vpop.eup %2302 }
 0x2df   : > { %1136 = vmatpush1.bf16.msra.mxu0 %v2283_v39  ;;  %v2305_v50 = vpop.eup %2304  ;;  %v2196_v60 = vpack.c.bf16 %v421_v52, %v417_v8  ;;  %v419_v39 = vadd.f32 %v3710_v36, %v3707_v32 }
 0x2e0   : > { %1137 = vmatprep.subr.bf16.mxu0 %v2285_v57  ;;  %v2307_v11 = vpop.eup %2306 }
 0x2e1   : > { %v2309_v62 = vpop.eup %2308  ;;  %v2195_v57 = vpack.c.bf16 %v419_v39, %v415_v53 }
 0x2e2   : > { %v2311_v15 = vpop.eup %2310 }
 0x2e3   : > { %1138 = vmatpush1.bf16.msra.mxu0 %v2287_v10  ;;  %v2313_v54 = vpop.eup %2312  ;;  %v3721_v10 = vld [vmem:[#allocation34_spill] sm:$0xff] }
 0x2e4   : > { %1139 = vmatprep.subr.bf16.mxu0 %v2289_v61  ;;  %v2315_v4 = vpop.eup %2314  ;;  %v3722_v61 = vld [vmem:[#allocation36_spill] sm:$0xff] }
 0x2e5   : > { %v2317_v3 = vpop.eup %2316 }
 0x2e6   : > { %v2319_v23 = vpop.eup %2318 }
 0x2e7   : > { %1140 = vmatpush2.bf16.msra.mxu0 %v2291_v0 }
 0x2e8   : > { %1141 = vmatprep.subr.bf16.mxu0 %v2293_v22 }
 0x2eb   : > { %1142 = vmatpush2.bf16.msra.mxu0 %v2295_v47 }
 0x2ec   : > { %1143 = vmatprep.subr.bf16.mxu0 %v2297_v33 }
 0x2ef   : > { %1144 = vmatpush2.bf16.msra.mxu0 %v2299_v24 }
 0x2f0   : > { %1145 = vmatprep.subr.bf16.mxu0 %v2301_v46 }
 0x2f3   : > { %1146 = vmatpush2.bf16.msra.mxu0 %v2303_v17 }
 0x2f4   : > { %1147 = vmatprep.subr.bf16.mxu0 %v2305_v50 }
 0x2f7   : > { %1148 = vmatpush2.bf16.msra.mxu0 %v2307_v11 }
 0x2f8   : > { %1149 = vmatprep.subr.bf16.mxu0 %v2309_v62 }
 0x2fb   : > { %1150 = vmatpush2.bf16.msra.mxu0 %v2311_v15 }
 0x2fc   : > { %1151 = vmatprep.subr.bf16.mxu0 %v2313_v54 }
 0x2ff   : > { %1152 = vmatpush2.bf16.msra.mxu0 %v2315_v4 }
 0x300   : > { %1153 = vmatprep.subr.bf16.mxu0 %v2317_v3 }
 0x303   : > { %1154 = vmatpush2.bf16.msra.mxu0 %v2319_v23 }
 0x304   : > { %1322 = vmatprep.subr.bf16.mxu0 %v2196_v60 }
 0x306   : > { %1156 = vmatmul.mubr.bf16.vlgmr.msra.gmra.mxu0 %v3713_v18 }
 0x307   : > { %1323 = vmatpush1.bf16.msra.mxu0 %v2195_v57  ;;  %1165 = vmatprep.mubr.bf16.mxu0 %v3605_v21 }
 0x30e   : > { %1166 = vmatmul.mubr.bf16.gmra.mxu0 %v3605_v21 }
 0x30f   : > { %1340 = vmatprep.mubr.bf16.mxu0 %v3714_v45 }
 0x316   : > { %2136 = vmatmul.mubr.msk.bf16.vlgmr.msra.gmra.mxu0 %vm605_vm1, %v3715_v14 }
 0x317   : > { %1350 = vmatprep.mubr.bf16.mxu0 %v3714_v45 }
 0x31e   : > { %2137 = vmatmul.mubr.msk.bf16.gmra.mxu0 %vm605_vm1, %v3716_v19 }
 0x31f   : > { %1360 = vmatprep.mubr.bf16.mxu0 %v3714_v45 }
 0x326   : > { %2138 = vmatmul.mubr.msk.bf16.gmra.mxu0 %vm605_vm1, %v3717_v44 }
 0x327   : > { %1370 = vmatprep.mubr.bf16.mxu0 %v3714_v45 }
 0x32e   : > { %2139 = vmatmul.mubr.msk.bf16.gmra.mxu0 %vm605_vm1, %v3718_v16 }
 0x32f   : > { %1380 = vmatprep.mubr.bf16.mxu0 %v3714_v45 }
 0x336   : > { %2140 = vmatmul.mubr.msk.bf16.gmra.mxu0 %vm605_vm1, %v3719_v34 }
 0x337   : > { %1390 = vmatprep.mubr.bf16.mxu0 %v3714_v45 }
 0x33e   : > { %2141 = vmatmul.mubr.msk.bf16.gmra.mxu0 %vm605_vm1, %v3720_v43 }
 0x33f   : > { %1400 = vmatprep.mubr.bf16.mxu0 %v3714_v45 }
 0x346   : > { %2142 = vmatmul.mubr.msk.bf16.gmra.mxu0 %vm605_vm1, %v3721_v10 }
 0x347   : > { %1410 = vmatprep.mubr.bf16.mxu0 %v3714_v45 }
 0x34e   : > { %2143 = vmatmul.mubr.msk.bf16.gmra.mxu0 %vm605_vm1, %v3722_v61 }
 0x34f   : > { %1420 = vmatprep.mubr.bf16.mxu0 %v3714_v45 }
 0x356   : > { %2144 = vmatmul.mubr.msk.bf16.gmra.mxu0 %vm605_vm1, %v3723_v42 }
 0x357   : > { %1430 = vmatprep.mubr.bf16.mxu0 %v3714_v45 }
 0x35e   : > { %2145 = vmatmul.mubr.msk.bf16.gmra.mxu0 %vm605_vm1, %v3724_v5 }
 0x35f   : > { %1440 = vmatprep.mubr.bf16.mxu0 %v3714_v45 }
 0x366   : > { %2146 = vmatmul.mubr.msk.bf16.gmra.mxu0 %vm605_vm1, %v3725_v56 }
 0x367   : > { %1450 = vmatprep.mubr.bf16.mxu0 %v3714_v45 }
 0x36e   : > { %2147 = vmatmul.mubr.msk.bf16.gmra.mxu0 %vm605_vm1, %v3726_v38 }
 0x36f   : > { %1460 = vmatprep.mubr.bf16.mxu0 %v3714_v45 }
 0x376   : > { %2148 = vmatmul.mubr.msk.bf16.gmra.mxu0 %vm605_vm1, %v3727_v55 }
 0x377   : > { %1470 = vmatprep.mubr.bf16.mxu0 %v3714_v45 }
 0x37e   : > { %2149 = vmatmul.mubr.msk.bf16.gmra.mxu0 %vm605_vm1, %v3728_v49 }
 0x37f   : > { %1480 = vmatprep.mubr.bf16.mxu0 %v3714_v45 }
 0x386   : > { %2150 = vmatmul.mubr.msk.bf16.gmra.mxu0 %vm605_vm1, %v3729_v41 }
 0x387   : > { %1490 = vmatprep.mubr.bf16.mxu0 %v3714_v45 }
 0x38e   : > { %2151 = vmatmul.mubr.msk.bf16.gmra.mxu0 %vm605_vm1, %v3730_v51 }
 0x3c6   : > { %v1157_v37 = vpop.f32.mrf.mxu0 }
 0x3c8   : > { %v1159_v40 = vpop.f32.mrf.mxu0 }
 0x3ca   : > { %v1161_v26 = vpop.f32.mrf.mxu0 }
 0x3cc   : > { %v1163_v30 = vpop.f32.mrf.mxu0 }
 0x3ce   : > { %v1167_v0 = vpop.f32.mrf.mxu0 }
 0x3cf   : > { %2320 = vrcp.f32 %v1167_v0 }
 0x3d0   : > { %v1169_v22 = vpop.f32.mrf.mxu0 }
 0x3d1   : > { %2322 = vrcp.f32 %v1169_v22 }
 0x3d2   : > { %v1171_v35 = vpop.f32.mrf.mxu0 }
 0x3d4   : > { %v1172_v1 = vpop.f32.mrf.mxu0 }
 0x3d6   : > { %v3120_v25 = vpop.f32.mrf.mxu0 }
 0x3d7   : > { %3731 = vst [vmem:[#allocation27_spill] sm:$0xff] %v3120_v25 }
 0x3d8   : > { %v3122_v20 = vpop.f32.mrf.mxu0 }
 0x3d9   : > { %3732 = vst [vmem:[#allocation30_spill] sm:$0xff] %v3122_v20 }
 0x3da   : > { %v3126_v28 = vpop.f32.mrf.mxu0 }
 0x3db   : > { %3734 = vst [vmem:[#allocation26_spill] sm:$0xff] %v3126_v28 }
 0x3dc   : > { %v2321_v47 = vpop.eup %2320  ;;  %v3128_v33 = vpop.f32.mrf.mxu0 }
 0x3dd   : > { %3735 = vst [vmem:[#allocation21_spill] sm:$0xff] %v3128_v33  ;;  %v1179_v13 = vrot.slane %v2321_v47, %v3124_v12 }
 0x3de   : > { %v2323_v58 = vpop.eup %2322  ;;  %v3131_v59 = vpop.f32.mrf.mxu0 }
 0x3df   : > { %3736 = vst [vmem:[#allocation24_spill] sm:$0xff] %v3131_v59  ;;  %v1183_v24 = vrot.slane %v2323_v58, %v3124_v12  ;;  %v3134_v46 = vmul.f32 %v1179_v13, %v1157_v37  ;;  %v3136_v31 = vmul.f32 %v1179_v13, %v1161_v26  ;;  %v1501_v47 = vmax.f32 %v3120_v25, %v3131_v59 }
 0x3e0   : > { %v3138_v17 = vpop.f32.mrf.mxu0 }
 0x3e1   : > { %3737 = vst [vmem:[#allocation53_spill] sm:$0xff] %v3134_v46  ;;  %3738 = vst [vmem:[#allocation51_spill] sm:$0xff] %v3136_v31  ;;  %v3140_v50 = vmul.f32 %v1183_v24, %v1159_v40  ;;  %v3142_v11 = vmul.f32 %v1183_v24, %v1163_v30  ;;  %v1538_v21 = vmax.f32 %v3122_v20, %v3138_v17 }
 0x3e2   : > { %v3146_v15 = vpop.f32.mrf.mxu0 }
 0x3e3   : > { %3739 = vst [vmem:[#allocation52_spill] sm:$0xff] %v3140_v50  ;;  %3740 = vst [vmem:[#allocation48_spill] sm:$0xff] %v3142_v11  ;;  %v1502_v1 = vmax.f32 %v3126_v28, %v3146_v15 }
 0x3e4   : > { %3741 = vst [vmem:[#allocation50_spill] sm:$0xff] %v3146_v15  ;;  %v3150_v4 = vpop.f32.mrf.mxu0 }
 0x3e5   : > { %v1539_v58 = vmax.f32 %v3128_v33, %v3150_v4 }
 0x3e6   : > { %v3152_v48 = vpop.f32.mrf.mxu0 }
 0x3e7   : > { %v1503_v62 = vmax.f32 %v1501_v47, %v3152_v48 }
 0x3e8   : > { %v3154_v7 = vpop.f32.mrf.mxu0 }
 0x3e9   : > { %v1540_v11 = vmax.f32 %v1538_v21, %v3154_v7 }
 0x3ea   : > { %v3156_v8 = vpop.f32.mrf.mxu0 }
 0x3eb   : > { %v1504_v13 = vmax.f32 %v1502_v1, %v3156_v8 }
 0x3ec   : > { %v3158_v3 = vpop.f32.mrf.mxu0 }
 0x3ed   : > { %v1541_v46 = vmax.f32 %v1539_v58, %v3158_v3 }
 0x3ee   : > { %v3160_v32 = vpop.f32.mrf.mxu0 }
 0x3ef   : > { %v1505_v50 = vmax.f32 %v1503_v62, %v3160_v32 }
 0x3f0   : > { %v3162_v2 = vpop.f32.mrf.mxu0 }
 0x3f1   : > { %v1542_v28 = vmax.f32 %v1540_v11, %v3162_v2 }
 0x3f2   : > { %v3164_v52 = vpop.f32.mrf.mxu0 }
 0x3f3   : > { %v1506_v54 = vmax.f32 %v1504_v13, %v3164_v52 }
 0x3f4   : > { %v3166_v6 = vpop.f32.mrf.mxu0 }
 0x3f5   : > { %v1543_v12 = vmax.f32 %v1541_v46, %v3166_v6 }
 0x3f6   : > { %v3168_v53 = vpop.f32.mrf.mxu0 }
 0x3f7   : > { %v1507_v47 = vmax.f32 %v1505_v50, %v3168_v53 }
 0x3f8   : > { %v3170_v23 = vpop.f32.mrf.mxu0 }
 0x3f9   : > { %v1544_v21 = vmax.f32 %v1542_v28, %v3170_v23 }
 0x3fa   : > { %v3172_v60 = vpop.f32.mrf.mxu0 }
 0x3fb   : > { %v1508_v1 = vmax.f32 %v1506_v54, %v3172_v60 }
 0x3fc   : > { %v3174_v36 = vpop.f32.mrf.mxu0 }
 0x3fd   : > { %v1545_v58 = vmax.f32 %v1543_v12, %v3174_v36 }
 0x3fe   : > { %v3176_v39 = vpop.f32.mrf.mxu0 }
 0x3ff   : > { %v1509_v62 = vmax.f32 %v1507_v47, %v3176_v39 }
 0x400   : > { %v3178_v57 = vpop.f32.mrf.mxu0 }
 0x401   : > { %v1546_v11 = vmax.f32 %v1544_v21, %v3178_v57 }
 0x402   : > { %v3180_v9 = vpop.f32.mrf.mxu0 }
 0x403   : > { %v1510_v13 = vmax.f32 %v1508_v1, %v3180_v9 }
 0x404   : > { %v3182_v63 = vpop.f32.mrf.mxu0 }
 0x405   : > { %v1547_v46 = vmax.f32 %v1545_v58, %v3182_v63 }
 0x406   : > { %v3184_v18 = vpop.f32.mrf.mxu0 }
 0x407   : > { %v1511_v50 = vmax.f32 %v1509_v62, %v3184_v18 }
 0x408   : > { %v3186_v14 = vpop.f32.mrf.mxu0 }
 0x409   : > { %v1548_v28 = vmax.f32 %v1546_v11, %v3186_v14 }
 0x40a   : > { %v3188_v19 = vpop.f32.mrf.mxu0 }
 0x40b   : > { %v1512_v54 = vmax.f32 %v1510_v13, %v3188_v19 }
 0x40c   : > { %v3190_v44 = vpop.f32.mrf.mxu0 }
 0x40d   : > { %v1549_v12 = vmax.f32 %v1547_v46, %v3190_v44 }
 0x40e   : > { %v3192_v16 = vpop.f32.mrf.mxu0 }
 0x40f   : > { %v1513_v47 = vmax.f32 %v1511_v50, %v3192_v16 }
 0x410   : > { %v3194_v34 = vpop.f32.mrf.mxu0 }
 0x411   : > { %v1550_v21 = vmax.f32 %v1548_v28, %v3194_v34 }
 0x412   : > { %v3196_v43 = vpop.f32.mrf.mxu0 }
 0x413   : > { %v1514_v1 = vmax.f32 %v1512_v54, %v3196_v43 }
 0x414   : > { %v3198_v10 = vpop.f32.mrf.mxu0 }
 0x415   : > { %v1551_v58 = vmax.f32 %v1549_v12, %v3198_v10 }
 0x416   : > { %v3200_v61 = vpop.f32.mrf.mxu0 }
 0x417   : > { %3742 = vst [vmem:[#allocation47_spill] sm:$0xff] %v3200_v61  ;;  %v1515_v62 = vmax.f32 %v1513_v47, %v3200_v61 }
 0x418   : > { %v3202_v42 = vpop.f32.mrf.mxu0 }
 0x419   : > { %3743 = vst [vmem:[#allocation49_spill] sm:$0xff] %v3202_v42  ;;  %v1552_v11 = vmax.f32 %v1550_v21, %v3202_v42 }
 0x41a   : > { %v3204_v5 = vpop.f32.mrf.mxu0 }
 0x41b   : > { %3744 = vst [vmem:[#allocation44_spill] sm:$0xff] %v3204_v5  ;;  %v1516_v13 = vmax.f32 %v1514_v1, %v3204_v5 }
 0x41c   : > { %v3206_v56 = vpop.f32.mrf.mxu0 }
 0x41d   : > { %3745 = vst [vmem:[#allocation46_spill] sm:$0xff] %v3206_v56  ;;  %v1553_v46 = vmax.f32 %v1551_v58, %v3206_v56 }
 0x41e   : > { %v3208_v38 = vpop.f32.mrf.mxu0 }
 0x41f   : > { %3746 = vst [vmem:[#allocation43_spill] sm:$0xff] %v3208_v38  ;;  %v1517_v50 = vmax.f32 %v1515_v62, %v3208_v38 }
 0x420   : > { %v3210_v55 = vpop.f32.mrf.mxu0 }
 0x421   : > { %3747 = vst [vmem:[#allocation45_spill] sm:$0xff] %v3210_v55  ;;  %v1554_v28 = vmax.f32 %v1552_v11, %v3210_v55 }
 0x422   : > { %v3212_v49 = vpop.f32.mrf.mxu0 }
 0x423   : > { %3748 = vst [vmem:[#allocation40_spill] sm:$0xff] %v3212_v49  ;;  %v1518_v54 = vmax.f32 %v1516_v13, %v3212_v49 }
 0x424   : > { %v3214_v41 = vpop.f32.mrf.mxu0 }
 0x425   : > { %3749 = vst [vmem:[#allocation42_spill] sm:$0xff] %v3214_v41  ;;  %v1555_v12 = vmax.f32 %v1553_v46, %v3214_v41 }
 0x426   : > { %v3216_v51 = vpop.f32.mrf.mxu0 }
 0x427   : > { %3750 = vst [vmem:[#allocation39_spill] sm:$0xff] %v3216_v51  ;;  %v1519_v47 = vmax.f32 %v1517_v50, %v3216_v51 }
 0x428   : > { %v3218_v37 = vpop.f32.mrf.mxu0 }
 0x429   : > { %3751 = vst [vmem:[#allocation41_spill] sm:$0xff] %v3218_v37  ;;  %v1556_v21 = vmax.f32 %v1554_v28, %v3218_v37 }
 0x42a   : > { %v3220_v40 = vpop.f32.mrf.mxu0 }
 0x42b   : > { %3752 = vst [vmem:[#allocation14_spill] sm:$0xff] %v3220_v40  ;;  %v1520_v1 = vmax.f32 %v1518_v54, %v3220_v40 }
 0x42c   : > { %v3222_v26 = vpop.f32.mrf.mxu0 }
 0x42d   : > { %3753 = vst [vmem:[#allocation8_spill] sm:$0xff] %v3222_v26  ;;  %v1557_v58 = vmax.f32 %v1555_v12, %v3222_v26 }
 0x42e   : > { %v3224_v30 = vpop.f32.mrf.mxu0 }
 0x42f   : > { %v1521_v62 = vmax.f32 %v1519_v47, %v3224_v30 }
 0x430   : > { %v3226_v0 = vpop.f32.mrf.mxu0 }
 0x431   : > { %3754 = vst [vmem:[#allocation13_spill] sm:$0xff] %v3226_v0  ;;  %v1558_v11 = vmax.f32 %v1556_v21, %v3226_v0 }
 0x432   : > { %v3228_v22 = vpop.f32.mrf.mxu0 }
 0x433   : > { %v1522_v13 = vmax.f32 %v1520_v1, %v3228_v22 }
 0x434   : > { %v3230_v27 = vpop.f32.mrf.mxu0 }
 0x435   : > { %3755 = vst [vmem:[#allocation10_spill] sm:$0xff] %v3230_v27  ;;  %v1559_v46 = vmax.f32 %v1557_v58, %v3230_v27 }
 0x436   : > { %v3232_v35 = vpop.f32.mrf.mxu0 }
 0x437   : > { %v1523_v50 = vmax.f32 %v1521_v62, %v3232_v35 }
 0x438   : > { %v3236_v29 = vpop.f32.mrf.mxu0 }
 0x439   : > { %v1560_v28 = vmax.f32 %v1558_v11, %v3236_v29 }
 0x43a   : > { %v3243_v24 = vpop.f32.mrf.mxu0 }
 0x43b   : > { %v1524_v54 = vmax.f32 %v1522_v13, %v3243_v24 }
 0x43c   : > { %v3250_v31 = vpop.f32.mrf.mxu0 }
 0x43d   : > { %v1561_v12 = vmax.f32 %v1559_v46, %v3250_v31 }
 0x43e   : > { %v3256_v45 = vpop.f32.mrf.mxu0 }
 0x43f   : > { %v1525_v47 = vmax.f32 %v1523_v50, %v3256_v45 }
 0x440   : > { %v3262_v25 = vpop.f32.mrf.mxu0 }
 0x441   : > { %v1562_v21 = vmax.f32 %v1560_v28, %v3262_v25 }
 0x442   : > { %v3268_v33 = vpop.f32.mrf.mxu0 }
 0x443   : > { %v1526_v1 = vmax.f32 %v1524_v54, %v3268_v33 }
 0x444   : > { %v3274_v20 = vpop.f32.mrf.mxu0 }
 0x445   : > { %v1563_v58 = vmax.f32 %v1561_v12, %v3274_v20 }
 0x446   : > { %v3280_v15 = vpop.f32.mrf.mxu0 }
 0x447   : > { %v1527_v62 = vmax.f32 %v1525_v47, %v3280_v15 }
 0x448   : > { %v3286_v59 = vpop.f32.mrf.mxu0 }
 0x44a   : > { %v3292_v5 = vpop.f32.mrf.mxu0 }
 0x44b   : > { %3756 = vst [vmem:[#allocation7_spill] sm:$0xff] %v3292_v5  ;;  %v1528_v13 = vmax.f32 %v1526_v1, %v3292_v5  ;;  %v1564_v1 = vmax.f32 %v1562_v21, %v3286_v59 }
 0x44c   : > { %v3298_v61 = vpop.f32.mrf.mxu0 }
 0x44d   : > { %v1565_v46 = vmax.f32 %v1563_v58, %v3298_v61 }
 0x44e   : > { %v3304_v56 = vpop.f32.mrf.mxu0 }
 0x44f   : > { %v1529_v50 = vmax.f32 %v1527_v62, %v3304_v56 }
 0x450   : > { %v3310_v42 = vpop.f32.mrf.mxu0 }
 0x451   : > { %v1566_v12 = vmax.f32 %v1564_v1, %v3310_v42 }
 0x452   : > { %v3316_v49 = vpop.f32.mrf.mxu0 }
 0x453   : > { %v1530_v54 = vmax.f32 %v1528_v13, %v3316_v49 }
 0x454   : > { %v3322_v38 = vpop.f32.mrf.mxu0 }
 0x455   : > { %v1567_v11 = vmax.f32 %v1565_v46, %v3322_v38  ;;  %v1531_v41 = vmax.f32 %v1529_v50, %v1530_v54 }
 0x457   : > { %v1568_v55 = vmax.f32 %v1566_v12, %v1567_v11  ;;  %v1532_v40 = vrot.slane %v1531_v41, 4 }
 0x459   : > { %v1569_v47 = vrot.slane %v1568_v55, 4  ;;  %v1533_v51 = vmax.f32 %v1531_v41, %v1532_v40 }
 0x45b   : > { %v1570_v13 = vmax.f32 %v1568_v55, %v1569_v47  ;;  %v1534_v26 = vrot.slane %v1533_v51, 2 }
 0x45d   : > { %v1571_v28 = vrot.slane %v1570_v13, 2  ;;  %v1535_v37 = vmax.f32 %v1533_v51, %v1534_v26 }
 0x45f   : > { %v1572_v58 = vmax.f32 %v1570_v13, %v1571_v28  ;;  %v1536_v27 = vrot.slane %v1535_v37, 1 }
 0x461   : > { %v1573_v0 = vrot.slane %v1572_v58, 1  ;;  %v3328_v5 = vmax.f32 %v1535_v37, %v1536_v27 }
 0x463   : > { %v3330_v62 = vmax.f32 %v1572_v58, %v1573_v0  ;;  %v1619_v54 = vsub.f32 %v3224_v30, %v3328_v5  ;;  %v1621_v21 = vsub.f32 %v3228_v22, %v3328_v5  ;;  %v1623_v41 = vsub.f32 %v3232_v35, %v3328_v5 }
 0x464   : > { %v1625_v55 = vsub.f32 %v3243_v24, %v3328_v5  ;;  %v1627_v51 = vsub.f32 %v3256_v45, %v3328_v5  ;;  %v1629_v37 = vsub.f32 %v3268_v33, %v3328_v5  ;;  %v1599_v1 = vsub.f32 %v3184_v18, %v3328_v5 }
 0x465   : > { %v1624_v40 = vsub.f32 %v3236_v29, %v3330_v62  ;;  %v1626_v26 = vsub.f32 %v3250_v31, %v3330_v62  ;;  %v1628_v30 = vsub.f32 %v3262_v25, %v3330_v62  ;;  %v1630_v0 = vsub.f32 %v3274_v20, %v3330_v62 }
 0x466   : > { %v3352_v22 = vpack.c.bf16 %v1621_v21, %v1619_v54  ;;  %v3354_v27 = vpack.c.bf16 %v1625_v55, %v1623_v41  ;;  %v3356_v45 = vpack.c.bf16 %v1629_v37, %v1627_v51  ;;  %v1604_v29 = vsub.f32 %v3194_v34, %v3330_v62 }
 0x467   : > { %v3358_v35 = vpack.c.bf16 %v1626_v26, %v1624_v40  ;;  %v3360_v33 = vpack.c.bf16 %v1630_v0, %v1628_v30  ;;  %v1606_v31 = vsub.f32 %v3198_v10, %v3330_v62  ;;  %v1603_v25 = vsub.f32 %v3192_v16, %v3328_v5 }
 0x468   : > { %v1605_v20 = vsub.f32 %v3196_v43, %v3328_v5  ;;  %v1600_v24 = vsub.f32 %v3186_v14, %v3330_v62  ;;  %v1602_v46 = vsub.f32 %v3190_v44, %v3330_v62  ;;  %v1601_v34 = vsub.f32 %v3188_v19, %v3328_v5 }
 0x469   : > { %v1654_v50 = vpack.c.bf16 %v1606_v31, %v1604_v29  ;;  %v1596_v16 = vsub.f32 %v3178_v57, %v3330_v62  ;;  %v1598_v43 = vsub.f32 %v3182_v63, %v3330_v62  ;;  %v1595_v14 = vsub.f32 %v3176_v39, %v3328_v5  ;;  %v3757_v29 = vld [vmem:[#allocation24_spill] sm:$0xff] }
 0x46a   : > { %v1653_v10 = vpack.c.bf16 %v1605_v20, %v1603_v25  ;;  %v1652_v11 = vpack.c.bf16 %v1602_v46, %v1600_v24  ;;  %v1597_v44 = vsub.f32 %v3180_v9, %v3328_v5  ;;  %v1651_v47 = vpack.c.bf16 %v1601_v34, %v1599_v1 }
 0x46b   : > { %v1717_v12 = vmul.bf16 1069105081, %v1654_v50  ;;  %v1592_v19 = vsub.f32 %v3170_v23, %v3330_v62  ;;  %v1594_v13 = vsub.f32 %v3174_v36, %v3330_v62  ;;  %v1650_v57 = vpack.c.bf16 %v1598_v43, %v1596_v16  ;;  %v3760_v50 = vld [vmem:[#allocation21_spill] sm:$0xff]  ;;  %v3761_v43 = vld [vmem:[#allocation27_spill] sm:$0xff] }
 0x46c   : > { %v1714_v18 = vmul.bf16 1069105081, %v1653_v10  ;;  %v1711_v28 = vmul.bf16 1069105081, %v1652_v11  ;;  %v1591_v63 = vsub.f32 %v3168_v53, %v3328_v5  ;;  %v1593_v58 = vsub.f32 %v3172_v60, %v3328_v5 }
 0x46d   : > { %2324 = vpow.bf16 %v1717_v12  ;;  %v1588_v39 = vsub.f32 %v3162_v2, %v3330_v62  ;;  %v1649_v9 = vpack.c.bf16 %v1597_v44, %v1595_v14  ;;  %v1708_v54 = vmul.bf16 1069105081, %v1651_v47  ;;  %v3762_v12 = vld [vmem:[#allocation26_spill] sm:$0xff] }
 0x46e   : > { %2326 = vpow.bf16 %v1714_v18  ;;  %v1590_v23 = vsub.f32 %v3166_v6, %v3330_v62  ;;  %v1648_v21 = vpack.c.bf16 %v1594_v13, %v1592_v19  ;;  %v1705_v36 = vmul.bf16 1069105081, %v1650_v57 }
 0x46f   : > { %2328 = vpow.bf16 %v1711_v28  ;;  %v1587_v41 = vsub.f32 %v3160_v32, %v3328_v5  ;;  %v1589_v53 = vsub.f32 %v3164_v52, %v3328_v5  ;;  %v1584_v60 = vsub.f32 %v3154_v7, %v3330_v62 }
 0x470   : > { %v1647_v55 = vpack.c.bf16 %v1593_v58, %v1591_v63  ;;  %v1702_v2 = vmul.bf16 1069105081, %v1649_v9  ;;  %2330 = vpow.bf16 %v1708_v54  ;;  %v1586_v51 = vsub.f32 %v3158_v3, %v3330_v62 }
 0x471   : > { %v1646_v37 = vpack.c.bf16 %v1590_v23, %v1588_v39  ;;  %v1699_v6 = vmul.bf16 1069105081, %v1648_v21  ;;  %2332 = vpow.bf16 %v1705_v36  ;;  %v1583_v40 = vsub.f32 %v3152_v48, %v3328_v5  ;;  %v3758_v48 = vld [vmem:[#allocation50_spill] sm:$0xff] }
 0x472   : > { %v1585_v32 = vsub.f32 %v3156_v8, %v3328_v5  ;;  %v1580_v52 = vsub.f32 %v3138_v17, %v3330_v62  ;;  %v1645_v26 = vpack.c.bf16 %v1589_v53, %v1587_v41  ;;  %v1696_v7 = vmul.bf16 1069105081, %v1647_v55  ;;  %v3759_v8 = vld [vmem:[#allocation30_spill] sm:$0xff]  ;;  %v3763_v53 = vld [vmem:[#allocation7_spill] sm:$0xff] }
 0x473   : > { %2334 = vpow.bf16 %v1702_v2  ;;  %v1582_v30 = vsub.f32 %v3150_v4, %v3330_v62  ;;  %v1644_v0 = vpack.c.bf16 %v1586_v51, %v1584_v60  ;;  %v1693_v3 = vmul.bf16 1069105081, %v1646_v37 }
 0x474   : > { %2336 = vpow.bf16 %v1699_v6  ;;  %v1579_v31 = vsub.f32 %v3757_v29, %v3328_v5  ;;  %v1581_v25 = vsub.f32 %v3758_v48, %v3328_v5  ;;  %v1576_v20 = vsub.f32 %v3759_v8, %v3330_v62  ;;  %v3766_v48 = vld [vmem:[#allocation41_spill] sm:$0xff] }
 0x475   : > { %v1643_v24 = vpack.c.bf16 %v1585_v32, %v1583_v40  ;;  %v1690_v17 = vmul.bf16 1069105081, %v1645_v26  ;;  %2338 = vpow.bf16 %v1696_v7  ;;  %v1578_v1 = vsub.f32 %v3760_v50, %v3330_v62  ;;  %v3764_v26 = vld [vmem:[#allocation13_spill] sm:$0xff] }
 0x476   : > { %v1642_v4 = vpack.c.bf16 %v1582_v30, %v1580_v52  ;;  %v1687_v34 = vmul.bf16 1069105081, %v1644_v0  ;;  %2340 = vpow.bf16 %v1693_v3  ;;  %v1575_v11 = vsub.f32 %v3761_v43, %v3328_v5  ;;  %v3765_v30 = vld [vmem:[#allocation10_spill] sm:$0xff] }
 0x477   : > { %v1577_v14 = vsub.f32 %v3762_v12, %v3328_v5  ;;  %v1641_v44 = vpack.c.bf16 %v1581_v25, %v1579_v31  ;;  %v1636_v47 = vsub.f32 %v3310_v42, %v3330_v62  ;;  %v1638_v18 = vsub.f32 %v3322_v38, %v3330_v62 }
 0x478   : > { %v1684_v19 = vmul.bf16 1069105081, %v1643_v24  ;;  %2342 = vpow.bf16 %v1690_v17  ;;  %v1640_v13 = vpack.c.bf16 %v1578_v1, %v1576_v20  ;;  %v1681_v57 = vmul.bf16 1069105081, %v1642_v4  ;;  %v3767_v20 = vld [vmem:[#allocation8_spill] sm:$0xff]  ;;  %v3768_v1 = vld [vmem:[#allocation39_spill] sm:$0xff] }
 0x479   : > { %2344 = vpow.bf16 %v1687_v34  ;;  %v1635_v58 = vsub.f32 %v3304_v56, %v3328_v5  ;;  %v1637_v39 = vsub.f32 %v3316_v49, %v3328_v5  ;;  %v1670_v9 = vpack.c.bf16 %v1638_v18, %v1636_v47  ;;  %v3769_v34 = vld [vmem:[#allocation14_spill] sm:$0xff]  ;;  %v3772_v18 = vld [vmem:[#allocation43_spill] sm:$0xff] }
 0x47a   : > { %v1639_v42 = vpack.c.bf16 %v1577_v14, %v1575_v11  ;;  %v1678_v54 = vmul.bf16 1069105081, %v1641_v44  ;;  %2346 = vpow.bf16 %v1684_v19  ;;  %v1632_v38 = vsub.f32 %v3286_v59, %v3330_v62  ;;  %v3771_v11 = vld [vmem:[#allocation42_spill] sm:$0xff] }
 0x47b   : > { %v2325_v46 = vpop.eup %2324  ;;  %v1634_v23 = vsub.f32 %v3298_v61, %v3330_v62  ;;  %v1675_v21 = vmul.bf16 1069105081, %v1640_v13  ;;  %2348 = vpow.bf16 %v1681_v57  ;;  %v1669_v56 = vpack.c.bf16 %v1637_v39, %v1635_v58  ;;  %v3773_v13 = vld [vmem:[#allocation40_spill] sm:$0xff]  ;;  %v3775_v39 = vld [vmem:[#allocation46_spill] sm:$0xff] }
 0x47c   : > { %v2327_v10 = vpop.eup %2326  ;;  %1777 = vmatprep.subr.bf16.mxu1 %v2325_v46  ;;  %v1631_v49 = vsub.f32 %v3280_v15, %v3328_v5  ;;  %v1633_v60 = vsub.f32 %v3763_v53, %v3328_v5  ;;  %v1672_v55 = vmul.bf16 1069105081, %v1639_v42  ;;  %2350 = vpow.bf16 %v1678_v54 }
 0x47d   : > { %v2329_v16 = vpop.eup %2328  ;;  %1778 = vmatpush1.bf16.msra.mxu1 %v2327_v10  ;;  %v1765_v2 = vmul.bf16 1069105081, %v1670_v9  ;;  %v1668_v59 = vpack.c.bf16 %v1634_v23, %v1632_v38  ;;  %2352 = vpow.bf16 %v1675_v21  ;;  %v1762_v37 = vmul.bf16 1069105081, %v1669_v56  ;;  %v3776_v21 = vld [vmem:[#allocation47_spill] sm:$0xff] }
 0x47e   : > { %1779 = vmatprep.subr.bf16.mxu1 %v2329_v16  ;;  %v2331_v28 = vpop.eup %2330  ;;  %v1667_v6 = vpack.c.bf16 %v1633_v60, %v1631_v49  ;;  %2354 = vpow.bf16 %v1672_v55  ;;  %v1620_v7 = vsub.f32 %v3764_v26, %v3330_v62  ;;  %v1622_v0 = vsub.f32 %v3765_v30, %v3330_v62 }
 0x47f   : > { %v2333_v63 = vpop.eup %2332  ;;  %2356 = vpow.bf16 %v1765_v2  ;;  %v1759_v40 = vmul.bf16 1069105081, %v1668_v59  ;;  %v1753_v3 = vmul.bf16 1069105081, %v3360_v33  ;;  %v1616_v25 = vsub.f32 %v3766_v48, %v3330_v62 }
 0x480   : > { %2358 = vpow.bf16 %v1762_v37  ;;  %v1756_v52 = vmul.bf16 1069105081, %v1667_v6  ;;  %v1750_v8 = vmul.bf16 1069105081, %v3356_v45  ;;  %v1618_v24 = vsub.f32 %v3767_v20, %v3330_v62  ;;  %v3770_v45 = vld [vmem:[#allocation45_spill] sm:$0xff] }
 0x481   : > { %1780 = vmatpush1.bf16.msra.mxu1 %v2331_v28  ;;  %v2335_v36 = vpop.eup %2334  ;;  %2360 = vpow.bf16 %v1759_v40  ;;  %v1662_v17 = vpack.c.bf16 %v1622_v0, %v1620_v7  ;;  %v1747_v46 = vmul.bf16 1069105081, %v3358_v35  ;;  %v1615_v4 = vsub.f32 %v3768_v1, %v3328_v5  ;;  %v3774_v28 = vld [vmem:[#allocation49_spill] sm:$0xff] }
 0x482   : > { %1781 = vmatprep.subr.bf16.mxu1 %v2333_v63  ;;  %v2337_v41 = vpop.eup %2336  ;;  %2362 = vpow.bf16 %v1756_v52  ;;  %v1617_v10 = vsub.f32 %v3769_v34, %v3328_v5  ;;  %v1612_v16 = vsub.f32 %v3770_v45, %v3330_v62  ;;  %v1744_v43 = vmul.bf16 1069105081, %v3354_v27  ;;  %v3783_v34 = vld [vmem:[#allocation22_spill] sm:$0xff] }
 0x483   : > { %v2339_v51 = vpop.eup %2338  ;;  %2364 = vpow.bf16 %v1753_v3  ;;  %v1614_v35 = vsub.f32 %v3771_v11, %v3330_v62  ;;  %v1660_v12 = vpack.c.bf16 %v1618_v24, %v1616_v25  ;;  %v1741_v14 = vmul.bf16 1069105081, %v1662_v17  ;;  %v3778_v3 = vld [vmem:[#allocation37_spill] sm:$0xff] }
 0x484   : > { %v2341_v61 = vpop.eup %2340  ;;  %2366 = vpow.bf16 %v1750_v8  ;;  %v1611_v19 = vsub.f32 %v3772_v18, %v3328_v5  ;;  %v1613_v57 = vsub.f32 %v3773_v13, %v3328_v5  ;;  %v1608_v27 = vsub.f32 %v3774_v28, %v3330_v62  ;;  %v3785_v18 = vld [vmem:[#allocation52_spill] sm:$0xff]  ;;  %v2254_v13 = vld [vmem:[%s3573_s3] sm:$0xff]   ;;  %v3788_v28 = vld [vmem:[#allocation53_spill] sm:$0xff] }
 0x485   : > { %1782 = vmatpush1.bf16.msra.mxu1 %v2335_v36  ;;  %2368 = vpow.bf16 %v1747_v46  ;;  %v1659_v63 = vpack.c.bf16 %v1617_v10, %v1615_v4  ;;  %v1738_v58 = vmul.bf16 1069105081, %v3352_v22  ;;  %v1610_v9 = vsub.f32 %v3775_v39, %v3330_v62 }
 0x486   : > { %1783 = vmatprep.subr.bf16.mxu1 %v2337_v41  ;;  %v2343_v32 = vpop.eup %2342  ;;  %2370 = vpow.bf16 %v1744_v43  ;;  %v1658_v42 = vpack.c.bf16 %v1614_v35, %v1612_v16  ;;  %v1735_v54 = vmul.bf16 1069105081, %v1660_v12  ;;  %v1607_v36 = vsub.f32 %v3776_v21, %v3328_v5  ;;  %v3777_v41 = vld [vmem:[#allocation44_spill] sm:$0xff] }
 0x487   : > { %v2345_v15 = vpop.eup %2344  ;;  %2372 = vpow.bf16 %v1741_v14  ;;  %v1609_v56 = vsub.f32 %v3777_v41, %v3328_v5  ;;  %v1657_v49 = vpack.c.bf16 %v1613_v57, %v1611_v19  ;;  %v1732_v53 = vmul.bf16 1069105081, %v1659_v63  ;;  %v3787_v57 = vld [vmem:[#allocation51_spill] sm:$0xff]  ;;  %v2255_v63 = vld [vmem:[%s3573_s3 + $0x8] sm:$0xff]  }
 0x488   : > { %v2347_v29 = vpop.eup %2346  ;;  %2374 = vpow.bf16 %v1738_v58  ;;  %v1656_v22 = vpack.c.bf16 %v1610_v9, %v1608_v27  ;;  %v1729_v60 = vmul.bf16 1069105081, %v1658_v42  ;;  %v3781_v48 = vmov 1065369472   ;;  %v1871_v58 = vpop.permute.xlu0 %1870  ;;  %v1977_v9 = vld [vmem:[%s2555_s15] sm:$0xff] }
 0x489   : > { %1784 = vmatpush1.bf16.msra.mxu1 %v2339_v51  ;;  %v2349_v31 = vpop.eup %2348  ;;  %2376 = vpow.bf16 %v1735_v54  ;;  %v1655_v2 = vpack.c.bf16 %v1609_v56, %v1607_v36  ;;  %v1726_v59 = vmul.bf16 1069105081, %v1657_v49  ;;  %v3782_v25 = vmov 0   ;;  %v1876_v36 = vpop.permute.xlu1 %1875  ;;  %v1979_v56 = vld [vmem:[%s2555_s15 + $0x10] sm:$0xff] }
 0x48a   : > { %1785 = vmatprep.subr.bf16.mxu1 %v2341_v61  ;;  %v2351_v50 = vpop.eup %2350  ;;  %2378 = vpow.bf16 %v1732_v53  ;;  %v1723_v51 = vmul.bf16 1069105081, %v1656_v22  ;;  %v3789_v27 = vpack.c.bf16 %v3787_v57, %v3788_v28 }
 0x48b   : > { %v2353_v33 = vpop.eup %2352  ;;  %2380 = vpow.bf16 %v1729_v60  ;;  %v1720_v5 = vmul.bf16 1069105081, %v1655_v2  ;;  %v1980_v60 = vld [vmem:[%s2555_s15 + $0x18] sm:$0xff] }
 0x48c   : > { %v2355_v44 = vpop.eup %2354  ;;  %2382 = vpow.bf16 %v1726_v59  ;;  %v1881_v2 = vpop.permute.xlu0 %1880 }
 0x48d   : > { %1786 = vmatpush1.bf16.msra.mxu1 %v2343_v32  ;;  %v2357_v47 = vpop.eup %2356  ;;  %2384 = vpow.bf16 %v1723_v51  ;;  %v1981_v51 = vld [vmem:[%s2555_s15 + $0x20] sm:$0xff] }
 0x48e   : > { %1787 = vmatprep.subr.bf16.mxu1 %v2345_v15  ;;  %v2359_v38 = vpop.eup %2358  ;;  %2386 = vpow.bf16 %v1720_v5 }
 0x48f   : > { %v2361_v23 = vpop.eup %2360 }
 0x490   : > { %v2363_v62 = vpop.eup %2362 }
 0x491   : > { %1788 = vmatpush1.bf16.msra.mxu1 %v2347_v29  ;;  %v2365_v55 = vpop.eup %2364  ;;  %v3779_v29 = vld [vmem:[#allocation38_spill] sm:$0xff] }
 0x492   : > { %1789 = vmatprep.subr.bf16.mxu1 %v2349_v31  ;;  %v2367_v61 = vpop.eup %2366  ;;  %v3780_v31 = vpack.c.bf16 %v3778_v3, %v3779_v29  ;;  %v1984_v3 = vld [vmem:[%s2555_s15 + $0x38] sm:$0xff] }
 0x493   : > { %v2369_v37 = vpop.eup %2368 }
 0x494   : > { %v2371_v6 = vpop.eup %2370 }
 0x495   : > { %1790 = vmatpush1.bf16.msra.mxu1 %v2351_v50  ;;  %v2373_v40 = vpop.eup %2372 }
 0x496   : > { %1791 = vmatprep.subr.bf16.mxu1 %v2353_v33  ;;  %v2375_v32 = vpop.eup %2374 }
 0x497   : > { %v2377_v15 = vpop.eup %2376 }
 0x498   : > { %v2379_v52 = vpop.eup %2378 }
 0x499   : > { %1792 = vmatpush1.bf16.msra.mxu1 %v2355_v44  ;;  %v2381_v26 = vpop.eup %2380 }
 0x49a   : > { %1793 = vmatprep.subr.bf16.mxu1 %v2357_v47  ;;  %v2383_v7 = vpop.eup %2382  ;;  %v3784_v47 = vld [vmem:[#allocation48_spill] sm:$0xff] }
 0x49b   : > { %v2385_v30 = vpop.eup %2384  ;;  %v3786_v19 = vpack.c.bf16 %v3784_v47, %v3785_v18 }
 0x49c   : > { %v2387_v0 = vpop.eup %2386 }
 0x49d   : > { %1794 = vmatpush2.bf16.msra.mxu1 %v2359_v38  ;;  %v1978_v38 = vld [vmem:[%s2555_s15 + $0x8] sm:$0xff] }
 0x49e   : > { %1795 = vmatprep.subr.bf16.mxu1 %v2361_v23 }
 0x4a1   : > { %1796 = vmatpush2.bf16.msra.mxu1 %v2363_v62 }
 0x4a2   : > { %1797 = vmatprep.subr.bf16.mxu1 %v2365_v55 }
 0x4a5   : > { %1798 = vmatpush2.bf16.msra.mxu1 %v2367_v61 }
 0x4a6   : > { %1799 = vmatprep.subr.bf16.mxu1 %v2369_v37 }
 0x4a9   : > { %1800 = vmatpush2.bf16.msra.mxu1 %v2371_v6  ;;  %v1982_v6 = vld [vmem:[%s2555_s15 + $0x28] sm:$0xff] }
 0x4aa   : > { %1801 = vmatprep.subr.bf16.mxu1 %v2373_v40 }
 0x4ad   : > { %1802 = vmatpush2.bf16.msra.mxu1 %v2375_v32 }
 0x4ae   : > { %1803 = vmatprep.subr.bf16.mxu1 %v2377_v15  ;;  %v1886_v15 = vpop.permute.xlu1 %1885 }
 0x4b1   : > { %1804 = vmatpush2.bf16.msra.mxu1 %v2379_v52 }
 0x4b2   : > { %1805 = vmatprep.subr.bf16.mxu1 %v2381_v26  ;;  %v1983_v26 = vld [vmem:[%s2555_s15 + $0x30] sm:$0xff]  ;;  %s2392_s15 = scalar_lea.vmem %s3524_s17, 1024 }
 0x4b3   : > { %p2393_p11 = scmp.ne.s32.totalorder %s3524_s17, %s2392_s15  ;;  %p2400_p1 = scmp.lt.s32.totalorder %s2398_s7, %s2392_s15 }
 0x4b5   : > { %1806 = vmatpush2.bf16.msra.mxu1 %v2383_v7  ;;  %p2394_p12 = pnand %p2393_p11, %p2527_p5  ;;  %p2401_p2 = por %p2400_p1, %p2399_p0 }
 0x4b6   : > { %1807 = vmatprep.subr.bf16.mxu1 %v2385_v30 }
 0x4b7   : > { %p2395_p13 = pneg %p2394_p12 }
 0x4b9   : > { %1808 = vmatpush2.bf16.msra.mxu1 %v2387_v0  ;;  %p2402_p3 = pnand %p2401_p2, %p2395_p13 }
 0x4bc   : > { %1810 = vmatmul.mubr.bf16.vlgmr.msra.gmra.mxu1 %v3780_v31 }
 0x4bd   : > { %1819 = vmatprep.mubr.bf16.mxu1 %v3781_v48 }
 0x4c4   : > { %1820 = vmatmul.mubr.bf16.gmra.mxu1 %v3781_v48 }
 0x4c5   : > { %1956 = vmatprep.mubr.bf16.mxu1 %v3782_v25 }
 0x57c   : > { %v1811_v8 = vpop.f32.mrf.mxu1 }
 0x57e   : > { %v1813_v20 = vpop.f32.mrf.mxu1 }
 0x580   : > { %v1815_v24 = vpop.f32.mrf.mxu1 }
 0x582   : > { %v1817_v17 = vpop.f32.mrf.mxu1 }
 0x584   : > { %v1821_v46 = vpop.f32.mrf.mxu1 }
 0x585   : > { %2388 = vrcp.f32 %v1821_v46 }
 0x586   : > { %v1823_v50 = vpop.f32.mrf.mxu1 }
 0x587   : > { %2390 = vrcp.f32 %v1823_v50 }
 0x588   : > { %v1825_v33 = vpop.f32.mrf.mxu1 }
 0x58a   : > { %v1826_v1 = vpop.f32.mrf.mxu1 }
 0x592   : > { %v2389_v4 = vpop.eup %2388 }
 0x593   : > { %v1833_v10 = vrot.slane %v2389_v4, %v3783_v34 }
 0x594   : > { %v2391_v45 = vpop.eup %2390 }
 0x595   : > { %v1837_v16 = vrot.slane %v2391_v45, %v3783_v34  ;;  %v1838_v43 = vmul.f32 %v1833_v10, %v1811_v8  ;;  %v1840_v11 = vmul.f32 %v1833_v10, %v1815_v24 }
 0x597   : > { %v1839_v35 = vmul.f32 %v1837_v16, %v1813_v20  ;;  %v1841_v12 = vmul.f32 %v1837_v16, %v1817_v17  ;;  %v2201_v44 = vpack.c.bf16 %v1840_v11, %v1838_v43 }
 0x599   : > { %v2202_v14 = vpack.c.bf16 %v1841_v12, %v1839_v35 }
 0x59b   : > { %1936 = vmatprep.subr.bf16.mxu1 %v2202_v14 }
 0x59c   : > { %1937 = vmatpush1.bf16.msra.mxu1 %v2201_v44 }
 0x59d   : > { %1938 = vmatprep.subr.bf16.mxu1 %v3786_v19 }
 0x5a0   : > { %1939 = vmatpush1.bf16.msra.mxu1 %v3789_v27 }
 0x5a3   : > { %2162 = vmatmul.mubr.msk.bf16.vlgmr.msra.gmra.mxu1 %vm351_vm0, %v2254_v13 }
 0x5a4   : > { %1966 = vmatprep.mubr.bf16.mxu1 %v3782_v25 }
 0x5ab   : > { %2163 = vmatmul.mubr.msk.bf16.gmra.mxu1 %vm351_vm0, %v2255_v63 }
 0x663   : > { %v1958_v39 = vpop.f32.mrf.mxu1 }
 0x664   : > { %v1959_v42 = vadd.f32 %v1958_v39, %v1871_v58 }
 0x665   : > { %v1960_v54 = vpop.f32.mrf.mxu1 }
 0x666   : > { %v1985_v23 = vadd.f32 %v1977_v9, %v1959_v42  ;;  %v1961_v21 = vadd.f32 %v1960_v54, %v1871_v58 }
 0x667   : > { %v1962_v41 = vpop.f32.mrf.mxu1 }
 0x668   : > { %1993 = vst [vmem:[%s3504_s14] sm:$0xff] %v1985_v23  ;;  %v1986_v49 = vadd.f32 %v1978_v38, %v1961_v21  ;;  %v1963_v53 = vadd.f32 %v1962_v41, %v1876_v36 }
 0x669   : > { %v1964_v22 = vpop.f32.mrf.mxu1 }
 0x66a   : > { %1994 = vst [vmem:[%s3504_s14 + $0x8] sm:$0xff] %v1986_v49  ;;  %v1987_v62 = vadd.f32 %v1979_v56, %v1963_v53  ;;  %v1965_v55 = vadd.f32 %v1964_v22, %v1876_v36 }
 0x66b   : > { %v1968_v59 = vpop.f32.mrf.mxu1 }
 0x66c   : > { %1995 = vst [vmem:[%s3504_s14 + $0x10] sm:$0xff] %v1987_v62  ;;  %v1988_v61 = vadd.f32 %v1980_v60, %v1965_v55  ;;  %v1969_v37 = vadd.f32 %v1968_v59, %v1881_v2 }
 0x66d   : > { %v1970_v5 = vpop.f32.mrf.mxu1 }
 0x66e   : > { %1996 = vst [vmem:[%s3504_s14 + $0x18] sm:$0xff] %v1988_v61  ;;  %v1989_v40 = vadd.f32 %v1981_v51, %v1969_v37  ;;  %v1971_v32 = vadd.f32 %v1970_v5, %v1881_v2 }
 0x66f   : > { %v1972_v52 = vpop.f32.mrf.mxu1 }
 0x670   : > { %1997 = vst [vmem:[%s3504_s14 + $0x20] sm:$0xff] %v1989_v40  ;;  %v1990_v7 = vadd.f32 %v1982_v6, %v1971_v32  ;;  %v1973_v30 = vadd.f32 %v1972_v52, %v1886_v15 }
 0x671   : > { %v1974_v0 = vpop.f32.mrf.mxu1 }
 0x672   : > { %1998 = vst [vmem:[%s3504_s14 + $0x28] sm:$0xff] %v1990_v7  ;;  %v1991_v29 = vadd.f32 %v1983_v26, %v1973_v30  ;;  %v1975_v31 = vadd.f32 %v1974_v0, %v1886_v15 }
 0x674   : > { %1999 = vst [vmem:[%s3504_s14 + $0x30] sm:$0xff] %v1991_v29  ;;  %v1992_v48 = vadd.f32 %v1984_v3, %v1975_v31 }
 0x676   : > { %2000 = vst [vmem:[%s3504_s14 + $0x38] sm:$0xff] %v1992_v48 }
 0x677   : > { %2405 = shalt.err (!%p2402_p3)
}
 0x678   : > { %s2406_s8 = scalar_lea.hbm %s3522_s26, 1024  ;;  %s2410_s11 = scalar_lea.hbm %s3575_s5, 2048 }
 0x679   : > { %p2407_p4 = scmp.ne.s32.totalorder %s3522_s26, %s2406_s8  ;;  %p2411_p9 = scmp.lt.s32.totalorder %s3522_s26, %s3575_s5 }
 0x67a   : > { %p2412_p10 = scmp.lt.s32.totalorder %s2410_s11, %s2406_s8 }
 0x67b   : > { %p2408_p7 = pnand %p2407_p4, %p2527_p5 }
 0x67c   : > { %p2413_p11 = por %p2412_p10, %p2411_p9 }
 0x67d   : > { %p2409_p8 = pneg %p2408_p7 }
 0x67f   : > { %p2414_p12 = pnand %p2413_p11, %p2409_p8 }
 0x681   : > { %2417 = shalt.err (!%p2414_p12)
}
 0x682   : > { %s2457_s14 = smov 256   ;;  %s2458_s16 = smov 16  }
 0x683   : > { %2203 = dma.vmem_to_hbm [thread:$0]  (%p2527_p5), %s3524_s17, 1024, %s3522_s26, %s3530_s22, %s2457_s14, %s2457_s14, %s2458_s16  }
 0x684 PF: > { %p2209_p13 = scmp.ge.s32.totalorder %s2452_s21, 2  ;;  %s2030_s23 = sand.u32 1, %s2440_s18  }
 0x685   : > { %s2031_s25 = scalar_lea.sflag [#allocation5], %s2030_s23 }
 0x686   : > { %p2206_p0 = pnand %p2209_p13, %p2531_p6 }
 0x688   : > { %p2207_p1 = pneg %p2206_p0 }
 0x68a   : > { %2435 = dma.done.wait (%p2207_p1), %s2031_s25, 1024  }
 0x68b   : > { %2437 = vsyncadd (%p2207_p1), %s2031_s25, 4294966272  ;;  %p15_p2 = scmp.ge.s32.totalorder %s2514_s24, 4   ;;  %s3790_s18 = smov %s2444_s19 }
 0x68c   : > { %s3791_s19 = smov %s2448_s20  ;;  %s3792_s20 = smov %s2525_s27 }
 0x68d   : > { %s3793_s21 = smov %s2514_s24  ;;  %17 = sbr.rel (!%p15_p2) target bundleno = 3 (0x3), region = 75 }
 0x692   :  { %2036 = vsyncpa [#allocation5], 1 }
 0x693   :  { %2038 = vsyncpa [#allocation5 + $0x1], 1 }

// kernel: tpu_custom_call.1
= control target key start
LH: loop header
LB: loop body
LE: loop exit
PB: predicated region body
PF: predicated region fallthrough
CT: control target
= control target key end

     0   :  { %10 = vsyncpa [#allocation5], 0  ;;  %s3570_s0 = inlined_call_operand.vmem [shape: f32[2,32,256], index: 0, kind: input, shape index: {}]   ;;  %s3571_s1 = inlined_call_operand.vmem [shape: bf16[96,32], index: 1, kind: input, shape index: {}]   ;;  %s3572_s2 = inlined_call_operand.vmem [shape: f32[96,1], index: 2, kind: input, shape index: {}]   ;;  %s3573_s3 = inlined_call_operand.vmem [shape: bf16[32,32], index: 3, kind: input, shape index: {}]   ;;  %s3574_s4 = inlined_call_operand.vmem [shape: f32[32,1], index: 4, kind: input, shape index: {}]   ;;  %s3575_s5 = inlined_call_operand.hbm [shape: f32[2,32,256], index: 5, kind: output, shape index: {}]  }
   0x1   :  { %12 = vsyncpa [#allocation5 + $0x1], 0  ;;  %s2489_s18 = smov 0   ;;  %s2491_s19 = smov 0  }
   0x2   :  { %s2493_s20 = smov 0   ;;  %s2495_s21 = smov 0  }
   0x3 LB: > { %s2510_s22 = sadd.s32 4294967295, %s2452_s21   ;;  %s2077_s23 = sadd.s32 4294967294, %s2452_s21   ;;  %s2452_s21 = sphi %s2495_s21, %s3793_s21   ;;  %s2448_s20 = sphi %s2493_s20, %s3792_s20   ;;  %s2444_s19 = sphi %s2491_s19, %s3791_s19   ;;  %s2440_s18 = sphi %s2489_s18, %s3790_s18  }
   0x4   : > { %s2514_s24 = sadd.s32 1, %s2452_s21   ;;  %s135_s25 = sadd.s32 1, %s2448_s20 }
   0x5   : > { %s132_s26 = ssub.s32 %s2452_s21, %s2514_s24  ;;  %p145_p0 = scmp.ne.s32.totalorder %s2448_s20, %s2444_s19 }
   0x6   : > { %p133_p1 = scmp.eq.s32.totalorder %s132_s26, 0  ;;  %p146_p2 = scmp.eq.s32.totalorder %s2510_s22, 1 }
   0x7   : > { %p151_p3 = scmp.ne.s32.totalorder %s2444_s19, %s2440_s18  ;;  %p152_p4 = scmp.eq.s32.totalorder %s2077_s23, 1 }
   0x8   : > { %s2525_s27 = scalar_select %p133_p1, %s2448_s20, %s135_s25  }
   0x9   : > { %p2527_p5 = por %p146_p2, %p145_p0  ;;  %p2531_p6 = por %p152_p4, %p151_p3 }
   0xa   : > { %p2080_p7 = scmp.ge.s32.totalorder %s2452_s21, 1  ;;  %p190_p8 = scmp.lt.s32.totalorder %s2452_s21, 3 }
   0xc   : > { %p191_p9 = pnand %p2080_p7, %p190_p8 }
   0xe   : > { %194 = sbr.rel (%p191_p9) target bundleno = 1668 (0x684), region = 40 }
  0x13   : > { %p218_p10 = scmp.lt.s32.totalorder %s2510_s22, 1  ;;  %v3576_v0 = vmov 0   ;;  %v249_v1 = vld [vmem:[%s3572_s2] sm:$0xff]  ;;  %v250_v2 = vld [vmem:[%s3572_s2 + $0x8] sm:$0xff]  ;;  %vm351_vm0 = vcmask 261120   ;;  %v2250_v19 = vld [vmem:[%s3571_s1 + $0x10] sm:$0xff]  }
  0x14   : > { %402 = vmatprep.mubr.bf16.mxu0 %v3576_v0  ;;  %2247 = vset.pattern.permute.xlu1 %v3576_v0  ;;  %v253_v3 = vld [vmem:[%s3572_s2 + $0x20] sm:$0xff]  ;;  %v254_v4 = vld [vmem:[%s3572_s2 + $0x28] sm:$0xff]  ;;  %v2251_v20 = vld [vmem:[%s3571_s1 + $0x18] sm:$0xff]   ;;  %vm605_vm1 = vcmask 130048   ;;  %s215_s12 = sand.u32 1, %s2444_s19   ;;  %s2186_s16 = sshll.u32 %s2510_s22, 10 }
  0x15   : > { %s219_s30 = scalar_select %p218_p10, %s2510_s22, 1  ;;  %2246 = vset.pattern.permute.xlu0 %v3576_v0  ;;  %686 = vmatprep.mubr.bf16.mxu1 %v3576_v0  ;;  %v2248_v17 = vld [vmem:[%s3571_s1] sm:$0xff]   ;;  %v2249_v18 = vld [vmem:[%s3571_s1 + $0x8] sm:$0xff]   ;;  %v256_v51 = vld [vmem:[%s3572_s2 + $0x38] sm:$0xff] }
  0x16   : > { %263 = vperm.xlu1 %2247, %v249_v1   ;;  %283 = vperm.xlu0 %2246, %v253_v3   ;;  %v2252_v21 = vld [vmem:[%s3571_s1 + $0x20] sm:$0xff]   ;;  %v2253_v37 = vld [vmem:[%s3571_s1 + $0x28] sm:$0xff]   ;;  %v255_v52 = vld [vmem:[%s3572_s2 + $0x30] sm:$0xff]  ;;  %s2081_s13 = sshll.u32 %s215_s12, 6  ;;  %s3522_s26 = scalar_lea.hbm %s3575_s5, %s2186_s16 }
  0x17   : > { %s2169_s8 = sshll.u32 %s219_s30, 6  ;;  %v258_v53 = vld [vmem:[%s3572_s2 + $0x48] sm:$0xff]  ;;  %v257_v54 = vld [vmem:[%s3572_s2 + $0x40] sm:$0xff]  ;;  %v252_v55 = vld [vmem:[%s3572_s2 + $0x18] sm:$0xff]  ;;  %s3504_s14 = scalar_lea.vmem [#allocation4], %s2081_s13 }
  0x18   : > { %s2555_s15 = scalar_lea.vmem %s3570_s0, %s2169_s8  ;;  %v251_v56 = vld [vmem:[%s3572_s2 + $0x10] sm:$0xff]  ;;  %s2015_s17 = sshll.u32 %s3504_s14, 4  ;;  %s3524_s17 = int_to_ptr.vmem [resolvable:$true] %s2015_s17 }
  0x19   : > { %v230_v5 = vld [vmem:[%s2555_s15 + $0x28] sm:$0xff]  ;;  %v232_v6 = vld [vmem:[%s2555_s15 + $0x38] sm:$0xff]  ;;  %v229_v7 = vld [vmem:[%s2555_s15 + $0x20] sm:$0xff]  ;;  %s3530_s22 = scalar_lea.sflag [#allocation5], %s215_s12  ;;  %s2456_s30 = smov [#allocation4]  }
  0x1a   : > { %v236_v8 = vpack.c.bf16 %v232_v6, %v230_v5  ;;  %v231_v9 = vld [vmem:[%s2555_s15 + $0x30] sm:$0xff]  ;;  %v226_v10 = vld [vmem:[%s2555_s15 + $0x8] sm:$0xff]  ;;  %v228_v11 = vld [vmem:[%s2555_s15 + $0x18] sm:$0xff]  ;;  %268 = vperm.xlu1 %2247, %v250_v2   ;;  %288 = vperm.xlu0 %2246, %v254_v4   ;;  %s2396_s6 = sshll.u32 %s2456_s30, 4  ;;  %s2397_s6 = int_to_ptr.vmem [resolvable:$false] %s2396_s6 }
  0x1b   : > { %v235_v12 = vpack.c.bf16 %v231_v9, %v229_v7  ;;  %v234_v13 = vpack.c.bf16 %v228_v11, %v226_v10  ;;  %v225_v14 = vld [vmem:[%s2555_s15] sm:$0xff]  ;;  %v227_v15 = vld [vmem:[%s2555_s15 + $0x10] sm:$0xff]  ;;  %s2398_s7 = scalar_lea.vmem %s2397_s6, 2048  ;;  %p2399_p0 = scmp.lt.s32.totalorder %s3524_s17, %s2397_s6 }
  0x1c   : > { %382 = vmatprep.subr.bf16.mxu0 %v236_v8  ;;  %v233_v16 = vpack.c.bf16 %v227_v15, %v225_v14 }
  0x1d   : > { %383 = vmatpush1.bf16.msra.mxu0 %v235_v12 }
  0x1e   : > { %384 = vmatprep.subr.bf16.mxu0 %v234_v13 }
  0x21   : > { %385 = vmatpush1.bf16.msra.mxu0 %v233_v16 }
  0x24   : > { %2090 = vmatmul.mubr.msk.bf16.vlgmr.msra.gmra.mxu0 %vm351_vm0, %v2248_v17 }
  0x25   : > { %412 = vmatprep.mubr.bf16.mxu0 %v3576_v0 }
  0x2c   : > { %2091 = vmatmul.mubr.msk.bf16.gmra.mxu0 %vm351_vm0, %v2249_v18 }
  0x2d   : > { %422 = vmatprep.mubr.bf16.mxu0 %v3576_v0 }
  0x34   : > { %2092 = vmatmul.mubr.msk.bf16.gmra.mxu0 %vm351_vm0, %v2250_v19 }
  0x35   : > { %432 = vmatprep.mubr.bf16.mxu0 %v3576_v0 }
  0x3c   : > { %2093 = vmatmul.mubr.msk.bf16.gmra.mxu0 %vm351_vm0, %v2251_v20 }
  0x3d   : > { %442 = vmatprep.mubr.bf16.mxu0 %v3576_v0 }
  0x44   : > { %2094 = vmatmul.mubr.msk.bf16.gmra.mxu0 %vm351_vm0, %v2252_v21 }
  0x45   : > { %452 = vmatprep.mubr.bf16.mxu0 %v3576_v0 }
  0x4c   : > { %2095 = vmatmul.mubr.msk.bf16.gmra.mxu0 %vm351_vm0, %v2253_v37  ;;  %v260_v37 = vld [vmem:[%s3572_s2 + $0x58] sm:$0xff] }
  0x91   : > { %v264_v22 = vpop.permute.xlu1 %263  ;;  %v284_v38 = vpop.permute.xlu0 %283 }
  0x95   : > { %v269_v25 = vpop.permute.xlu1 %268  ;;  %v289_v42 = vpop.permute.xlu0 %288 }
  0xe4   : > { %v404_v23 = vpop.f32.mrf.mxu0 }
  0xe5   : > { %v405_v31 = vadd.f32 %v404_v23, %v264_v22 }
  0xe6   : > { %v406_v24 = vpop.f32.mrf.mxu0 }
  0xe7   : > { %v407_v29 = vadd.f32 %v406_v24, %v264_v22 }
  0xe8   : > { %v408_v26 = vpop.f32.mrf.mxu0 }
  0xe9   : > { %v409_v27 = vadd.f32 %v408_v26, %v269_v25 }
  0xea   : > { %v410_v28 = vpop.f32.mrf.mxu0 }
  0xeb   : > { %v411_v30 = vadd.f32 %v410_v28, %v269_v25  ;;  %v2189_v35 = vpack.c.bf16 %v409_v27, %v405_v31 }
  0xec   : > { %v2593_v32 = vpop.f32.mrf.mxu0 }
  0xed   : > { %3637 = vst [vmem:[#allocation7_spill] sm:$0xff] %v2593_v32  ;;  %v2190_v33 = vpack.c.bf16 %v411_v30, %v407_v29 }
  0xee   : > { %v2595_v34 = vpop.f32.mrf.mxu0 }
  0xef   : > { %3638 = vst [vmem:[#allocation8_spill] sm:$0xff] %v2595_v34  ;;  %668 = vmatprep.subr.bf16.mxu1 %v2190_v33 }
  0xf0   : > { %v2597_v36 = vpop.f32.mrf.mxu0  ;;  %669 = vmatpush1.bf16.msra.mxu1 %v2189_v35 }
  0xf1   : > { %3639 = vst [vmem:[#allocation9_spill] sm:$0xff] %v2597_v36 }
  0xf2   : > { %v2602_v39 = vpop.f32.mrf.mxu0 }
  0xf3   : > { %3640 = vst [vmem:[#allocation10_spill] sm:$0xff] %v2602_v39 }
  0xf4   : > { %v424_v40 = vpop.f32.mrf.mxu0 }
  0xf5   : > { %v425_v44 = vadd.f32 %v424_v40, %v284_v38  ;;  %v259_v40 = vld [vmem:[%s3572_s2 + $0x50] sm:$0xff] }
  0xf6   : > { %v426_v41 = vpop.f32.mrf.mxu0 }
  0xf7   : > { %v427_v47 = vadd.f32 %v426_v41, %v284_v38  ;;  %v1865_v38 = vld [vmem:[%s3574_s4 + $0x8] sm:$0xff]  ;;  %v1867_v41 = vld [vmem:[%s3574_s4 + $0x18] sm:$0xff] }
  0xf8   : > { %v428_v43 = vpop.f32.mrf.mxu0 }
  0xf9   : > { %v429_v45 = vadd.f32 %v428_v43, %v289_v42  ;;  %v1866_v43 = vld [vmem:[%s3574_s4 + $0x10] sm:$0xff] }
  0xfa   : > { %v430_v46 = vpop.f32.mrf.mxu0 }
  0xfb   : > { %v2187_v48 = vpack.c.bf16 %v429_v45, %v425_v44  ;;  %v431_v49 = vadd.f32 %v430_v46, %v289_v42  ;;  %v1864_v42 = vld [vmem:[%s3574_s4] sm:$0xff] }
  0xfc   : > { %v434_v4 = vpop.f32.mrf.mxu0 }
  0xfd   : > { %v2188_v50 = vpack.c.bf16 %v431_v49, %v427_v47  ;;  %563 = vxpose.xlu0.c.b16.start.end [1/1] (short) %v2187_v48, 128 }
  0xfe   : > { %v436_v6 = vpop.f32.mrf.mxu0 }
  0xff   : > { %579 = vxpose.xlu1.c.b16.start.end [1/1] (short) %v2188_v50, 128 }
 0x100   : > { %v438_v8 = vpop.f32.mrf.mxu0 }
 0x102   : > { %v440_v11 = vpop.f32.mrf.mxu0 }
 0x104   : > { %v444_v12 = vpop.f32.mrf.mxu0 }
 0x106   : > { %v446_v15 = vpop.f32.mrf.mxu0 }
 0x108   : > { %v448_v17 = vpop.f32.mrf.mxu0 }
 0x10a   : > { %v450_v24 = vpop.f32.mrf.mxu0 }
 0x11f   : > { %298 = vperm.xlu1 %2247, %v256_v51  }
 0x122   : > { %293 = vperm.xlu0 %2246, %v255_v52  }
 0x123   : > { %308 = vperm.xlu1 %2247, %v258_v53  }
 0x126   : > { %303 = vperm.xlu0 %2246, %v257_v54  }
 0x127   : > { %278 = vperm.xlu1 %2247, %v252_v55  }
 0x12a   : > { %273 = vperm.xlu0 %2246, %v251_v56  }
 0x15f   : > { %v571_v57 = vpop.trf.xlu0 }
 0x160   : > { %2112 = vmatmul.mubr.msk.bf16.vlgmr.msra.gmra.mxu1 %vm605_vm1, %v571_v57 }
 0x161   : > { %696 = vmatprep.mubr.bf16.mxu1 %v3576_v0  ;;  %v587_v59 = vpop.trf.xlu1 }
 0x163   : > { %v572_v58 = vpop.trf.xlu0 }
 0x165   : > { %v588_v61 = vpop.trf.xlu1 }
 0x167   : > { %v573_v60 = vpop.trf.xlu0 }
 0x168   : > { %2113 = vmatmul.mubr.msk.bf16.gmra.mxu1 %vm605_vm1, %v572_v58 }
 0x169   : > { %706 = vmatprep.mubr.bf16.mxu1 %v3576_v0  ;;  %v589_v63 = vpop.trf.xlu1 }
 0x16b   : > { %v574_v62 = vpop.trf.xlu0 }
 0x16d   : > { %v590_v1 = vpop.trf.xlu1 }
 0x16f   : > { %v575_v2 = vpop.trf.xlu0 }
 0x170   : > { %2114 = vmatmul.mubr.msk.bf16.gmra.mxu1 %vm605_vm1, %v573_v60 }
 0x171   : > { %716 = vmatprep.mubr.bf16.mxu1 %v3576_v0  ;;  %v591_v3 = vpop.trf.xlu1 }
 0x173   : > { %v576_v5 = vpop.trf.xlu0 }
 0x175   : > { %v592_v7 = vpop.trf.xlu1 }
 0x177   : > { %v577_v9 = vpop.trf.xlu0 }
 0x178   : > { %2115 = vmatmul.mubr.msk.bf16.gmra.mxu1 %vm605_vm1, %v574_v62 }
 0x179   : > { %726 = vmatprep.mubr.bf16.mxu1 %v3576_v0  ;;  %v593_v10 = vpop.trf.xlu1 }
 0x17b   : > { %v578_v14 = vpop.trf.xlu0 }
 0x17d   : > { %v594_v13 = vpop.trf.xlu1 }
 0x180   : > { %2116 = vmatmul.mubr.msk.bf16.gmra.mxu1 %vm605_vm1, %v575_v2 }
 0x181   : > { %736 = vmatprep.mubr.bf16.mxu1 %v3576_v0 }
 0x188   : > { %2117 = vmatmul.mubr.msk.bf16.gmra.mxu1 %vm605_vm1, %v576_v5  ;;  %v454_v5 = vpop.f32.mrf.mxu0 }
 0x189   : > { %746 = vmatprep.mubr.bf16.mxu1 %v3576_v0 }
 0x190   : > { %2118 = vmatmul.mubr.msk.bf16.gmra.mxu1 %vm605_vm1, %v577_v9 }
 0x191   : > { %756 = vmatprep.mubr.bf16.mxu1 %v3576_v0 }
 0x198   : > { %2119 = vmatmul.mubr.msk.bf16.gmra.mxu1 %vm605_vm1, %v578_v14 }
 0x199   : > { %766 = vmatprep.mubr.bf16.mxu1 %v3576_v0 }
 0x19a   : > { %v299_v16 = vpop.permute.xlu1 %298 }
 0x19b   : > { %v439_v19 = vadd.f32 %v438_v8, %v299_v16  ;;  %v441_v20 = vadd.f32 %v440_v11, %v299_v16 }
 0x19d   : > { %v294_v18 = vpop.permute.xlu0 %293 }
 0x19e   : > { %v435_v21 = vadd.f32 %v434_v4, %v294_v18  ;;  %v437_v22 = vadd.f32 %v436_v6, %v294_v18  ;;  %v309_v23 = vpop.permute.xlu1 %308 }
 0x19f   : > { %v2640_v27 = vadd.f32 %v448_v17, %v309_v23  ;;  %v451_v29 = vadd.f32 %v450_v24, %v309_v23 }
 0x1a0   : > { %v2193_v25 = vpack.c.bf16 %v439_v19, %v435_v21  ;;  %v2194_v26 = vpack.c.bf16 %v441_v20, %v437_v22  ;;  %2120 = vmatmul.mubr.msk.bf16.gmra.mxu1 %vm605_vm1, %v587_v59 }
 0x1a1   : > { %3641 = vst [vmem:[#allocation11_spill] sm:$0xff] %v2640_v27  ;;  %v304_v28 = vpop.permute.xlu0 %303  ;;  %776 = vmatprep.mubr.bf16.mxu1 %v3576_v0 }
 0x1a2   : > { %v2643_v30 = vadd.f32 %v444_v12, %v304_v28  ;;  %v447_v31 = vadd.f32 %v446_v15, %v304_v28  ;;  %1234 = vxpose.xlu1.c.b16.start.end [1/1] (short) %v2194_v26, 128  ;;  %1218 = vxpose.xlu0.c.b16.start.end [1/1] (short) %v2193_v25, 128  ;;  %v2678_v44 = vpop.permute.xlu1 %278 }
 0x1a3   : > { %3643 = vst [vmem:[#allocation13_spill] sm:$0xff] %v2678_v44 }
 0x1a4   : > { %3642 = vst [vmem:[#allocation12_spill] sm:$0xff] %v2643_v30  ;;  %v2192_v35 = vpack.c.bf16 %v451_v29, %v447_v31 }
 0x1a5   : > { %v2680_v45 = vpop.permute.xlu0 %273 }
 0x1a6   : > { %1155 = vmatprep.mubr.bf16.mxu0 %v2192_v35  ;;  %3644 = vst [vmem:[#allocation14_spill] sm:$0xff] %v2680_v45 }
 0x1a8   : > { %2121 = vmatmul.mubr.msk.bf16.gmra.mxu1 %vm605_vm1, %v588_v61 }
 0x1a9   : > { %786 = vmatprep.mubr.bf16.mxu1 %v3576_v0 }
 0x1b0   : > { %2122 = vmatmul.mubr.msk.bf16.gmra.mxu1 %vm605_vm1, %v589_v63 }
 0x1b1   : > { %796 = vmatprep.mubr.bf16.mxu1 %v3576_v0 }
 0x1b8   : > { %2123 = vmatmul.mubr.msk.bf16.gmra.mxu1 %vm605_vm1, %v590_v1 }
 0x1b9   : > { %806 = vmatprep.mubr.bf16.mxu1 %v3576_v0 }
 0x1c0   : > { %2124 = vmatmul.mubr.msk.bf16.gmra.mxu1 %vm605_vm1, %v591_v3 }
 0x1c1   : > { %816 = vmatprep.mubr.bf16.mxu1 %v3576_v0 }
 0x1c2   : > { %318 = vperm.xlu1 %2247, %v260_v37  }
 0x1c6   : > { %1875 = vperm.xlu1 %2247, %v1865_v38  }
 0x1c7   : > { %313 = vperm.xlu0 %2246, %v259_v40  }
 0x1c8   : > { %2125 = vmatmul.mubr.msk.bf16.gmra.mxu1 %vm605_vm1, %v592_v7 }
 0x1c9   : > { %826 = vmatprep.mubr.bf16.mxu1 %v3576_v0 }
 0x1ca   : > { %1885 = vperm.xlu1 %2247, %v1867_v41  }
 0x1cb   : > { %1870 = vperm.xlu0 %2246, %v1864_v42  }
 0x1cf   : > { %1880 = vperm.xlu0 %2246, %v1866_v43  }
 0x1d0   : > { %2126 = vmatmul.mubr.msk.bf16.gmra.mxu1 %vm605_vm1, %v593_v10  ;;  %v456_v10 = vpop.f32.mrf.mxu0 }
 0x1d1   : > { %836 = vmatprep.mubr.bf16.mxu1 %v3576_v0 }
 0x1d2   : > { %v458_v14 = vpop.f32.mrf.mxu0 }
 0x1d4   : > { %v460_v18 = vpop.f32.mrf.mxu0 }
 0x1d8   : > { %2127 = vmatmul.mubr.msk.bf16.gmra.mxu1 %vm605_vm1, %v594_v13 }
 0x204   : > { %v2682_v46 = vpop.trf.xlu1  ;;  %v2684_v47 = vpop.trf.xlu0 }
 0x205   : > { %3645 = vst [vmem:[#allocation15_spill] sm:$0xff] %v2682_v46  ;;  %3646 = vst [vmem:[#allocation16_spill] sm:$0xff] %v2684_v47 }
 0x208   : > { %v2686_v48 = vpop.trf.xlu1  ;;  %v2688_v49 = vpop.trf.xlu0 }
 0x209   : > { %3647 = vst [vmem:[#allocation17_spill] sm:$0xff] %v2686_v48  ;;  %3648 = vst [vmem:[#allocation18_spill] sm:$0xff] %v2688_v49 }
 0x20c   : > { %v2690_v50 = vpop.trf.xlu1  ;;  %v2692_v51 = vpop.trf.xlu0 }
 0x20d   : > { %3649 = vst [vmem:[#allocation19_spill] sm:$0xff] %v2690_v50  ;;  %3650 = vst [vmem:[#allocation20_spill] sm:$0xff] %v2692_v51 }
 0x210   : > { %v2698_v54 = vpop.trf.xlu1  ;;  %v2702_v56 = vpop.trf.xlu0 }
 0x211   : > { %3653 = vst [vmem:[#allocation23_spill] sm:$0xff] %v2698_v54  ;;  %3655 = vst [vmem:[#allocation25_spill] sm:$0xff] %v2702_v56 }
 0x214   : > { %v2708_v59 = vpop.trf.xlu1  ;;  %v2712_v61 = vpop.trf.xlu0 }
 0x215   : > { %3658 = vst [vmem:[#allocation28_spill] sm:$0xff] %v2708_v59  ;;  %3659 = vst [vmem:[#allocation29_spill] sm:$0xff] %v2712_v61 }
 0x218   : > { %v2718_v1 = vpop.trf.xlu1  ;;  %v2722_v3 = vpop.trf.xlu0 }
 0x219   : > { %3661 = vst [vmem:[#allocation31_spill] sm:$0xff] %v2718_v1  ;;  %3662 = vst [vmem:[#allocation32_spill] sm:$0xff] %v2722_v3 }
 0x21c   : > { %v2728_v7 = vpop.trf.xlu1  ;;  %v2732_v9 = vpop.trf.xlu0 }
 0x21d   : > { %3663 = vst [vmem:[#allocation33_spill] sm:$0xff] %v2728_v7  ;;  %3664 = vst [vmem:[#allocation34_spill] sm:$0xff] %v2732_v9 }
 0x220   : > { %v2694_v52 = vpop.f32.mrf.mxu1  ;;  %v2736_v12 = vpop.trf.xlu1 }
 0x221   : > { %3651 = vst [vmem:[#allocation21_spill] sm:$0xff] %v2694_v52  ;;  %3665 = vst [vmem:[#allocation35_spill] sm:$0xff] %v2736_v12  ;;  %v2742_v16 = vpop.trf.xlu0 }
 0x222   : > { %v2696_v53 = vpop.f32.mrf.mxu1  ;;  %3666 = vst [vmem:[#allocation36_spill] sm:$0xff] %v2742_v16 }
 0x223   : > { %3652 = vst [vmem:[#allocation22_spill] sm:$0xff] %v2696_v53 }
 0x224   : > { %v2700_v55 = vpop.f32.mrf.mxu1 }
 0x225   : > { %3654 = vst [vmem:[#allocation24_spill] sm:$0xff] %v2700_v55 }
 0x226   : > { %v2704_v57 = vpop.f32.mrf.mxu1 }
 0x227   : > { %3656 = vst [vmem:[#allocation26_spill] sm:$0xff] %v2704_v57 }
 0x228   : > { %v2706_v58 = vpop.f32.mrf.mxu1 }
 0x229   : > { %3657 = vst [vmem:[#allocation27_spill] sm:$0xff] %v2706_v58  ;;  %v847_v61 = vmax.f32 %v2694_v52, %v2706_v58 }
 0x22a   : > { %v2710_v60 = vpop.f32.mrf.mxu1 }
 0x22b   : > { %v884_v27 = vmax.f32 %v2696_v53, %v2710_v60 }
 0x22c   : > { %v2714_v62 = vpop.f32.mrf.mxu1 }
 0x22d   : > { %3660 = vst [vmem:[#allocation30_spill] sm:$0xff] %v2714_v62  ;;  %v848_v9 = vmax.f32 %v2700_v55, %v2714_v62 }
 0x22e   : > { %v2716_v63 = vpop.f32.mrf.mxu1 }
 0x22f   : > { %v885_v51 = vmax.f32 %v2704_v57, %v2716_v63 }
 0x230   : > { %v2720_v2 = vpop.f32.mrf.mxu1 }
 0x231   : > { %v849_v47 = vmax.f32 %v847_v61, %v2720_v2 }
 0x232   : > { %v2724_v4 = vpop.f32.mrf.mxu1 }
 0x233   : > { %v886_v44 = vmax.f32 %v884_v27, %v2724_v4 }
 0x234   : > { %v2726_v6 = vpop.f32.mrf.mxu1 }
 0x235   : > { %v850_v56 = vmax.f32 %v848_v9, %v2726_v6 }
 0x236   : > { %v2730_v8 = vpop.f32.mrf.mxu1 }
 0x237   : > { %v887_v36 = vmax.f32 %v885_v51, %v2730_v8 }
 0x238   : > { %v2734_v11 = vpop.f32.mrf.mxu1 }
 0x239   : > { %v851_v39 = vmax.f32 %v849_v47, %v2734_v11 }
 0x23a   : > { %v2738_v13 = vpop.f32.mrf.mxu1 }
 0x23b   : > { %v888_v55 = vmax.f32 %v886_v44, %v2738_v13 }
 0x23c   : > { %v2740_v15 = vpop.f32.mrf.mxu1 }
 0x23d   : > { %v319_v19 = vpop.permute.xlu1 %318  ;;  %v852_v30 = vmax.f32 %v850_v56, %v2740_v15 }
 0x23e   : > { %v2744_v17 = vpop.f32.mrf.mxu1  ;;  %v2750_v23 = vadd.f32 %v458_v14, %v319_v19  ;;  %v461_v24 = vadd.f32 %v460_v18, %v319_v19 }
 0x23f   : > { %v889_v34 = vmax.f32 %v887_v36, %v2744_v17 }
 0x240   : > { %v2746_v20 = vpop.f32.mrf.mxu1  ;;  %3667 = vst [vmem:[#allocation37_spill] sm:$0xff] %v2750_v23 }
 0x241   : > { %v853_v61 = vmax.f32 %v851_v39, %v2746_v20 }
 0x242   : > { %v314_v21 = vpop.permute.xlu0 %313  ;;  %v2748_v22 = vpop.f32.mrf.mxu1 }
 0x243   : > { %v2752_v25 = vadd.f32 %v454_v5, %v314_v21  ;;  %v457_v26 = vadd.f32 %v456_v10, %v314_v21  ;;  %v890_v27 = vmax.f32 %v888_v55, %v2748_v22 }
 0x244   : > { %v2754_v28 = vpop.f32.mrf.mxu1 }
 0x245   : > { %3668 = vst [vmem:[#allocation38_spill] sm:$0xff] %v2752_v25  ;;  %v2198_v31 = vpack.c.bf16 %v461_v24, %v457_v26  ;;  %v854_v9 = vmax.f32 %v852_v30, %v2754_v28 }
 0x246   : > { %v2758_v35 = vpop.f32.mrf.mxu1 }
 0x247   : > { %1809 = vmatprep.mubr.bf16.mxu1 %v2198_v31  ;;  %v891_v51 = vmax.f32 %v889_v34, %v2758_v35 }
 0x248   : > { %v2760_v37 = vpop.f32.mrf.mxu1 }
 0x249   : > { %v855_v47 = vmax.f32 %v853_v61, %v2760_v37 }
 0x24a   : > { %v2762_v38 = vpop.f32.mrf.mxu1 }
 0x24b   : > { %v892_v44 = vmax.f32 %v890_v27, %v2762_v38 }
 0x24c   : > { %v2764_v40 = vpop.f32.mrf.mxu1 }
 0x24d   : > { %v856_v56 = vmax.f32 %v854_v9, %v2764_v40 }
 0x24e   : > { %v2766_v41 = vpop.f32.mrf.mxu1 }
 0x24f   : > { %v893_v36 = vmax.f32 %v891_v51, %v2766_v41 }
 0x250   : > { %v2768_v42 = vpop.f32.mrf.mxu1 }
 0x251   : > { %v857_v39 = vmax.f32 %v855_v47, %v2768_v42 }
 0x252   : > { %v2770_v43 = vpop.f32.mrf.mxu1 }
 0x253   : > { %v894_v55 = vmax.f32 %v892_v44, %v2770_v43 }
 0x254   : > { %v2772_v5 = vpop.f32.mrf.mxu1 }
 0x255   : > { %v858_v30 = vmax.f32 %v856_v56, %v2772_v5 }
 0x256   : > { %v2774_v10 = vpop.f32.mrf.mxu1 }
 0x257   : > { %v895_v34 = vmax.f32 %v893_v36, %v2774_v10 }
 0x258   : > { %v2776_v14 = vpop.f32.mrf.mxu1 }
 0x259   : > { %v859_v61 = vmax.f32 %v857_v39, %v2776_v14 }
 0x25a   : > { %v2778_v18 = vpop.f32.mrf.mxu1 }
 0x25b   : > { %v896_v27 = vmax.f32 %v894_v55, %v2778_v18 }
 0x25c   : > { %v2780_v19 = vpop.f32.mrf.mxu1 }
 0x25d   : > { %v860_v9 = vmax.f32 %v858_v30, %v2780_v19 }
 0x25e   : > { %v2782_v21 = vpop.f32.mrf.mxu1 }
 0x25f   : > { %v897_v51 = vmax.f32 %v895_v34, %v2782_v21 }
 0x260   : > { %v2784_v24 = vpop.f32.mrf.mxu1 }
 0x261   : > { %3669 = vst [vmem:[#allocation39_spill] sm:$0xff] %v2784_v24  ;;  %v861_v47 = vmax.f32 %v859_v61, %v2784_v24 }
 0x262   : > { %v2786_v26 = vpop.f32.mrf.mxu1 }
 0x263   : > { %3670 = vst [vmem:[#allocation40_spill] sm:$0xff] %v2786_v26  ;;  %v898_v44 = vmax.f32 %v896_v27, %v2786_v26 }
 0x264   : > { %v2788_v31 = vpop.f32.mrf.mxu1 }
 0x265   : > { %3671 = vst [vmem:[#allocation41_spill] sm:$0xff] %v2788_v31  ;;  %v862_v56 = vmax.f32 %v860_v9, %v2788_v31 }
 0x266   : > { %v2790_v29 = vpop.f32.mrf.mxu1 }
 0x267   : > { %3672 = vst [vmem:[#allocation42_spill] sm:$0xff] %v2790_v29  ;;  %v899_v36 = vmax.f32 %v897_v51, %v2790_v29 }
 0x268   : > { %v2792_v0 = vpop.f32.mrf.mxu1 }
 0x269   : > { %3673 = vst [vmem:[#allocation43_spill] sm:$0xff] %v2792_v0  ;;  %v863_v39 = vmax.f32 %v861_v47, %v2792_v0 }
 0x26a   : > { %v2794_v33 = vpop.f32.mrf.mxu1 }
 0x26b   : > { %3674 = vst [vmem:[#allocation44_spill] sm:$0xff] %v2794_v33  ;;  %v900_v55 = vmax.f32 %v898_v44, %v2794_v33 }
 0x26c   : > { %v2796_v25 = vpop.f32.mrf.mxu1 }
 0x26d   : > { %3675 = vst [vmem:[#allocation45_spill] sm:$0xff] %v2796_v25  ;;  %v864_v30 = vmax.f32 %v862_v56, %v2796_v25 }
 0x26e   : > { %v2798_v23 = vpop.f32.mrf.mxu1 }
 0x26f   : > { %3676 = vst [vmem:[#allocation46_spill] sm:$0xff] %v2798_v23  ;;  %v901_v34 = vmax.f32 %v899_v36, %v2798_v23 }
 0x270   : > { %v2800_v12 = vpop.f32.mrf.mxu1 }
 0x271   : > { %3677 = vst [vmem:[#allocation47_spill] sm:$0xff] %v2800_v12  ;;  %v865_v61 = vmax.f32 %v863_v39, %v2800_v12 }
 0x272   : > { %v2802_v7 = vpop.f32.mrf.mxu1 }
 0x273   : > { %3678 = vst [vmem:[#allocation48_spill] sm:$0xff] %v2802_v7  ;;  %v902_v27 = vmax.f32 %v900_v55, %v2802_v7 }
 0x274   : > { %v2804_v1 = vpop.f32.mrf.mxu1 }
 0x275   : > { %3679 = vst [vmem:[#allocation49_spill] sm:$0xff] %v2804_v1  ;;  %v866_v9 = vmax.f32 %v864_v30, %v2804_v1 }
 0x276   : > { %v2806_v59 = vpop.f32.mrf.mxu1 }
 0x277   : > { %3680 = vst [vmem:[#allocation50_spill] sm:$0xff] %v2806_v59  ;;  %v903_v51 = vmax.f32 %v901_v34, %v2806_v59 }
 0x278   : > { %v2808_v54 = vpop.f32.mrf.mxu1 }
 0x279   : > { %v867_v47 = vmax.f32 %v865_v61, %v2808_v54 }
 0x27a   : > { %v2810_v50 = vpop.f32.mrf.mxu1 }
 0x27b   : > { %3681 = vst [vmem:[#allocation51_spill] sm:$0xff] %v2810_v50  ;;  %v904_v44 = vmax.f32 %v902_v27, %v2810_v50 }
 0x27c   : > { %v2812_v48 = vpop.f32.mrf.mxu1 }
 0x27d   : > { %v868_v56 = vmax.f32 %v866_v9, %v2812_v48 }
 0x27e   : > { %v2814_v46 = vpop.f32.mrf.mxu1 }
 0x27f   : > { %3682 = vst [vmem:[#allocation52_spill] sm:$0xff] %v2814_v46  ;;  %v905_v36 = vmax.f32 %v903_v51, %v2814_v46 }
 0x280   : > { %v2816_v16 = vpop.f32.mrf.mxu1 }
 0x281   : > { %v869_v39 = vmax.f32 %v867_v47, %v2816_v16 }
 0x282   : > { %v2820_v3 = vpop.f32.mrf.mxu1 }
 0x283   : > { %v906_v55 = vmax.f32 %v904_v44, %v2820_v3 }
 0x284   : > { %v2827_v49 = vpop.f32.mrf.mxu1 }
 0x285   : > { %v870_v30 = vmax.f32 %v868_v56, %v2827_v49 }
 0x286   : > { %v2834_v32 = vpop.f32.mrf.mxu1 }
 0x287   : > { %v907_v34 = vmax.f32 %v905_v36, %v2834_v32 }
 0x288   : > { %v2840_v45 = vpop.f32.mrf.mxu1 }
 0x289   : > { %v871_v61 = vmax.f32 %v869_v39, %v2840_v45 }
 0x28a   : > { %v2846_v52 = vpop.f32.mrf.mxu1 }
 0x28b   : > { %v908_v27 = vmax.f32 %v906_v55, %v2846_v52 }
 0x28c   : > { %v2852_v57 = vpop.f32.mrf.mxu1 }
 0x28d   : > { %v872_v9 = vmax.f32 %v870_v30, %v2852_v57 }
 0x28e   : > { %v2858_v53 = vpop.f32.mrf.mxu1 }
 0x28f   : > { %v909_v51 = vmax.f32 %v907_v34, %v2858_v53 }
 0x290   : > { %v2864_v62 = vpop.f32.mrf.mxu1 }
 0x291   : > { %v873_v47 = vmax.f32 %v871_v61, %v2864_v62 }
 0x292   : > { %v2870_v58 = vpop.f32.mrf.mxu1 }
 0x294   : > { %v2876_v31 = vpop.f32.mrf.mxu1 }
 0x295   : > { %3683 = vst [vmem:[#allocation53_spill] sm:$0xff] %v2876_v31  ;;  %v874_v56 = vmax.f32 %v872_v9, %v2876_v31  ;;  %v910_v9 = vmax.f32 %v908_v27, %v2870_v58 }
 0x296   : > { %v2882_v24 = vpop.f32.mrf.mxu1 }
 0x297   : > { %v911_v36 = vmax.f32 %v909_v51, %v2882_v24 }
 0x298   : > { %v2888_v29 = vpop.f32.mrf.mxu1 }
 0x299   : > { %v875_v39 = vmax.f32 %v873_v47, %v2888_v29 }
 0x29a   : > { %v2894_v26 = vpop.f32.mrf.mxu1 }
 0x29b   : > { %v912_v34 = vmax.f32 %v910_v9, %v2894_v26 }
 0x29c   : > { %v2900_v25 = vpop.f32.mrf.mxu1 }
 0x29d   : > { %v876_v30 = vmax.f32 %v874_v56, %v2900_v25 }
 0x29e   : > { %v2906_v0 = vpop.f32.mrf.mxu1 }
 0x29f   : > { %v913_v44 = vmax.f32 %v911_v36, %v2906_v0  ;;  %v877_v23 = vmax.f32 %v875_v39, %v876_v30 }
 0x2a1   : > { %v914_v33 = vmax.f32 %v912_v34, %v913_v44  ;;  %v878_v1 = vrot.slane %v877_v23, 4 }
 0x2a3   : > { %v915_v61 = vrot.slane %v914_v33, 4  ;;  %v879_v12 = vmax.f32 %v877_v23, %v878_v1 }
 0x2a5   : > { %v916_v56 = vmax.f32 %v914_v33, %v915_v61  ;;  %v880_v59 = vrot.slane %v879_v12, 2 }
 0x2a7   : > { %v917_v55 = vrot.slane %v916_v56, 2  ;;  %v881_v7 = vmax.f32 %v879_v12, %v880_v59 }
 0x2a9   : > { %v918_v51 = vmax.f32 %v916_v56, %v917_v55  ;;  %v882_v46 = vrot.slane %v881_v7, 1 }
 0x2ab   : > { %v919_v50 = vrot.slane %v918_v51, 1  ;;  %v2912_v31 = vmax.f32 %v881_v7, %v882_v46 }
 0x2ad   : > { %v2914_v47 = vmax.f32 %v918_v51, %v919_v50  ;;  %v965_v30 = vsub.f32 %v2808_v54, %v2912_v31  ;;  %v967_v27 = vsub.f32 %v2812_v48, %v2912_v31  ;;  %v969_v1 = vsub.f32 %v2816_v16, %v2912_v31 }
 0x2ae   : > { %v971_v33 = vsub.f32 %v2827_v49, %v2912_v31  ;;  %v973_v59 = vsub.f32 %v2840_v45, %v2912_v31  ;;  %v975_v46 = vsub.f32 %v2852_v57, %v2912_v31  ;;  %v945_v9 = vsub.f32 %v2768_v42, %v2912_v31 }
 0x2af   : > { %v970_v50 = vsub.f32 %v2820_v3, %v2914_v47  ;;  %v972_v54 = vsub.f32 %v2834_v32, %v2914_v47  ;;  %v974_v48 = vsub.f32 %v2846_v52, %v2914_v47  ;;  %v976_v7 = vsub.f32 %v2858_v53, %v2914_v47 }
 0x2b0   : > { %v2936_v12 = vpack.c.bf16 %v967_v27, %v965_v30  ;;  %v2938_v49 = vpack.c.bf16 %v971_v33, %v969_v1  ;;  %v2940_v45 = vpack.c.bf16 %v975_v46, %v973_v59  ;;  %v950_v3 = vsub.f32 %v2778_v18, %v2914_v47 }
 0x2b1   : > { %v2942_v16 = vpack.c.bf16 %v972_v54, %v970_v50  ;;  %v2944_v57 = vpack.c.bf16 %v976_v7, %v974_v48  ;;  %v952_v32 = vsub.f32 %v2782_v21, %v2914_v47  ;;  %v949_v52 = vsub.f32 %v2776_v14, %v2912_v31 }
 0x2b2   : > { %v951_v53 = vsub.f32 %v2780_v19, %v2912_v31  ;;  %v946_v23 = vsub.f32 %v2770_v43, %v2914_v47  ;;  %v948_v36 = vsub.f32 %v2774_v10, %v2914_v47  ;;  %v947_v18 = vsub.f32 %v2772_v5, %v2912_v31 }
 0x2b3   : > { %v1000_v39 = vpack.c.bf16 %v952_v32, %v950_v3  ;;  %v942_v14 = vsub.f32 %v2762_v38, %v2914_v47  ;;  %v944_v19 = vsub.f32 %v2766_v41, %v2914_v47  ;;  %v941_v43 = vsub.f32 %v2760_v37, %v2912_v31  ;;  %v3684_v3 = vld [vmem:[#allocation27_spill] sm:$0xff] }
 0x2b4   : > { %v999_v21 = vpack.c.bf16 %v951_v53, %v949_v52  ;;  %v998_v44 = vpack.c.bf16 %v948_v36, %v946_v23  ;;  %v943_v10 = vsub.f32 %v2764_v40, %v2912_v31  ;;  %v997_v61 = vpack.c.bf16 %v947_v18, %v945_v9 }
 0x2b5   : > { %v1063_v34 = vmul.bf16 1069105081, %v1000_v39  ;;  %v938_v5 = vsub.f32 %v2748_v22, %v2914_v47  ;;  %v940_v56 = vsub.f32 %v2758_v35, %v2914_v47  ;;  %v996_v38 = vpack.c.bf16 %v944_v19, %v942_v14  ;;  %v3687_v39 = vld [vmem:[#allocation26_spill] sm:$0xff]  ;;  %v3688_v19 = vld [vmem:[#allocation21_spill] sm:$0xff] }
 0x2b6   : > { %v1060_v42 = vmul.bf16 1069105081, %v999_v21  ;;  %v1057_v55 = vmul.bf16 1069105081, %v998_v44  ;;  %v937_v41 = vsub.f32 %v2746_v20, %v2912_v31  ;;  %v939_v51 = vsub.f32 %v2754_v28, %v2912_v31 }
 0x2b7   : > { %2256 = vpow.bf16 %v1063_v34  ;;  %v934_v37 = vsub.f32 %v2738_v13, %v2914_v47  ;;  %v995_v40 = vpack.c.bf16 %v943_v10, %v941_v43  ;;  %v1054_v30 = vmul.bf16 1069105081, %v997_v61  ;;  %v3689_v34 = vld [vmem:[#allocation24_spill] sm:$0xff] }
 0x2b8   : > { %2258 = vpow.bf16 %v1060_v42  ;;  %v936_v22 = vsub.f32 %v2744_v17, %v2914_v47  ;;  %v994_v27 = vpack.c.bf16 %v940_v56, %v938_v5  ;;  %v1051_v35 = vmul.bf16 1069105081, %v996_v38 }
 0x2b9   : > { %2260 = vpow.bf16 %v1057_v55  ;;  %v933_v1 = vsub.f32 %v2734_v11, %v2912_v31  ;;  %v935_v20 = vsub.f32 %v2740_v15, %v2912_v31  ;;  %v930_v28 = vsub.f32 %v2724_v4, %v2914_v47 }
 0x2ba   : > { %v993_v33 = vpack.c.bf16 %v939_v51, %v937_v41  ;;  %v1048_v13 = vmul.bf16 1069105081, %v995_v40  ;;  %2262 = vpow.bf16 %v1054_v30  ;;  %v932_v59 = vsub.f32 %v2730_v8, %v2914_v47 }
 0x2bb   : > { %v992_v46 = vpack.c.bf16 %v936_v22, %v934_v37  ;;  %v1045_v17 = vmul.bf16 1069105081, %v994_v27  ;;  %2264 = vpow.bf16 %v1051_v35  ;;  %v929_v50 = vsub.f32 %v2720_v2, %v2912_v31  ;;  %v3685_v2 = vld [vmem:[#allocation30_spill] sm:$0xff] }
 0x2bc   : > { %v931_v11 = vsub.f32 %v2726_v6, %v2912_v31  ;;  %v926_v15 = vsub.f32 %v2710_v60, %v2914_v47  ;;  %v991_v54 = vpack.c.bf16 %v935_v20, %v933_v1  ;;  %v1042_v4 = vmul.bf16 1069105081, %v993_v33  ;;  %v3686_v6 = vld [vmem:[#allocation22_spill] sm:$0xff]  ;;  %v3690_v20 = vld [vmem:[#allocation53_spill] sm:$0xff] }
 0x2bd   : > { %2266 = vpow.bf16 %v1048_v13  ;;  %v928_v48 = vsub.f32 %v2716_v63, %v2914_v47  ;;  %v990_v7 = vpack.c.bf16 %v932_v59, %v930_v28  ;;  %v1039_v8 = vmul.bf16 1069105081, %v992_v46 }
 0x2be   : > { %2268 = vpow.bf16 %v1045_v17  ;;  %v925_v32 = vsub.f32 %v3684_v3, %v2912_v31  ;;  %v927_v52 = vsub.f32 %v3685_v2, %v2912_v31  ;;  %v922_v53 = vsub.f32 %v3686_v6, %v2914_v47  ;;  %v3693_v2 = vld [vmem:[#allocation48_spill] sm:$0xff] }
 0x2bf   : > { %v989_v23 = vpack.c.bf16 %v931_v11, %v929_v50  ;;  %v1036_v60 = vmul.bf16 1069105081, %v991_v54  ;;  %2270 = vpow.bf16 %v1042_v4  ;;  %v924_v9 = vsub.f32 %v3687_v39, %v2914_v47  ;;  %v3691_v54 = vld [vmem:[#allocation51_spill] sm:$0xff] }
 0x2c0   : > { %v988_v63 = vpack.c.bf16 %v928_v48, %v926_v15  ;;  %v1033_v18 = vmul.bf16 1069105081, %v990_v7  ;;  %2272 = vpow.bf16 %v1039_v8  ;;  %v921_v44 = vsub.f32 %v3688_v19, %v2912_v31  ;;  %v3692_v48 = vld [vmem:[#allocation52_spill] sm:$0xff] }
 0x2c1   : > { %v923_v43 = vsub.f32 %v3689_v34, %v2912_v31  ;;  %v987_v10 = vpack.c.bf16 %v927_v52, %v925_v32  ;;  %v982_v61 = vsub.f32 %v2894_v26, %v2914_v47  ;;  %v984_v42 = vsub.f32 %v2906_v0, %v2914_v47 }
 0x2c2   : > { %v1030_v5 = vmul.bf16 1069105081, %v989_v23  ;;  %2274 = vpow.bf16 %v1036_v60  ;;  %v986_v56 = vpack.c.bf16 %v924_v9, %v922_v53  ;;  %v1027_v38 = vmul.bf16 1069105081, %v988_v63  ;;  %v3694_v53 = vld [vmem:[#allocation50_spill] sm:$0xff]  ;;  %v3695_v9 = vld [vmem:[#allocation47_spill] sm:$0xff] }
 0x2c3   : > { %2276 = vpow.bf16 %v1033_v18  ;;  %v981_v51 = vsub.f32 %v2888_v29, %v2912_v31  ;;  %v983_v37 = vsub.f32 %v2900_v25, %v2912_v31  ;;  %v1016_v40 = vpack.c.bf16 %v984_v42, %v982_v61  ;;  %v3696_v18 = vld [vmem:[#allocation49_spill] sm:$0xff]  ;;  %v3699_v42 = vld [vmem:[#allocation43_spill] sm:$0xff] }
 0x2c4   : > { %v985_v26 = vpack.c.bf16 %v923_v43, %v921_v44  ;;  %v1024_v30 = vmul.bf16 1069105081, %v987_v10  ;;  %2278 = vpow.bf16 %v1030_v5  ;;  %v978_v0 = vsub.f32 %v2870_v58, %v2914_v47  ;;  %v3698_v44 = vld [vmem:[#allocation46_spill] sm:$0xff] }
 0x2c5   : > { %v2257_v36 = vpop.eup %2256  ;;  %v980_v22 = vsub.f32 %v2882_v24, %v2914_v47  ;;  %v1021_v27 = vmul.bf16 1069105081, %v986_v56  ;;  %2280 = vpow.bf16 %v1027_v38  ;;  %v1015_v29 = vpack.c.bf16 %v983_v37, %v981_v51  ;;  %v3700_v56 = vld [vmem:[#allocation45_spill] sm:$0xff]  ;;  %v3702_v37 = vld [vmem:[#allocation42_spill] sm:$0xff] }
 0x2c6   : > { %v2259_v21 = vpop.eup %2258  ;;  %1123 = vmatprep.subr.bf16.mxu0 %v2257_v36  ;;  %v977_v25 = vsub.f32 %v2864_v62, %v2912_v31  ;;  %v979_v28 = vsub.f32 %v3690_v20, %v2912_v31  ;;  %v1018_v33 = vmul.bf16 1069105081, %v985_v26  ;;  %2282 = vpow.bf16 %v1024_v30 }
 0x2c7   : > { %v2261_v14 = vpop.eup %2260  ;;  %1124 = vmatpush1.bf16.msra.mxu0 %v2259_v21  ;;  %v1111_v13 = vmul.bf16 1069105081, %v1016_v40  ;;  %v1014_v58 = vpack.c.bf16 %v980_v22, %v978_v0  ;;  %2284 = vpow.bf16 %v1021_v27  ;;  %v1108_v46 = vmul.bf16 1069105081, %v1015_v29  ;;  %v3703_v27 = vld [vmem:[#allocation39_spill] sm:$0xff] }
 0x2c8   : > { %1125 = vmatprep.subr.bf16.mxu0 %v2261_v14  ;;  %v2263_v55 = vpop.eup %2262  ;;  %v1013_v17 = vpack.c.bf16 %v979_v28, %v977_v25  ;;  %2286 = vpow.bf16 %v1018_v33  ;;  %v966_v4 = vsub.f32 %v3691_v54, %v2914_v47  ;;  %v968_v7 = vsub.f32 %v3692_v48, %v2914_v47  ;;  %v3705_v48 = vld [vmem:[#allocation14_spill] sm:$0xff] }
 0x2c9   : > { %v2265_v41 = vpop.eup %2264  ;;  %2288 = vpow.bf16 %v1111_v13  ;;  %v1105_v50 = vmul.bf16 1069105081, %v1014_v58  ;;  %v1099_v8 = vmul.bf16 1069105081, %v2944_v57  ;;  %v962_v52 = vsub.f32 %v3693_v2, %v2914_v47  ;;  %v3708_v2 = vld [vmem:[#allocation10_spill] sm:$0xff] }
 0x2ca   : > { %2290 = vpow.bf16 %v1108_v46  ;;  %v1102_v15 = vmul.bf16 1069105081, %v1013_v17  ;;  %v1096_v6 = vmul.bf16 1069105081, %v2940_v45  ;;  %v964_v23 = vsub.f32 %v3694_v53, %v2914_v47  ;;  %v3697_v45 = vld [vmem:[#allocation44_spill] sm:$0xff] }
 0x2cb   : > { %1126 = vmatpush1.bf16.msra.mxu0 %v2263_v55  ;;  %v2267_v35 = vpop.eup %2266  ;;  %2292 = vpow.bf16 %v1105_v50  ;;  %v1008_v60 = vpack.c.bf16 %v968_v7, %v966_v4  ;;  %v1093_v36 = vmul.bf16 1069105081, %v2942_v16  ;;  %v961_v63 = vsub.f32 %v3695_v9, %v2912_v31  ;;  %v3701_v55 = vld [vmem:[#allocation40_spill] sm:$0xff]  ;;  %v3711_v9 = vld [vmem:[#allocation11_spill] sm:$0xff] }
 0x2cc   : > { %1127 = vmatprep.subr.bf16.mxu0 %v2265_v41  ;;  %v2269_v1 = vpop.eup %2268  ;;  %2294 = vpow.bf16 %v1102_v15  ;;  %v963_v21 = vsub.f32 %v3696_v18, %v2912_v31  ;;  %v958_v14 = vsub.f32 %v3697_v45, %v2914_v47  ;;  %v1090_v19 = vmul.bf16 1069105081, %v2938_v49  ;;  %v3706_v7 = vld [vmem:[#allocation8_spill] sm:$0xff] }
 0x2cd   : > { %v2271_v59 = vpop.eup %2270  ;;  %2296 = vpow.bf16 %v1099_v8  ;;  %v960_v16 = vsub.f32 %v3698_v44, %v2914_v47  ;;  %v1006_v34 = vpack.c.bf16 %v964_v23, %v962_v52  ;;  %v1087_v43 = vmul.bf16 1069105081, %v1008_v60  ;;  %v3717_v44 = vld [vmem:[#allocation20_spill] sm:$0xff] }
 0x2ce   : > { %v2273_v24 = vpop.eup %2272  ;;  %2298 = vpow.bf16 %v1096_v6  ;;  %v957_v5 = vsub.f32 %v3699_v42, %v2912_v31  ;;  %v959_v38 = vsub.f32 %v3700_v56, %v2912_v31  ;;  %v954_v49 = vsub.f32 %v3701_v55, %v2914_v47  ;;  %v3709_v6 = vld [vmem:[#allocation7_spill] sm:$0xff]  ;;  %v3727_v55 = vld [vmem:[#allocation28_spill] sm:$0xff] }
 0x2cf   : > { %1128 = vmatpush1.bf16.msra.mxu0 %v2267_v35  ;;  %2300 = vpow.bf16 %v1093_v36  ;;  %v1005_v41 = vpack.c.bf16 %v963_v21, %v961_v63  ;;  %v1084_v51 = vmul.bf16 1069105081, %v2936_v12  ;;  %v956_v40 = vsub.f32 %v3702_v37, %v2914_v47  ;;  %v3710_v36 = vld [vmem:[#allocation9_spill] sm:$0xff]  ;;  %v3712_v63 = vld [vmem:[#allocation12_spill] sm:$0xff]  ;;  %v3723_v42 = vld [vmem:[#allocation15_spill] sm:$0xff] }
 0x2d0   : > { %1129 = vmatprep.subr.bf16.mxu0 %v2269_v1  ;;  %v2275_v11 = vpop.eup %2274  ;;  %2302 = vpow.bf16 %v1090_v19  ;;  %v1004_v26 = vpack.c.bf16 %v960_v16, %v958_v14  ;;  %v1081_v30 = vmul.bf16 1069105081, %v1006_v34  ;;  %v953_v35 = vsub.f32 %v3703_v27, %v2912_v31  ;;  %v3704_v1 = vld [vmem:[#allocation41_spill] sm:$0xff]  ;;  %v3715_v14 = vld [vmem:[#allocation16_spill] sm:$0xff]  ;;  %v3716_v19 = vld [vmem:[#allocation18_spill] sm:$0xff] }
 0x2d1   : > { %v2277_v62 = vpop.eup %2276  ;;  %2304 = vpow.bf16 %v1087_v43  ;;  %v955_v29 = vsub.f32 %v3704_v1, %v2912_v31  ;;  %v1003_v25 = vpack.c.bf16 %v959_v38, %v957_v5  ;;  %v1078_v20 = vmul.bf16 1069105081, %v1005_v41  ;;  %v3718_v16 = vld [vmem:[#allocation25_spill] sm:$0xff]  ;;  %v3720_v43 = vld [vmem:[#allocation32_spill] sm:$0xff]  ;;  %v3725_v56 = vld [vmem:[#allocation19_spill] sm:$0xff] }
 0x2d2   : > { %v2279_v3 = vpop.eup %2278  ;;  %2306 = vpow.bf16 %v1084_v51  ;;  %v1002_v12 = vpack.c.bf16 %v956_v40, %v954_v49  ;;  %v1075_v28 = vmul.bf16 1069105081, %v1004_v26  ;;  %v417_v8 = vadd.f32 %v3706_v7, %v3705_v48  ;;  %v3719_v34 = vld [vmem:[#allocation29_spill] sm:$0xff]  ;;  %v3726_v38 = vld [vmem:[#allocation23_spill] sm:$0xff] }
 0x2d3   : > { %1130 = vmatpush1.bf16.msra.mxu0 %v2271_v59  ;;  %v2281_v32 = vpop.eup %2280  ;;  %2308 = vpow.bf16 %v1081_v30  ;;  %v1001_v13 = vpack.c.bf16 %v955_v29, %v953_v35  ;;  %v1072_v58 = vmul.bf16 1069105081, %v1003_v25  ;;  %v415_v53 = vadd.f32 %v3709_v6, %v3705_v48  ;;  %v3724_v5 = vld [vmem:[#allocation17_spill] sm:$0xff]  ;;  %v3728_v49 = vld [vmem:[#allocation31_spill] sm:$0xff] }
 0x2d4   : > { %1131 = vmatprep.subr.bf16.mxu0 %v2273_v24  ;;  %v2283_v39 = vpop.eup %2282  ;;  %2310 = vpow.bf16 %v1078_v20  ;;  %v1069_v59 = vmul.bf16 1069105081, %v1002_v12  ;;  %v3713_v18 = vpack.c.bf16 %v3711_v9, %v3712_v63  ;;  %v3605_v21 = vmov 1065369472   ;;  %v3729_v41 = vld [vmem:[#allocation33_spill] sm:$0xff]  ;;  %v3730_v51 = vld [vmem:[#allocation35_spill] sm:$0xff] }
 0x2d5   : > { %v2285_v57 = vpop.eup %2284  ;;  %2312 = vpow.bf16 %v1075_v28  ;;  %v1066_v31 = vmul.bf16 1069105081, %v1001_v13  ;;  %v3714_v45 = vmov 0   ;;  %v1176_v27 = vlaneseq }
 0x2d6   : > { %v2287_v10 = vpop.eup %2286  ;;  %2314 = vpow.bf16 %v1072_v58 }
 0x2d7   : > { %1132 = vmatpush1.bf16.msra.mxu0 %v2275_v11  ;;  %v2289_v61 = vpop.eup %2288  ;;  %2316 = vpow.bf16 %v1069_v59  ;;  %v1177_v29 = vshrl.u32 %v1176_v27, 7 }
 0x2d8   : > { %1133 = vmatprep.subr.bf16.mxu0 %v2277_v62  ;;  %v2291_v0 = vpop.eup %2290  ;;  %2318 = vpow.bf16 %v1066_v31 }
 0x2d9   : > { %v2293_v22 = vpop.eup %2292  ;;  %v3124_v12 = vsub.s32 0, %v1177_v29 }
 0x2da   : > { %v2295_v47 = vpop.eup %2294 }
 0x2db   : > { %1134 = vmatpush1.bf16.msra.mxu0 %v2279_v3  ;;  %v2297_v33 = vpop.eup %2296  ;;  %3733 = vst [vmem:[#allocation22_spill] sm:$0xff] %v3124_v12 }
 0x2dc   : > { %1135 = vmatprep.subr.bf16.mxu0 %v2281_v32  ;;  %v2299_v24 = vpop.eup %2298  ;;  %v3707_v32 = vld [vmem:[#allocation13_spill] sm:$0xff] }
 0x2dd   : > { %v2301_v46 = vpop.eup %2300  ;;  %v421_v52 = vadd.f32 %v3708_v2, %v3707_v32 }
 0x2de   : > { %v2303_v17 = vpop.eup %2302 }
 0x2df   : > { %1136 = vmatpush1.bf16.msra.mxu0 %v2283_v39  ;;  %v2305_v50 = vpop.eup %2304  ;;  %v2196_v60 = vpack.c.bf16 %v421_v52, %v417_v8  ;;  %v419_v39 = vadd.f32 %v3710_v36, %v3707_v32 }
 0x2e0   : > { %1137 = vmatprep.subr.bf16.mxu0 %v2285_v57  ;;  %v2307_v11 = vpop.eup %2306 }
 0x2e1   : > { %v2309_v62 = vpop.eup %2308  ;;  %v2195_v57 = vpack.c.bf16 %v419_v39, %v415_v53 }
 0x2e2   : > { %v2311_v15 = vpop.eup %2310 }
 0x2e3   : > { %1138 = vmatpush1.bf16.msra.mxu0 %v2287_v10  ;;  %v2313_v54 = vpop.eup %2312  ;;  %v3721_v10 = vld [vmem:[#allocation34_spill] sm:$0xff] }
 0x2e4   : > { %1139 = vmatprep.subr.bf16.mxu0 %v2289_v61  ;;  %v2315_v4 = vpop.eup %2314  ;;  %v3722_v61 = vld [vmem:[#allocation36_spill] sm:$0xff] }
 0x2e5   : > { %v2317_v3 = vpop.eup %2316 }
 0x2e6   : > { %v2319_v23 = vpop.eup %2318 }
 0x2e7   : > { %1140 = vmatpush2.bf16.msra.mxu0 %v2291_v0 }
 0x2e8   : > { %1141 = vmatprep.subr.bf16.mxu0 %v2293_v22 }
 0x2eb   : > { %1142 = vmatpush2.bf16.msra.mxu0 %v2295_v47 }
 0x2ec   : > { %1143 = vmatprep.subr.bf16.mxu0 %v2297_v33 }
 0x2ef   : > { %1144 = vmatpush2.bf16.msra.mxu0 %v2299_v24 }
 0x2f0   : > { %1145 = vmatprep.subr.bf16.mxu0 %v2301_v46 }
 0x2f3   : > { %1146 = vmatpush2.bf16.msra.mxu0 %v2303_v17 }
 0x2f4   : > { %1147 = vmatprep.subr.bf16.mxu0 %v2305_v50 }
 0x2f7   : > { %1148 = vmatpush2.bf16.msra.mxu0 %v2307_v11 }
 0x2f8   : > { %1149 = vmatprep.subr.bf16.mxu0 %v2309_v62 }
 0x2fb   : > { %1150 = vmatpush2.bf16.msra.mxu0 %v2311_v15 }
 0x2fc   : > { %1151 = vmatprep.subr.bf16.mxu0 %v2313_v54 }
 0x2ff   : > { %1152 = vmatpush2.bf16.msra.mxu0 %v2315_v4 }
 0x300   : > { %1153 = vmatprep.subr.bf16.mxu0 %v2317_v3 }
 0x303   : > { %1154 = vmatpush2.bf16.msra.mxu0 %v2319_v23 }
 0x304   : > { %1322 = vmatprep.subr.bf16.mxu0 %v2196_v60 }
 0x306   : > { %1156 = vmatmul.mubr.bf16.vlgmr.msra.gmra.mxu0 %v3713_v18 }
 0x307   : > { %1323 = vmatpush1.bf16.msra.mxu0 %v2195_v57  ;;  %1165 = vmatprep.mubr.bf16.mxu0 %v3605_v21 }
 0x30e   : > { %1166 = vmatmul.mubr.bf16.gmra.mxu0 %v3605_v21 }
 0x30f   : > { %1340 = vmatprep.mubr.bf16.mxu0 %v3714_v45 }
 0x316   : > { %2136 = vmatmul.mubr.msk.bf16.vlgmr.msra.gmra.mxu0 %vm605_vm1, %v3715_v14 }
 0x317   : > { %1350 = vmatprep.mubr.bf16.mxu0 %v3714_v45 }
 0x31e   : > { %2137 = vmatmul.mubr.msk.bf16.gmra.mxu0 %vm605_vm1, %v3716_v19 }
 0x31f   : > { %1360 = vmatprep.mubr.bf16.mxu0 %v3714_v45 }
 0x326   : > { %2138 = vmatmul.mubr.msk.bf16.gmra.mxu0 %vm605_vm1, %v3717_v44 }
 0x327   : > { %1370 = vmatprep.mubr.bf16.mxu0 %v3714_v45 }
 0x32e   : > { %2139 = vmatmul.mubr.msk.bf16.gmra.mxu0 %vm605_vm1, %v3718_v16 }
 0x32f   : > { %1380 = vmatprep.mubr.bf16.mxu0 %v3714_v45 }
 0x336   : > { %2140 = vmatmul.mubr.msk.bf16.gmra.mxu0 %vm605_vm1, %v3719_v34 }
 0x337   : > { %1390 = vmatprep.mubr.bf16.mxu0 %v3714_v45 }
 0x33e   : > { %2141 = vmatmul.mubr.msk.bf16.gmra.mxu0 %vm605_vm1, %v3720_v43 }
 0x33f   : > { %1400 = vmatprep.mubr.bf16.mxu0 %v3714_v45 }
 0x346   : > { %2142 = vmatmul.mubr.msk.bf16.gmra.mxu0 %vm605_vm1, %v3721_v10 }
 0x347   : > { %1410 = vmatprep.mubr.bf16.mxu0 %v3714_v45 }
 0x34e   : > { %2143 = vmatmul.mubr.msk.bf16.gmra.mxu0 %vm605_vm1, %v3722_v61 }
 0x34f   : > { %1420 = vmatprep.mubr.bf16.mxu0 %v3714_v45 }
 0x356   : > { %2144 = vmatmul.mubr.msk.bf16.gmra.mxu0 %vm605_vm1, %v3723_v42 }
 0x357   : > { %1430 = vmatprep.mubr.bf16.mxu0 %v3714_v45 }
 0x35e   : > { %2145 = vmatmul.mubr.msk.bf16.gmra.mxu0 %vm605_vm1, %v3724_v5 }
 0x35f   : > { %1440 = vmatprep.mubr.bf16.mxu0 %v3714_v45 }
 0x366   : > { %2146 = vmatmul.mubr.msk.bf16.gmra.mxu0 %vm605_vm1, %v3725_v56 }
 0x367   : > { %1450 = vmatprep.mubr.bf16.mxu0 %v3714_v45 }
 0x36e   : > { %2147 = vmatmul.mubr.msk.bf16.gmra.mxu0 %vm605_vm1, %v3726_v38 }
 0x36f   : > { %1460 = vmatprep.mubr.bf16.mxu0 %v3714_v45 }
 0x376   : > { %2148 = vmatmul.mubr.msk.bf16.gmra.mxu0 %vm605_vm1, %v3727_v55 }
 0x377   : > { %1470 = vmatprep.mubr.bf16.mxu0 %v3714_v45 }
 0x37e   : > { %2149 = vmatmul.mubr.msk.bf16.gmra.mxu0 %vm605_vm1, %v3728_v49 }
 0x37f   : > { %1480 = vmatprep.mubr.bf16.mxu0 %v3714_v45 }
 0x386   : > { %2150 = vmatmul.mubr.msk.bf16.gmra.mxu0 %vm605_vm1, %v3729_v41 }
 0x387   : > { %1490 = vmatprep.mubr.bf16.mxu0 %v3714_v45 }
 0x38e   : > { %2151 = vmatmul.mubr.msk.bf16.gmra.mxu0 %vm605_vm1, %v3730_v51 }
 0x3c6   : > { %v1157_v37 = vpop.f32.mrf.mxu0 }
 0x3c8   : > { %v1159_v40 = vpop.f32.mrf.mxu0 }
 0x3ca   : > { %v1161_v26 = vpop.f32.mrf.mxu0 }
 0x3cc   : > { %v1163_v30 = vpop.f32.mrf.mxu0 }
 0x3ce   : > { %v1167_v0 = vpop.f32.mrf.mxu0 }
 0x3cf   : > { %2320 = vrcp.f32 %v1167_v0 }
 0x3d0   : > { %v1169_v22 = vpop.f32.mrf.mxu0 }
 0x3d1   : > { %2322 = vrcp.f32 %v1169_v22 }
 0x3d2   : > { %v1171_v35 = vpop.f32.mrf.mxu0 }
 0x3d4   : > { %v1172_v1 = vpop.f32.mrf.mxu0 }
 0x3d6   : > { %v3120_v25 = vpop.f32.mrf.mxu0 }
 0x3d7   : > { %3731 = vst [vmem:[#allocation27_spill] sm:$0xff] %v3120_v25 }
 0x3d8   : > { %v3122_v20 = vpop.f32.mrf.mxu0 }
 0x3d9   : > { %3732 = vst [vmem:[#allocation30_spill] sm:$0xff] %v3122_v20 }
 0x3da   : > { %v3126_v28 = vpop.f32.mrf.mxu0 }
 0x3db   : > { %3734 = vst [vmem:[#allocation26_spill] sm:$0xff] %v3126_v28 }
 0x3dc   : > { %v2321_v47 = vpop.eup %2320  ;;  %v3128_v33 = vpop.f32.mrf.mxu0 }
 0x3dd   : > { %3735 = vst [vmem:[#allocation21_spill] sm:$0xff] %v3128_v33  ;;  %v1179_v13 = vrot.slane %v2321_v47, %v3124_v12 }
 0x3de   : > { %v2323_v58 = vpop.eup %2322  ;;  %v3131_v59 = vpop.f32.mrf.mxu0 }
 0x3df   : > { %3736 = vst [vmem:[#allocation24_spill] sm:$0xff] %v3131_v59  ;;  %v1183_v24 = vrot.slane %v2323_v58, %v3124_v12  ;;  %v3134_v46 = vmul.f32 %v1179_v13, %v1157_v37  ;;  %v3136_v31 = vmul.f32 %v1179_v13, %v1161_v26  ;;  %v1501_v47 = vmax.f32 %v3120_v25, %v3131_v59 }
 0x3e0   : > { %v3138_v17 = vpop.f32.mrf.mxu0 }
 0x3e1   : > { %3737 = vst [vmem:[#allocation53_spill] sm:$0xff] %v3134_v46  ;;  %3738 = vst [vmem:[#allocation51_spill] sm:$0xff] %v3136_v31  ;;  %v3140_v50 = vmul.f32 %v1183_v24, %v1159_v40  ;;  %v3142_v11 = vmul.f32 %v1183_v24, %v1163_v30  ;;  %v1538_v21 = vmax.f32 %v3122_v20, %v3138_v17 }
 0x3e2   : > { %v3146_v15 = vpop.f32.mrf.mxu0 }
 0x3e3   : > { %3739 = vst [vmem:[#allocation52_spill] sm:$0xff] %v3140_v50  ;;  %3740 = vst [vmem:[#allocation48_spill] sm:$0xff] %v3142_v11  ;;  %v1502_v1 = vmax.f32 %v3126_v28, %v3146_v15 }
 0x3e4   : > { %3741 = vst [vmem:[#allocation50_spill] sm:$0xff] %v3146_v15  ;;  %v3150_v4 = vpop.f32.mrf.mxu0 }
 0x3e5   : > { %v1539_v58 = vmax.f32 %v3128_v33, %v3150_v4 }
 0x3e6   : > { %v3152_v48 = vpop.f32.mrf.mxu0 }
 0x3e7   : > { %v1503_v62 = vmax.f32 %v1501_v47, %v3152_v48 }
 0x3e8   : > { %v3154_v7 = vpop.f32.mrf.mxu0 }
 0x3e9   : > { %v1540_v11 = vmax.f32 %v1538_v21, %v3154_v7 }
 0x3ea   : > { %v3156_v8 = vpop.f32.mrf.mxu0 }
 0x3eb   : > { %v1504_v13 = vmax.f32 %v1502_v1, %v3156_v8 }
 0x3ec   : > { %v3158_v3 = vpop.f32.mrf.mxu0 }
 0x3ed   : > { %v1541_v46 = vmax.f32 %v1539_v58, %v3158_v3 }
 0x3ee   : > { %v3160_v32 = vpop.f32.mrf.mxu0 }
 0x3ef   : > { %v1505_v50 = vmax.f32 %v1503_v62, %v3160_v32 }
 0x3f0   : > { %v3162_v2 = vpop.f32.mrf.mxu0 }
 0x3f1   : > { %v1542_v28 = vmax.f32 %v1540_v11, %v3162_v2 }
 0x3f2   : > { %v3164_v52 = vpop.f32.mrf.mxu0 }
 0x3f3   : > { %v1506_v54 = vmax.f32 %v1504_v13, %v3164_v52 }
 0x3f4   : > { %v3166_v6 = vpop.f32.mrf.mxu0 }
 0x3f5   : > { %v1543_v12 = vmax.f32 %v1541_v46, %v3166_v6 }
 0x3f6   : > { %v3168_v53 = vpop.f32.mrf.mxu0 }
 0x3f7   : > { %v1507_v47 = vmax.f32 %v1505_v50, %v3168_v53 }
 0x3f8   : > { %v3170_v23 = vpop.f32.mrf.mxu0 }
 0x3f9   : > { %v1544_v21 = vmax.f32 %v1542_v28, %v3170_v23 }
 0x3fa   : > { %v3172_v60 = vpop.f32.mrf.mxu0 }
 0x3fb   : > { %v1508_v1 = vmax.f32 %v1506_v54, %v3172_v60 }
 0x3fc   : > { %v3174_v36 = vpop.f32.mrf.mxu0 }
 0x3fd   : > { %v1545_v58 = vmax.f32 %v1543_v12, %v3174_v36 }
 0x3fe   : > { %v3176_v39 = vpop.f32.mrf.mxu0 }
 0x3ff   : > { %v1509_v62 = vmax.f32 %v1507_v47, %v3176_v39 }
 0x400   : > { %v3178_v57 = vpop.f32.mrf.mxu0 }
 0x401   : > { %v1546_v11 = vmax.f32 %v1544_v21, %v3178_v57 }
 0x402   : > { %v3180_v9 = vpop.f32.mrf.mxu0 }
 0x403   : > { %v1510_v13 = vmax.f32 %v1508_v1, %v3180_v9 }
 0x404   : > { %v3182_v63 = vpop.f32.mrf.mxu0 }
 0x405   : > { %v1547_v46 = vmax.f32 %v1545_v58, %v3182_v63 }
 0x406   : > { %v3184_v18 = vpop.f32.mrf.mxu0 }
 0x407   : > { %v1511_v50 = vmax.f32 %v1509_v62, %v3184_v18 }
 0x408   : > { %v3186_v14 = vpop.f32.mrf.mxu0 }
 0x409   : > { %v1548_v28 = vmax.f32 %v1546_v11, %v3186_v14 }
 0x40a   : > { %v3188_v19 = vpop.f32.mrf.mxu0 }
 0x40b   : > { %v1512_v54 = vmax.f32 %v1510_v13, %v3188_v19 }
 0x40c   : > { %v3190_v44 = vpop.f32.mrf.mxu0 }
 0x40d   : > { %v1549_v12 = vmax.f32 %v1547_v46, %v3190_v44 }
 0x40e   : > { %v3192_v16 = vpop.f32.mrf.mxu0 }
 0x40f   : > { %v1513_v47 = vmax.f32 %v1511_v50, %v3192_v16 }
 0x410   : > { %v3194_v34 = vpop.f32.mrf.mxu0 }
 0x411   : > { %v1550_v21 = vmax.f32 %v1548_v28, %v3194_v34 }
 0x412   : > { %v3196_v43 = vpop.f32.mrf.mxu0 }
 0x413   : > { %v1514_v1 = vmax.f32 %v1512_v54, %v3196_v43 }
 0x414   : > { %v3198_v10 = vpop.f32.mrf.mxu0 }
 0x415   : > { %v1551_v58 = vmax.f32 %v1549_v12, %v3198_v10 }
 0x416   : > { %v3200_v61 = vpop.f32.mrf.mxu0 }
 0x417   : > { %3742 = vst [vmem:[#allocation47_spill] sm:$0xff] %v3200_v61  ;;  %v1515_v62 = vmax.f32 %v1513_v47, %v3200_v61 }
 0x418   : > { %v3202_v42 = vpop.f32.mrf.mxu0 }
 0x419   : > { %3743 = vst [vmem:[#allocation49_spill] sm:$0xff] %v3202_v42  ;;  %v1552_v11 = vmax.f32 %v1550_v21, %v3202_v42 }
 0x41a   : > { %v3204_v5 = vpop.f32.mrf.mxu0 }
 0x41b   : > { %3744 = vst [vmem:[#allocation44_spill] sm:$0xff] %v3204_v5  ;;  %v1516_v13 = vmax.f32 %v1514_v1, %v3204_v5 }
 0x41c   : > { %v3206_v56 = vpop.f32.mrf.mxu0 }
 0x41d   : > { %3745 = vst [vmem:[#allocation46_spill] sm:$0xff] %v3206_v56  ;;  %v1553_v46 = vmax.f32 %v1551_v58, %v3206_v56 }
 0x41e   : > { %v3208_v38 = vpop.f32.mrf.mxu0 }
 0x41f   : > { %3746 = vst [vmem:[#allocation43_spill] sm:$0xff] %v3208_v38  ;;  %v1517_v50 = vmax.f32 %v1515_v62, %v3208_v38 }
 0x420   : > { %v3210_v55 = vpop.f32.mrf.mxu0 }
 0x421   : > { %3747 = vst [vmem:[#allocation45_spill] sm:$0xff] %v3210_v55  ;;  %v1554_v28 = vmax.f32 %v1552_v11, %v3210_v55 }
 0x422   : > { %v3212_v49 = vpop.f32.mrf.mxu0 }
 0x423   : > { %3748 = vst [vmem:[#allocation40_spill] sm:$0xff] %v3212_v49  ;;  %v1518_v54 = vmax.f32 %v1516_v13, %v3212_v49 }
 0x424   : > { %v3214_v41 = vpop.f32.mrf.mxu0 }
 0x425   : > { %3749 = vst [vmem:[#allocation42_spill] sm:$0xff] %v3214_v41  ;;  %v1555_v12 = vmax.f32 %v1553_v46, %v3214_v41 }
 0x426   : > { %v3216_v51 = vpop.f32.mrf.mxu0 }
 0x427   : > { %3750 = vst [vmem:[#allocation39_spill] sm:$0xff] %v3216_v51  ;;  %v1519_v47 = vmax.f32 %v1517_v50, %v3216_v51 }
 0x428   : > { %v3218_v37 = vpop.f32.mrf.mxu0 }
 0x429   : > { %3751 = vst [vmem:[#allocation41_spill] sm:$0xff] %v3218_v37  ;;  %v1556_v21 = vmax.f32 %v1554_v28, %v3218_v37 }
 0x42a   : > { %v3220_v40 = vpop.f32.mrf.mxu0 }
 0x42b   : > { %3752 = vst [vmem:[#allocation14_spill] sm:$0xff] %v3220_v40  ;;  %v1520_v1 = vmax.f32 %v1518_v54, %v3220_v40 }
 0x42c   : > { %v3222_v26 = vpop.f32.mrf.mxu0 }
 0x42d   : > { %3753 = vst [vmem:[#allocation8_spill] sm:$0xff] %v3222_v26  ;;  %v1557_v58 = vmax.f32 %v1555_v12, %v3222_v26 }
 0x42e   : > { %v3224_v30 = vpop.f32.mrf.mxu0 }
 0x42f   : > { %v1521_v62 = vmax.f32 %v1519_v47, %v3224_v30 }
 0x430   : > { %v3226_v0 = vpop.f32.mrf.mxu0 }
 0x431   : > { %3754 = vst [vmem:[#allocation13_spill] sm:$0xff] %v3226_v0  ;;  %v1558_v11 = vmax.f32 %v1556_v21, %v3226_v0 }
 0x432   : > { %v3228_v22 = vpop.f32.mrf.mxu0 }
 0x433   : > { %v1522_v13 = vmax.f32 %v1520_v1, %v3228_v22 }
 0x434   : > { %v3230_v27 = vpop.f32.mrf.mxu0 }
 0x435   : > { %3755 = vst [vmem:[#allocation10_spill] sm:$0xff] %v3230_v27  ;;  %v1559_v46 = vmax.f32 %v1557_v58, %v3230_v27 }
 0x436   : > { %v3232_v35 = vpop.f32.mrf.mxu0 }
 0x437   : > { %v1523_v50 = vmax.f32 %v1521_v62, %v3232_v35 }
 0x438   : > { %v3236_v29 = vpop.f32.mrf.mxu0 }
 0x439   : > { %v1560_v28 = vmax.f32 %v1558_v11, %v3236_v29 }
 0x43a   : > { %v3243_v24 = vpop.f32.mrf.mxu0 }
 0x43b   : > { %v1524_v54 = vmax.f32 %v1522_v13, %v3243_v24 }
 0x43c   : > { %v3250_v31 = vpop.f32.mrf.mxu0 }
 0x43d   : > { %v1561_v12 = vmax.f32 %v1559_v46, %v3250_v31 }
 0x43e   : > { %v3256_v45 = vpop.f32.mrf.mxu0 }
 0x43f   : > { %v1525_v47 = vmax.f32 %v1523_v50, %v3256_v45 }
 0x440   : > { %v3262_v25 = vpop.f32.mrf.mxu0 }
 0x441   : > { %v1562_v21 = vmax.f32 %v1560_v28, %v3262_v25 }
 0x442   : > { %v3268_v33 = vpop.f32.mrf.mxu0 }
 0x443   : > { %v1526_v1 = vmax.f32 %v1524_v54, %v3268_v33 }
 0x444   : > { %v3274_v20 = vpop.f32.mrf.mxu0 }
 0x445   : > { %v1563_v58 = vmax.f32 %v1561_v12, %v3274_v20 }
 0x446   : > { %v3280_v15 = vpop.f32.mrf.mxu0 }
 0x447   : > { %v1527_v62 = vmax.f32 %v1525_v47, %v3280_v15 }
 0x448   : > { %v3286_v59 = vpop.f32.mrf.mxu0 }
 0x44a   : > { %v3292_v5 = vpop.f32.mrf.mxu0 }
 0x44b   : > { %3756 = vst [vmem:[#allocation7_spill] sm:$0xff] %v3292_v5  ;;  %v1528_v13 = vmax.f32 %v1526_v1, %v3292_v5  ;;  %v1564_v1 = vmax.f32 %v1562_v21, %v3286_v59 }
 0x44c   : > { %v3298_v61 = vpop.f32.mrf.mxu0 }
 0x44d   : > { %v1565_v46 = vmax.f32 %v1563_v58, %v3298_v61 }
 0x44e   : > { %v3304_v56 = vpop.f32.mrf.mxu0 }
 0x44f   : > { %v1529_v50 = vmax.f32 %v1527_v62, %v3304_v56 }
 0x450   : > { %v3310_v42 = vpop.f32.mrf.mxu0 }
 0x451   : > { %v1566_v12 = vmax.f32 %v1564_v1, %v3310_v42 }
 0x452   : > { %v3316_v49 = vpop.f32.mrf.mxu0 }
 0x453   : > { %v1530_v54 = vmax.f32 %v1528_v13, %v3316_v49 }
 0x454   : > { %v3322_v38 = vpop.f32.mrf.mxu0 }
 0x455   : > { %v1567_v11 = vmax.f32 %v1565_v46, %v3322_v38  ;;  %v1531_v41 = vmax.f32 %v1529_v50, %v1530_v54 }
 0x457   : > { %v1568_v55 = vmax.f32 %v1566_v12, %v1567_v11  ;;  %v1532_v40 = vrot.slane %v1531_v41, 4 }
 0x459   : > { %v1569_v47 = vrot.slane %v1568_v55, 4  ;;  %v1533_v51 = vmax.f32 %v1531_v41, %v1532_v40 }
 0x45b   : > { %v1570_v13 = vmax.f32 %v1568_v55, %v1569_v47  ;;  %v1534_v26 = vrot.slane %v1533_v51, 2 }
 0x45d   : > { %v1571_v28 = vrot.slane %v1570_v13, 2  ;;  %v1535_v37 = vmax.f32 %v1533_v51, %v1534_v26 }
 0x45f   : > { %v1572_v58 = vmax.f32 %v1570_v13, %v1571_v28  ;;  %v1536_v27 = vrot.slane %v1535_v37, 1 }
 0x461   : > { %v1573_v0 = vrot.slane %v1572_v58, 1  ;;  %v3328_v5 = vmax.f32 %v1535_v37, %v1536_v27 }
 0x463   : > { %v3330_v62 = vmax.f32 %v1572_v58, %v1573_v0  ;;  %v1619_v54 = vsub.f32 %v3224_v30, %v3328_v5  ;;  %v1621_v21 = vsub.f32 %v3228_v22, %v3328_v5  ;;  %v1623_v41 = vsub.f32 %v3232_v35, %v3328_v5 }
 0x464   : > { %v1625_v55 = vsub.f32 %v3243_v24, %v3328_v5  ;;  %v1627_v51 = vsub.f32 %v3256_v45, %v3328_v5  ;;  %v1629_v37 = vsub.f32 %v3268_v33, %v3328_v5  ;;  %v1599_v1 = vsub.f32 %v3184_v18, %v3328_v5 }
 0x465   : > { %v1624_v40 = vsub.f32 %v3236_v29, %v3330_v62  ;;  %v1626_v26 = vsub.f32 %v3250_v31, %v3330_v62  ;;  %v1628_v30 = vsub.f32 %v3262_v25, %v3330_v62  ;;  %v1630_v0 = vsub.f32 %v3274_v20, %v3330_v62 }
 0x466   : > { %v3352_v22 = vpack.c.bf16 %v1621_v21, %v1619_v54  ;;  %v3354_v27 = vpack.c.bf16 %v1625_v55, %v1623_v41  ;;  %v3356_v45 = vpack.c.bf16 %v1629_v37, %v1627_v51  ;;  %v1604_v29 = vsub.f32 %v3194_v34, %v3330_v62 }
 0x467   : > { %v3358_v35 = vpack.c.bf16 %v1626_v26, %v1624_v40  ;;  %v3360_v33 = vpack.c.bf16 %v1630_v0, %v1628_v30  ;;  %v1606_v31 = vsub.f32 %v3198_v10, %v3330_v62  ;;  %v1603_v25 = vsub.f32 %v3192_v16, %v3328_v5 }
 0x468   : > { %v1605_v20 = vsub.f32 %v3196_v43, %v3328_v5  ;;  %v1600_v24 = vsub.f32 %v3186_v14, %v3330_v62  ;;  %v1602_v46 = vsub.f32 %v3190_v44, %v3330_v62  ;;  %v1601_v34 = vsub.f32 %v3188_v19, %v3328_v5 }
 0x469   : > { %v1654_v50 = vpack.c.bf16 %v1606_v31, %v1604_v29  ;;  %v1596_v16 = vsub.f32 %v3178_v57, %v3330_v62  ;;  %v1598_v43 = vsub.f32 %v3182_v63, %v3330_v62  ;;  %v1595_v14 = vsub.f32 %v3176_v39, %v3328_v5  ;;  %v3757_v29 = vld [vmem:[#allocation24_spill] sm:$0xff] }
 0x46a   : > { %v1653_v10 = vpack.c.bf16 %v1605_v20, %v1603_v25  ;;  %v1652_v11 = vpack.c.bf16 %v1602_v46, %v1600_v24  ;;  %v1597_v44 = vsub.f32 %v3180_v9, %v3328_v5  ;;  %v1651_v47 = vpack.c.bf16 %v1601_v34, %v1599_v1 }
 0x46b   : > { %v1717_v12 = vmul.bf16 1069105081, %v1654_v50  ;;  %v1592_v19 = vsub.f32 %v3170_v23, %v3330_v62  ;;  %v1594_v13 = vsub.f32 %v3174_v36, %v3330_v62  ;;  %v1650_v57 = vpack.c.bf16 %v1598_v43, %v1596_v16  ;;  %v3760_v50 = vld [vmem:[#allocation21_spill] sm:$0xff]  ;;  %v3761_v43 = vld [vmem:[#allocation27_spill] sm:$0xff] }
 0x46c   : > { %v1714_v18 = vmul.bf16 1069105081, %v1653_v10  ;;  %v1711_v28 = vmul.bf16 1069105081, %v1652_v11  ;;  %v1591_v63 = vsub.f32 %v3168_v53, %v3328_v5  ;;  %v1593_v58 = vsub.f32 %v3172_v60, %v3328_v5 }
 0x46d   : > { %2324 = vpow.bf16 %v1717_v12  ;;  %v1588_v39 = vsub.f32 %v3162_v2, %v3330_v62  ;;  %v1649_v9 = vpack.c.bf16 %v1597_v44, %v1595_v14  ;;  %v1708_v54 = vmul.bf16 1069105081, %v1651_v47  ;;  %v3762_v12 = vld [vmem:[#allocation26_spill] sm:$0xff] }
 0x46e   : > { %2326 = vpow.bf16 %v1714_v18  ;;  %v1590_v23 = vsub.f32 %v3166_v6, %v3330_v62  ;;  %v1648_v21 = vpack.c.bf16 %v1594_v13, %v1592_v19  ;;  %v1705_v36 = vmul.bf16 1069105081, %v1650_v57 }
 0x46f   : > { %2328 = vpow.bf16 %v1711_v28  ;;  %v1587_v41 = vsub.f32 %v3160_v32, %v3328_v5  ;;  %v1589_v53 = vsub.f32 %v3164_v52, %v3328_v5  ;;  %v1584_v60 = vsub.f32 %v3154_v7, %v3330_v62 }
 0x470   : > { %v1647_v55 = vpack.c.bf16 %v1593_v58, %v1591_v63  ;;  %v1702_v2 = vmul.bf16 1069105081, %v1649_v9  ;;  %2330 = vpow.bf16 %v1708_v54  ;;  %v1586_v51 = vsub.f32 %v3158_v3, %v3330_v62 }
 0x471   : > { %v1646_v37 = vpack.c.bf16 %v1590_v23, %v1588_v39  ;;  %v1699_v6 = vmul.bf16 1069105081, %v1648_v21  ;;  %2332 = vpow.bf16 %v1705_v36  ;;  %v1583_v40 = vsub.f32 %v3152_v48, %v3328_v5  ;;  %v3758_v48 = vld [vmem:[#allocation50_spill] sm:$0xff] }
 0x472   : > { %v1585_v32 = vsub.f32 %v3156_v8, %v3328_v5  ;;  %v1580_v52 = vsub.f32 %v3138_v17, %v3330_v62  ;;  %v1645_v26 = vpack.c.bf16 %v1589_v53, %v1587_v41  ;;  %v1696_v7 = vmul.bf16 1069105081, %v1647_v55  ;;  %v3759_v8 = vld [vmem:[#allocation30_spill] sm:$0xff]  ;;  %v3763_v53 = vld [vmem:[#allocation7_spill] sm:$0xff] }
 0x473   : > { %2334 = vpow.bf16 %v1702_v2  ;;  %v1582_v30 = vsub.f32 %v3150_v4, %v3330_v62  ;;  %v1644_v0 = vpack.c.bf16 %v1586_v51, %v1584_v60  ;;  %v1693_v3 = vmul.bf16 1069105081, %v1646_v37 }
 0x474   : > { %2336 = vpow.bf16 %v1699_v6  ;;  %v1579_v31 = vsub.f32 %v3757_v29, %v3328_v5  ;;  %v1581_v25 = vsub.f32 %v3758_v48, %v3328_v5  ;;  %v1576_v20 = vsub.f32 %v3759_v8, %v3330_v62  ;;  %v3766_v48 = vld [vmem:[#allocation41_spill] sm:$0xff] }
 0x475   : > { %v1643_v24 = vpack.c.bf16 %v1585_v32, %v1583_v40  ;;  %v1690_v17 = vmul.bf16 1069105081, %v1645_v26  ;;  %2338 = vpow.bf16 %v1696_v7  ;;  %v1578_v1 = vsub.f32 %v3760_v50, %v3330_v62  ;;  %v3764_v26 = vld [vmem:[#allocation13_spill] sm:$0xff] }
 0x476   : > { %v1642_v4 = vpack.c.bf16 %v1582_v30, %v1580_v52  ;;  %v1687_v34 = vmul.bf16 1069105081, %v1644_v0  ;;  %2340 = vpow.bf16 %v1693_v3  ;;  %v1575_v11 = vsub.f32 %v3761_v43, %v3328_v5  ;;  %v3765_v30 = vld [vmem:[#allocation10_spill] sm:$0xff] }
 0x477   : > { %v1577_v14 = vsub.f32 %v3762_v12, %v3328_v5  ;;  %v1641_v44 = vpack.c.bf16 %v1581_v25, %v1579_v31  ;;  %v1636_v47 = vsub.f32 %v3310_v42, %v3330_v62  ;;  %v1638_v18 = vsub.f32 %v3322_v38, %v3330_v62 }
 0x478   : > { %v1684_v19 = vmul.bf16 1069105081, %v1643_v24  ;;  %2342 = vpow.bf16 %v1690_v17  ;;  %v1640_v13 = vpack.c.bf16 %v1578_v1, %v1576_v20  ;;  %v1681_v57 = vmul.bf16 1069105081, %v1642_v4  ;;  %v3767_v20 = vld [vmem:[#allocation8_spill] sm:$0xff]  ;;  %v3768_v1 = vld [vmem:[#allocation39_spill] sm:$0xff] }
 0x479   : > { %2344 = vpow.bf16 %v1687_v34  ;;  %v1635_v58 = vsub.f32 %v3304_v56, %v3328_v5  ;;  %v1637_v39 = vsub.f32 %v3316_v49, %v3328_v5  ;;  %v1670_v9 = vpack.c.bf16 %v1638_v18, %v1636_v47  ;;  %v3769_v34 = vld [vmem:[#allocation14_spill] sm:$0xff]  ;;  %v3772_v18 = vld [vmem:[#allocation43_spill] sm:$0xff] }
 0x47a   : > { %v1639_v42 = vpack.c.bf16 %v1577_v14, %v1575_v11  ;;  %v1678_v54 = vmul.bf16 1069105081, %v1641_v44  ;;  %2346 = vpow.bf16 %v1684_v19  ;;  %v1632_v38 = vsub.f32 %v3286_v59, %v3330_v62  ;;  %v3771_v11 = vld [vmem:[#allocation42_spill] sm:$0xff] }
 0x47b   : > { %v2325_v46 = vpop.eup %2324  ;;  %v1634_v23 = vsub.f32 %v3298_v61, %v3330_v62  ;;  %v1675_v21 = vmul.bf16 1069105081, %v1640_v13  ;;  %2348 = vpow.bf16 %v1681_v57  ;;  %v1669_v56 = vpack.c.bf16 %v1637_v39, %v1635_v58  ;;  %v3773_v13 = vld [vmem:[#allocation40_spill] sm:$0xff]  ;;  %v3775_v39 = vld [vmem:[#allocation46_spill] sm:$0xff] }
 0x47c   : > { %v2327_v10 = vpop.eup %2326  ;;  %1777 = vmatprep.subr.bf16.mxu1 %v2325_v46  ;;  %v1631_v49 = vsub.f32 %v3280_v15, %v3328_v5  ;;  %v1633_v60 = vsub.f32 %v3763_v53, %v3328_v5  ;;  %v1672_v55 = vmul.bf16 1069105081, %v1639_v42  ;;  %2350 = vpow.bf16 %v1678_v54 }
 0x47d   : > { %v2329_v16 = vpop.eup %2328  ;;  %1778 = vmatpush1.bf16.msra.mxu1 %v2327_v10  ;;  %v1765_v2 = vmul.bf16 1069105081, %v1670_v9  ;;  %v1668_v59 = vpack.c.bf16 %v1634_v23, %v1632_v38  ;;  %2352 = vpow.bf16 %v1675_v21  ;;  %v1762_v37 = vmul.bf16 1069105081, %v1669_v56  ;;  %v3776_v21 = vld [vmem:[#allocation47_spill] sm:$0xff] }
 0x47e   : > { %1779 = vmatprep.subr.bf16.mxu1 %v2329_v16  ;;  %v2331_v28 = vpop.eup %2330  ;;  %v1667_v6 = vpack.c.bf16 %v1633_v60, %v1631_v49  ;;  %2354 = vpow.bf16 %v1672_v55  ;;  %v1620_v7 = vsub.f32 %v3764_v26, %v3330_v62  ;;  %v1622_v0 = vsub.f32 %v3765_v30, %v3330_v62 }
 0x47f   : > { %v2333_v63 = vpop.eup %2332  ;;  %2356 = vpow.bf16 %v1765_v2  ;;  %v1759_v40 = vmul.bf16 1069105081, %v1668_v59  ;;  %v1753_v3 = vmul.bf16 1069105081, %v3360_v33  ;;  %v1616_v25 = vsub.f32 %v3766_v48, %v3330_v62 }
 0x480   : > { %2358 = vpow.bf16 %v1762_v37  ;;  %v1756_v52 = vmul.bf16 1069105081, %v1667_v6  ;;  %v1750_v8 = vmul.bf16 1069105081, %v3356_v45  ;;  %v1618_v24 = vsub.f32 %v3767_v20, %v3330_v62  ;;  %v3770_v45 = vld [vmem:[#allocation45_spill] sm:$0xff] }
 0x481   : > { %1780 = vmatpush1.bf16.msra.mxu1 %v2331_v28  ;;  %v2335_v36 = vpop.eup %2334  ;;  %2360 = vpow.bf16 %v1759_v40  ;;  %v1662_v17 = vpack.c.bf16 %v1622_v0, %v1620_v7  ;;  %v1747_v46 = vmul.bf16 1069105081, %v3358_v35  ;;  %v1615_v4 = vsub.f32 %v3768_v1, %v3328_v5  ;;  %v3774_v28 = vld [vmem:[#allocation49_spill] sm:$0xff] }
 0x482   : > { %1781 = vmatprep.subr.bf16.mxu1 %v2333_v63  ;;  %v2337_v41 = vpop.eup %2336  ;;  %2362 = vpow.bf16 %v1756_v52  ;;  %v1617_v10 = vsub.f32 %v3769_v34, %v3328_v5  ;;  %v1612_v16 = vsub.f32 %v3770_v45, %v3330_v62  ;;  %v1744_v43 = vmul.bf16 1069105081, %v3354_v27  ;;  %v3783_v34 = vld [vmem:[#allocation22_spill] sm:$0xff] }
 0x483   : > { %v2339_v51 = vpop.eup %2338  ;;  %2364 = vpow.bf16 %v1753_v3  ;;  %v1614_v35 = vsub.f32 %v3771_v11, %v3330_v62  ;;  %v1660_v12 = vpack.c.bf16 %v1618_v24, %v1616_v25  ;;  %v1741_v14 = vmul.bf16 1069105081, %v1662_v17  ;;  %v3778_v3 = vld [vmem:[#allocation37_spill] sm:$0xff] }
 0x484   : > { %v2341_v61 = vpop.eup %2340  ;;  %2366 = vpow.bf16 %v1750_v8  ;;  %v1611_v19 = vsub.f32 %v3772_v18, %v3328_v5  ;;  %v1613_v57 = vsub.f32 %v3773_v13, %v3328_v5  ;;  %v1608_v27 = vsub.f32 %v3774_v28, %v3330_v62  ;;  %v3785_v18 = vld [vmem:[#allocation52_spill] sm:$0xff]  ;;  %v2254_v13 = vld [vmem:[%s3573_s3] sm:$0xff]   ;;  %v3788_v28 = vld [vmem:[#allocation53_spill] sm:$0xff] }
 0x485   : > { %1782 = vmatpush1.bf16.msra.mxu1 %v2335_v36  ;;  %2368 = vpow.bf16 %v1747_v46  ;;  %v1659_v63 = vpack.c.bf16 %v1617_v10, %v1615_v4  ;;  %v1738_v58 = vmul.bf16 1069105081, %v3352_v22  ;;  %v1610_v9 = vsub.f32 %v3775_v39, %v3330_v62 }
 0x486   : > { %1783 = vmatprep.subr.bf16.mxu1 %v2337_v41  ;;  %v2343_v32 = vpop.eup %2342  ;;  %2370 = vpow.bf16 %v1744_v43  ;;  %v1658_v42 = vpack.c.bf16 %v1614_v35, %v1612_v16  ;;  %v1735_v54 = vmul.bf16 1069105081, %v1660_v12  ;;  %v1607_v36 = vsub.f32 %v3776_v21, %v3328_v5  ;;  %v3777_v41 = vld [vmem:[#allocation44_spill] sm:$0xff] }
 0x487   : > { %v2345_v15 = vpop.eup %2344  ;;  %2372 = vpow.bf16 %v1741_v14  ;;  %v1609_v56 = vsub.f32 %v3777_v41, %v3328_v5  ;;  %v1657_v49 = vpack.c.bf16 %v1613_v57, %v1611_v19  ;;  %v1732_v53 = vmul.bf16 1069105081, %v1659_v63  ;;  %v3787_v57 = vld [vmem:[#allocation51_spill] sm:$0xff]  ;;  %v2255_v63 = vld [vmem:[%s3573_s3 + $0x8] sm:$0xff]  }
 0x488   : > { %v2347_v29 = vpop.eup %2346  ;;  %2374 = vpow.bf16 %v1738_v58  ;;  %v1656_v22 = vpack.c.bf16 %v1610_v9, %v1608_v27  ;;  %v1729_v60 = vmul.bf16 1069105081, %v1658_v42  ;;  %v3781_v48 = vmov 1065369472   ;;  %v1871_v58 = vpop.permute.xlu0 %1870  ;;  %v1977_v9 = vld [vmem:[%s2555_s15] sm:$0xff] }
 0x489   : > { %1784 = vmatpush1.bf16.msra.mxu1 %v2339_v51  ;;  %v2349_v31 = vpop.eup %2348  ;;  %2376 = vpow.bf16 %v1735_v54  ;;  %v1655_v2 = vpack.c.bf16 %v1609_v56, %v1607_v36  ;;  %v1726_v59 = vmul.bf16 1069105081, %v1657_v49  ;;  %v3782_v25 = vmov 0   ;;  %v1876_v36 = vpop.permute.xlu1 %1875  ;;  %v1979_v56 = vld [vmem:[%s2555_s15 + $0x10] sm:$0xff] }
 0x48a   : > { %1785 = vmatprep.subr.bf16.mxu1 %v2341_v61  ;;  %v2351_v50 = vpop.eup %2350  ;;  %2378 = vpow.bf16 %v1732_v53  ;;  %v1723_v51 = vmul.bf16 1069105081, %v1656_v22  ;;  %v3789_v27 = vpack.c.bf16 %v3787_v57, %v3788_v28 }
 0x48b   : > { %v2353_v33 = vpop.eup %2352  ;;  %2380 = vpow.bf16 %v1729_v60  ;;  %v1720_v5 = vmul.bf16 1069105081, %v1655_v2  ;;  %v1980_v60 = vld [vmem:[%s2555_s15 + $0x18] sm:$0xff] }
 0x48c   : > { %v2355_v44 = vpop.eup %2354  ;;  %2382 = vpow.bf16 %v1726_v59  ;;  %v1881_v2 = vpop.permute.xlu0 %1880 }
 0x48d   : > { %1786 = vmatpush1.bf16.msra.mxu1 %v2343_v32  ;;  %v2357_v47 = vpop.eup %2356  ;;  %2384 = vpow.bf16 %v1723_v51  ;;  %v1981_v51 = vld [vmem:[%s2555_s15 + $0x20] sm:$0xff] }
 0x48e   : > { %1787 = vmatprep.subr.bf16.mxu1 %v2345_v15  ;;  %v2359_v38 = vpop.eup %2358  ;;  %2386 = vpow.bf16 %v1720_v5 }
 0x48f   : > { %v2361_v23 = vpop.eup %2360 }
 0x490   : > { %v2363_v62 = vpop.eup %2362 }
 0x491   : > { %1788 = vmatpush1.bf16.msra.mxu1 %v2347_v29  ;;  %v2365_v55 = vpop.eup %2364  ;;  %v3779_v29 = vld [vmem:[#allocation38_spill] sm:$0xff] }
 0x492   : > { %1789 = vmatprep.subr.bf16.mxu1 %v2349_v31  ;;  %v2367_v61 = vpop.eup %2366  ;;  %v3780_v31 = vpack.c.bf16 %v3778_v3, %v3779_v29  ;;  %v1984_v3 = vld [vmem:[%s2555_s15 + $0x38] sm:$0xff] }
 0x493   : > { %v2369_v37 = vpop.eup %2368 }
 0x494   : > { %v2371_v6 = vpop.eup %2370 }
 0x495   : > { %1790 = vmatpush1.bf16.msra.mxu1 %v2351_v50  ;;  %v2373_v40 = vpop.eup %2372 }
 0x496   : > { %1791 = vmatprep.subr.bf16.mxu1 %v2353_v33  ;;  %v2375_v32 = vpop.eup %2374 }
 0x497   : > { %v2377_v15 = vpop.eup %2376 }
 0x498   : > { %v2379_v52 = vpop.eup %2378 }
 0x499   : > { %1792 = vmatpush1.bf16.msra.mxu1 %v2355_v44  ;;  %v2381_v26 = vpop.eup %2380 }
 0x49a   : > { %1793 = vmatprep.subr.bf16.mxu1 %v2357_v47  ;;  %v2383_v7 = vpop.eup %2382  ;;  %v3784_v47 = vld [vmem:[#allocation48_spill] sm:$0xff] }
 0x49b   : > { %v2385_v30 = vpop.eup %2384  ;;  %v3786_v19 = vpack.c.bf16 %v3784_v47, %v3785_v18 }
 0x49c   : > { %v2387_v0 = vpop.eup %2386 }
 0x49d   : > { %1794 = vmatpush2.bf16.msra.mxu1 %v2359_v38  ;;  %v1978_v38 = vld [vmem:[%s2555_s15 + $0x8] sm:$0xff] }
 0x49e   : > { %1795 = vmatprep.subr.bf16.mxu1 %v2361_v23 }
 0x4a1   : > { %1796 = vmatpush2.bf16.msra.mxu1 %v2363_v62 }
 0x4a2   : > { %1797 = vmatprep.subr.bf16.mxu1 %v2365_v55 }
 0x4a5   : > { %1798 = vmatpush2.bf16.msra.mxu1 %v2367_v61 }
 0x4a6   : > { %1799 = vmatprep.subr.bf16.mxu1 %v2369_v37 }
 0x4a9   : > { %1800 = vmatpush2.bf16.msra.mxu1 %v2371_v6  ;;  %v1982_v6 = vld [vmem:[%s2555_s15 + $0x28] sm:$0xff] }
 0x4aa   : > { %1801 = vmatprep.subr.bf16.mxu1 %v2373_v40 }
 0x4ad   : > { %1802 = vmatpush2.bf16.msra.mxu1 %v2375_v32 }
 0x4ae   : > { %1803 = vmatprep.subr.bf16.mxu1 %v2377_v15  ;;  %v1886_v15 = vpop.permute.xlu1 %1885 }
 0x4b1   : > { %1804 = vmatpush2.bf16.msra.mxu1 %v2379_v52 }
 0x4b2   : > { %1805 = vmatprep.subr.bf16.mxu1 %v2381_v26  ;;  %v1983_v26 = vld [vmem:[%s2555_s15 + $0x30] sm:$0xff]  ;;  %s2392_s15 = scalar_lea.vmem %s3524_s17, 1024 }
 0x4b3   : > { %p2393_p11 = scmp.ne.s32.totalorder %s3524_s17, %s2392_s15  ;;  %p2400_p1 = scmp.lt.s32.totalorder %s2398_s7, %s2392_s15 }
 0x4b5   : > { %1806 = vmatpush2.bf16.msra.mxu1 %v2383_v7  ;;  %p2394_p12 = pnand %p2393_p11, %p2527_p5  ;;  %p2401_p2 = por %p2400_p1, %p2399_p0 }
 0x4b6   : > { %1807 = vmatprep.subr.bf16.mxu1 %v2385_v30 }
 0x4b7   : > { %p2395_p13 = pneg %p2394_p12 }
 0x4b9   : > { %1808 = vmatpush2.bf16.msra.mxu1 %v2387_v0  ;;  %p2402_p3 = pnand %p2401_p2, %p2395_p13 }
 0x4bc   : > { %1810 = vmatmul.mubr.bf16.vlgmr.msra.gmra.mxu1 %v3780_v31 }
 0x4bd   : > { %1819 = vmatprep.mubr.bf16.mxu1 %v3781_v48 }
 0x4c4   : > { %1820 = vmatmul.mubr.bf16.gmra.mxu1 %v3781_v48 }
 0x4c5   : > { %1956 = vmatprep.mubr.bf16.mxu1 %v3782_v25 }
 0x57c   : > { %v1811_v8 = vpop.f32.mrf.mxu1 }
 0x57e   : > { %v1813_v20 = vpop.f32.mrf.mxu1 }
 0x580   : > { %v1815_v24 = vpop.f32.mrf.mxu1 }
 0x582   : > { %v1817_v17 = vpop.f32.mrf.mxu1 }
 0x584   : > { %v1821_v46 = vpop.f32.mrf.mxu1 }
 0x585   : > { %2388 = vrcp.f32 %v1821_v46 }
 0x586   : > { %v1823_v50 = vpop.f32.mrf.mxu1 }
 0x587   : > { %2390 = vrcp.f32 %v1823_v50 }
 0x588   : > { %v1825_v33 = vpop.f32.mrf.mxu1 }
 0x58a   : > { %v1826_v1 = vpop.f32.mrf.mxu1 }
 0x592   : > { %v2389_v4 = vpop.eup %2388 }
 0x593   : > { %v1833_v10 = vrot.slane %v2389_v4, %v3783_v34 }
 0x594   : > { %v2391_v45 = vpop.eup %2390 }
 0x595   : > { %v1837_v16 = vrot.slane %v2391_v45, %v3783_v34  ;;  %v1838_v43 = vmul.f32 %v1833_v10, %v1811_v8  ;;  %v1840_v11 = vmul.f32 %v1833_v10, %v1815_v24 }
 0x597   : > { %v1839_v35 = vmul.f32 %v1837_v16, %v1813_v20  ;;  %v1841_v12 = vmul.f32 %v1837_v16, %v1817_v17  ;;  %v2201_v44 = vpack.c.bf16 %v1840_v11, %v1838_v43 }
 0x599   : > { %v2202_v14 = vpack.c.bf16 %v1841_v12, %v1839_v35 }
 0x59b   : > { %1936 = vmatprep.subr.bf16.mxu1 %v2202_v14 }
 0x59c   : > { %1937 = vmatpush1.bf16.msra.mxu1 %v2201_v44 }
 0x59d   : > { %1938 = vmatprep.subr.bf16.mxu1 %v3786_v19 }
 0x5a0   : > { %1939 = vmatpush1.bf16.msra.mxu1 %v3789_v27 }
 0x5a3   : > { %2162 = vmatmul.mubr.msk.bf16.vlgmr.msra.gmra.mxu1 %vm351_vm0, %v2254_v13 }
 0x5a4   : > { %1966 = vmatprep.mubr.bf16.mxu1 %v3782_v25 }
 0x5ab   : > { %2163 = vmatmul.mubr.msk.bf16.gmra.mxu1 %vm351_vm0, %v2255_v63 }
 0x663   : > { %v1958_v39 = vpop.f32.mrf.mxu1 }
 0x664   : > { %v1959_v42 = vadd.f32 %v1958_v39, %v1871_v58 }
 0x665   : > { %v1960_v54 = vpop.f32.mrf.mxu1 }
 0x666   : > { %v1985_v23 = vadd.f32 %v1977_v9, %v1959_v42  ;;  %v1961_v21 = vadd.f32 %v1960_v54, %v1871_v58 }
 0x667   : > { %v1962_v41 = vpop.f32.mrf.mxu1 }
 0x668   : > { %1993 = vst [vmem:[%s3504_s14] sm:$0xff] %v1985_v23  ;;  %v1986_v49 = vadd.f32 %v1978_v38, %v1961_v21  ;;  %v1963_v53 = vadd.f32 %v1962_v41, %v1876_v36 }
 0x669   : > { %v1964_v22 = vpop.f32.mrf.mxu1 }
 0x66a   : > { %1994 = vst [vmem:[%s3504_s14 + $0x8] sm:$0xff] %v1986_v49  ;;  %v1987_v62 = vadd.f32 %v1979_v56, %v1963_v53  ;;  %v1965_v55 = vadd.f32 %v1964_v22, %v1876_v36 }
 0x66b   : > { %v1968_v59 = vpop.f32.mrf.mxu1 }
 0x66c   : > { %1995 = vst [vmem:[%s3504_s14 + $0x10] sm:$0xff] %v1987_v62  ;;  %v1988_v61 = vadd.f32 %v1980_v60, %v1965_v55  ;;  %v1969_v37 = vadd.f32 %v1968_v59, %v1881_v2 }
 0x66d   : > { %v1970_v5 = vpop.f32.mrf.mxu1 }
 0x66e   : > { %1996 = vst [vmem:[%s3504_s14 + $0x18] sm:$0xff] %v1988_v61  ;;  %v1989_v40 = vadd.f32 %v1981_v51, %v1969_v37  ;;  %v1971_v32 = vadd.f32 %v1970_v5, %v1881_v2 }
 0x66f   : > { %v1972_v52 = vpop.f32.mrf.mxu1 }
 0x670   : > { %1997 = vst [vmem:[%s3504_s14 + $0x20] sm:$0xff] %v1989_v40  ;;  %v1990_v7 = vadd.f32 %v1982_v6, %v1971_v32  ;;  %v1973_v30 = vadd.f32 %v1972_v52, %v1886_v15 }
 0x671   : > { %v1974_v0 = vpop.f32.mrf.mxu1 }
 0x672   : > { %1998 = vst [vmem:[%s3504_s14 + $0x28] sm:$0xff] %v1990_v7  ;;  %v1991_v29 = vadd.f32 %v1983_v26, %v1973_v30  ;;  %v1975_v31 = vadd.f32 %v1974_v0, %v1886_v15 }
 0x674   : > { %1999 = vst [vmem:[%s3504_s14 + $0x30] sm:$0xff] %v1991_v29  ;;  %v1992_v48 = vadd.f32 %v1984_v3, %v1975_v31 }
 0x676   : > { %2000 = vst [vmem:[%s3504_s14 + $0x38] sm:$0xff] %v1992_v48 }
 0x677   : > { %2405 = shalt.err (!%p2402_p3)
}
 0x678   : > { %s2406_s8 = scalar_lea.hbm %s3522_s26, 1024  ;;  %s2410_s11 = scalar_lea.hbm %s3575_s5, 2048 }
 0x679   : > { %p2407_p4 = scmp.ne.s32.totalorder %s3522_s26, %s2406_s8  ;;  %p2411_p9 = scmp.lt.s32.totalorder %s3522_s26, %s3575_s5 }
 0x67a   : > { %p2412_p10 = scmp.lt.s32.totalorder %s2410_s11, %s2406_s8 }
 0x67b   : > { %p2408_p7 = pnand %p2407_p4, %p2527_p5 }
 0x67c   : > { %p2413_p11 = por %p2412_p10, %p2411_p9 }
 0x67d   : > { %p2409_p8 = pneg %p2408_p7 }
 0x67f   : > { %p2414_p12 = pnand %p2413_p11, %p2409_p8 }
 0x681   : > { %2417 = shalt.err (!%p2414_p12)
}
 0x682   : > { %s2457_s14 = smov 256   ;;  %s2458_s16 = smov 16  }
 0x683   : > { %2203 = dma.vmem_to_hbm [thread:$0]  (%p2527_p5), %s3524_s17, 1024, %s3522_s26, %s3530_s22, %s2457_s14, %s2457_s14, %s2458_s16  }
 0x684 PF: > { %p2209_p13 = scmp.ge.s32.totalorder %s2452_s21, 2  ;;  %s2030_s23 = sand.u32 1, %s2440_s18  }
 0x685   : > { %s2031_s25 = scalar_lea.sflag [#allocation5], %s2030_s23 }
 0x686   : > { %p2206_p0 = pnand %p2209_p13, %p2531_p6 }
 0x688   : > { %p2207_p1 = pneg %p2206_p0 }
 0x68a   : > { %2435 = dma.done.wait (%p2207_p1), %s2031_s25, 1024  }
 0x68b   : > { %2437 = vsyncadd (%p2207_p1), %s2031_s25, 4294966272  ;;  %p15_p2 = scmp.ge.s32.totalorder %s2514_s24, 4   ;;  %s3790_s18 = smov %s2444_s19 }
 0x68c   : > { %s3791_s19 = smov %s2448_s20  ;;  %s3792_s20 = smov %s2525_s27 }
 0x68d   : > { %s3793_s21 = smov %s2514_s24  ;;  %17 = sbr.rel (!%p15_p2) target bundleno = 3 (0x3), region = 75 }
 0x692   :  { %2036 = vsyncpa [#allocation5], 1 }
 0x693   :  { %2038 = vsyncpa [#allocation5 + $0x1], 1 }

</bundles_post_ra>
